<compile_context>
chip_gen: v6e
topology: v6e:2x2x1
jax: 0.10.0
libtpu: 0.0.40
codegen_flags: <defaults>
</compile_context>

<pallas_src>
import numpy as np
import jax
import jax.numpy as jnp
from jax.experimental import pallas as pl
from jax.experimental.pallas import tpu as pltpu

# ---- model config ----
ATOM_FDIM = 16
BOND_FDIM = 24
HIDDEN = 32
DEPTH = 3

# lane-padded feature sizes (multiples of 128 -> unmasked stores, lane-dense MXU)
AF_P = 128
BF_P = 128
H_P = 128

# ---- batched toy graph: MOLS 4-atom chains (6 directed bonds each) ----
MOLS = 85
N_ATOMS = 1 + MOLS * 4          # 341 real atom rows (row 0 = zero-pad row)
N_BONDS = 1 + MOLS * 6          # 511 real bond rows
NA_P = 512                      # padded atom rows
NB_P = 512                      # padded bond rows
NM_P = 96                       # padded molecule rows
MAX_NB = 2

# tile sizes: every matmul streams 256 rows; 2-wide grid on every tiled axis
TB = 256                        # bond row tile
TK = 256                        # bond K (reduction) tile
TA = 256                        # atom row tile

VMEM_LIMIT = 32 * 1024 * 1024   # explicit scoped-VMEM cap (safe on v5e/v6e/v7x)


# --------------------------- kernels ---------------------------

def init_kernel(f_bonds_ref, Wi_ref, inp_ref, msg_ref):
    # input = W_i(f_bonds) (bias=False); message = ReLU(input)
    inp = jnp.dot(f_bonds_ref[...], Wi_ref[...],
                  preferred_element_type=jnp.float32)
    inp_ref[...] = inp
    msg_ref[...] = jnp.maximum(inp, 0.0).astype(jnp.bfloat16)


def step_kernel(M_ref, msg_ref, inp_ref, Wh_ref, new_msg_ref, acc_ref):
    # gathered = a_message[b2a] - message[b2revb] == (S@A - P) @ message,
    # tiled as a grid K-reduction over bond tiles (axis 1).
    k = pl.program_id(1)

    @pl.when(k == 0)
    def _():
        acc_ref[...] = jnp.zeros_like(acc_ref)

    acc_ref[...] += jnp.dot(M_ref[...], msg_ref[...],
                            preferred_element_type=jnp.float32)

    @pl.when(k == pl.num_programs(1) - 1)
    def _():
        hidden = jnp.dot(acc_ref[...].astype(jnp.bfloat16), Wh_ref[...],
                         preferred_element_type=jnp.float32)
        # message = ReLU(input + W_h(gathered)); dropout(p=0.0) is identity.
        # single f32->bf16 cast per depth step, reused by the next M@message.
        new_msg_ref[...] = jnp.maximum(inp_ref[...] + hidden,
                                       0.0).astype(jnp.bfloat16)


def readout_kernel(A_ref, msg_ref, f_atoms_ref, Wo_ref, bo_ref, Pool_ref,
                   out_ref, amsg_ref):
    i = pl.program_id(0)        # atom row tile
    k = pl.program_id(1)        # bond K tile

    @pl.when(jnp.logical_and(i == 0, k == 0))
    def _():
        out_ref[...] = jnp.zeros_like(out_ref)

    @pl.when(k == 0)
    def _():
        amsg_ref[...] = jnp.zeros_like(amsg_ref)

    # a_message = sum of incoming bond messages  ->  A @ message (K-reduction)
    amsg_ref[...] += jnp.dot(A_ref[...], msg_ref[...],
                             preferred_element_type=jnp.float32)

    @pl.when(k == pl.num_programs(1) - 1)
    def _():
        # atom_hiddens = ReLU(W_o(cat([f_atoms, a_message])))  -- fused K=256 matmul
        # (on v5e two K=128 dots accumulated in f32 would be equivalent).
        a_input = jnp.concatenate(
            [f_atoms_ref[...], amsg_ref[...].astype(jnp.bfloat16)], axis=1)
        atom_h = jnp.maximum(
            jnp.dot(a_input, Wo_ref[...], preferred_element_type=jnp.float32)
            + bo_ref[...], 0.0)
        # per-molecule mean pooling over a_scope, accumulated across atom tiles
        out_ref[...] += jnp.dot(Pool_ref[...], atom_h.astype(jnp.bfloat16),
                                preferred_element_type=jnp.float32)


# --------------------------- wrapper ---------------------------

def _cparams(sem):
    return pltpu.CompilerParams(dimension_semantics=sem,
                                vmem_limit_bytes=VMEM_LIMIT)


@jax.jit
def mpn_encoder_pallas(f_atoms_p, f_bonds_p, M_b, A_b, Pool_b,
                       Wi_p, Wh_p, Wo_p, bo_p):
    # ---- stage 1: input projection over bond-row tiles ("parallel") ----
    inp, msg = pl.pallas_call(
        init_kernel,
        grid=(NB_P // TB,),
        in_specs=[pl.BlockSpec((TB, BF_P), lambda i: (i, 0)),
                  pl.BlockSpec((BF_P, H_P), lambda i: (0, 0))],      # resident weight
        out_specs=(pl.BlockSpec((TB, H_P), lambda i: (i, 0)),
                   pl.BlockSpec((TB, H_P), lambda i: (i, 0))),
        out_shape=(jax.ShapeDtypeStruct((NB_P, H_P), jnp.float32),   # inp (f32)
                   jax.ShapeDtypeStruct((NB_P, H_P), jnp.bfloat16)), # message (bf16)
        compiler_params=_cparams(("parallel",)),
        cost_estimate=pl.CostEstimate(
            flops=2 * NB_P * BF_P * H_P, transcendentals=0,
            bytes_accessed=NB_P * BF_P * 2 + BF_P * H_P * 2 + NB_P * H_P * 6),
    )(f_bonds_p, Wi_p)

    # ---- stage 2: DEPTH-1 message-passing steps (tiled K-reduction over M) ----
    step = pl.pallas_call(
        step_kernel,
        grid=(NB_P // TB, NB_P // TK),
        in_specs=[pl.BlockSpec((TB, TK), lambda i, k: (i, k)),      # M tile (streamed)
                  pl.BlockSpec((TK, H_P), lambda i, k: (k, 0)),     # message K tile
                  pl.BlockSpec((TB, H_P), lambda i, k: (i, 0)),     # input (per-row tile)
                  pl.BlockSpec((H_P, H_P), lambda i, k: (0, 0))],   # W_h (resident)
        out_specs=pl.BlockSpec((TB, H_P), lambda i, k: (i, 0)),
        out_shape=jax.ShapeDtypeStruct((NB_P, H_P), jnp.bfloat16),
        scratch_shapes=[pltpu.VMEM((TB, H_P), jnp.float32)],
        compiler_params=_cparams(("parallel", "arbitrary")),
        cost_estimate=pl.CostEstimate(
            flops=2 * NB_P * NB_P * H_P + 2 * NB_P * H_P * H_P,
            transcendentals=0,
            bytes_accessed=(NB_P * NB_P * 2 + NB_P * H_P * 2 + NB_P * H_P * 4
                            + H_P * H_P * 2 + NB_P * H_P * 2)),
    )
    for _ in range(DEPTH - 1):
        msg = step(M_b, msg, inp, Wh_p)

    # ---- stage 3: atom aggregation + output projection + mean pooling ----
    out = pl.pallas_call(
        readout_kernel,
        grid=(NA_P // TA, NB_P // TK),
        in_specs=[pl.BlockSpec((TA, TK), lambda i, k: (i, k)),          # A tile
                  pl.BlockSpec((TK, H_P), lambda i, k: (k, 0)),         # message K tile
                  pl.BlockSpec((TA, AF_P), lambda i, k: (i, 0)),        # f_atoms tile
                  pl.BlockSpec((AF_P + H_P, H_P), lambda i, k: (0, 0)), # W_o (resident)
                  pl.BlockSpec((1, H_P), lambda i, k: (0, 0)),          # b_o (resident)
                  pl.BlockSpec((NM_P, TA), lambda i, k: (0, i))],       # Pool cols tile
        out_specs=pl.BlockSpec((NM_P, H_P), lambda i, k: (0, 0)),       # mol_vecs (acc)
        out_shape=jax.ShapeDtypeStruct((NM_P, H_P), jnp.float32),
        scratch_shapes=[pltpu.VMEM((TA, H_P), jnp.float32)],
        compiler_params=_cparams(("arbitrary", "arbitrary")),
        cost_estimate=pl.CostEstimate(
            flops=(2 * NA_P * NB_P * H_P + 2 * NA_P * (AF_P + H_P) * H_P
                   + 2 * NM_P * NA_P * H_P),
            transcendentals=0,
            bytes_accessed=(NA_P * NB_P * 2 + NB_P * H_P * 2 + NA_P * AF_P * 2
                            + (AF_P + H_P) * H_P * 2 + H_P * 4
                            + NM_P * NA_P * 2 + NM_P * H_P * 4)),
    )(A_b, msg, f_atoms_p, Wo_p, bo_p, Pool_b)

    return out[:, :HIDDEN]     # strip hidden-lane padding


# --------------------------- reference & data ---------------------------

def reference_jax(f_atoms, f_bonds, a2b, b2a, b2revb, Pool, Wi, Wh, Wo_a, Wo_m, bo,
                  bf16=False):
    """Plain-JAX reference mirroring the PyTorch forward (gather form)."""
    cast = (lambda x: x.astype(jnp.bfloat16)) if bf16 else (lambda x: x)
    dot = lambda a, b: jnp.dot(cast(a), cast(b), preferred_element_type=jnp.float32)

    inp = dot(f_bonds, Wi)
    msg = jnp.maximum(inp, 0.0)
    for _ in range(DEPTH - 1):
        m = cast(msg).astype(jnp.float32)
        a_msg = m[a2b].sum(axis=1)            # index_select_ND + sum
        rev = m[b2revb]
        gathered = a_msg[b2a] - rev
        msg = jnp.maximum(inp + dot(gathered, Wh), 0.0)
    m = cast(msg).astype(jnp.float32)
    a_msg = m[a2b].sum(axis=1)
    atom_h = jnp.maximum(dot(f_atoms, Wo_a) + dot(a_msg, Wo_m) + bo, 0.0)
    return dot(Pool, atom_h)


def build_graph():
    """MOLS molecules, each a 4-atom chain. Index 0 atoms/bonds are padding."""
    a2b = np.zeros((NA_P, MAX_NB), dtype=np.int32)
    b2a = np.zeros((NB_P,), dtype=np.int32)
    b2revb = np.zeros((NB_P,), dtype=np.int32)

    def add_chain(ao, b0):
        src = [ao, ao + 1, ao + 1, ao + 2, ao + 2, ao + 3]
        dst = [ao + 1, ao, ao + 2, ao + 1, ao + 3, ao + 2]
        rev = [1, 0, 3, 2, 5, 4]
        for i in range(6):
            b = b0 + i
            b2a[b] = src[i]
            b2revb[b] = b0 + rev[i]
        incoming = {ao + t: [] for t in range(4)}
        for i in range(6):
            incoming[dst[i]].append(b0 + i)
        for a, bl in incoming.items():
            for j, b in enumerate(bl):
                a2b[a, j] = b

    for m in range(MOLS):
        add_chain(1 + 4 * m, 1 + 6 * m)

    # one-hot / count matrices (dense form of the gathers)
    A = np.zeros((NA_P, NB_P), dtype=np.float32)
    for a in range(NA_P):
        for b in a2b[a]:
            A[a, b] += 1.0
    S = np.zeros((NB_P, NA_P), dtype=np.float32)
    S[np.arange(NB_P), b2a] = 1.0
    P = np.zeros((NB_P, NB_P), dtype=np.float32)
    P[np.arange(NB_P), b2revb] = 1.0
    M = S @ A - P                   # fused bond-mixing operator (small ints, exact)

    # a_scope = [(1 + 4m, 4)], aggregation='mean'
    Pool = np.zeros((NM_P, NA_P), dtype=np.float32)
    for m in range(MOLS):
        Pool[m, 1 + 4 * m: 1 + 4 * m + 4] = 0.25

    return a2b, b2a, b2revb, A, M, Pool


if __name__ == "__main__":
    a2b, b2a, b2revb, A, M, Pool = build_graph()

    key = jax.random.PRNGKey(0)
    k = jax.random.split(key, 6)

    # Row 0 is chemprop's zero padding row; rows >= real count are padding too.
    f_atoms = jax.random.normal(k[0], (NA_P, ATOM_FDIM), jnp.float32)
    f_atoms = f_atoms.at[0].set(0.0).at[N_ATOMS:].set(0.0)
    f_bonds = jax.random.normal(k[1], (NB_P, BOND_FDIM), jnp.float32)
    f_bonds = f_bonds.at[0].set(0.0).at[N_BONDS:].set(0.0)

    def init_lin(kk, fan_in, fan_out):
        bound = 1.0 / np.sqrt(fan_in)
        return jax.random.uniform(kk, (fan_in, fan_out), jnp.float32, -bound, bound)

    Wi = init_lin(k[2], BOND_FDIM, HIDDEN)                    # W_i (no bias)
    Wh = init_lin(k[3], HIDDEN, HIDDEN)                       # W_h (no bias)
    Wo_full = init_lin(k[4], ATOM_FDIM + HIDDEN, HIDDEN)      # W_o (with bias)
    Wo_a, Wo_m = Wo_full[:ATOM_FDIM], Wo_full[ATOM_FDIM:]
    bnd = 1.0 / np.sqrt(ATOM_FDIM + HIDDEN)
    bo = jax.random.uniform(k[5], (1, HIDDEN), jnp.float32, -bnd, bnd)

    # ---- lane-padded (128-dense) bf16 operands for the kernels ----
    def pad2(x, rows, cols):
        out = jnp.zeros((rows, cols), jnp.float32)
        return out.at[:x.shape[0], :x.shape[1]].set(x)

    bf16 = jnp.bfloat16
    f_atoms_p = pad2(f_atoms, NA_P, AF_P).astype(bf16)
    f_bonds_p = pad2(f_bonds, NB_P, BF_P).astype(bf16)
    Wi_p = pad2(Wi, BF_P, H_P).astype(bf16)
    Wh_p = pad2(Wh, H_P, H_P).astype(bf16)
    Wo_p = jnp.zeros((AF_P + H_P, H_P), jnp.float32)
    Wo_p = Wo_p.at[:ATOM_FDIM, :HIDDEN].set(Wo_a)
    Wo_p = Wo_p.at[AF_P:AF_P + HIDDEN, :HIDDEN].set(Wo_m)
    Wo_p = Wo_p.astype(bf16)
    bo_p = pad2(bo, 1, H_P)                                    # bias stays f32
    M_b = jnp.asarray(M).astype(bf16)                          # {-1,0,1,2}: exact
    A_b = jnp.asarray(A).astype(bf16)                          # small counts: exact
    Pool_b = jnp.asarray(Pool).astype(bf16)                    # 0.25: exact

    out = mpn_encoder_pallas(f_atoms_p, f_bonds_p, M_b, A_b, Pool_b,
                             Wi_p, Wh_p, Wo_p, bo_p)
    out = jax.block_until_ready(out)
    mol_vecs = out[:MOLS]                                      # (num_molecules, hidden)
    assert mol_vecs.shape == (MOLS, HIDDEN)

    a2b_j, b2a_j, b2revb_j = jnp.asarray(a2b), jnp.asarray(b2a), jnp.asarray(b2revb)
    Pool_j = jnp.asarray(Pool)

    # Tight check vs. a reference mirroring the kernel's bf16-operand / f32-acc path.
    ref_bf16 = reference_jax(f_atoms, f_bonds, a2b_j, b2a_j, b2revb_j, Pool_j,
                             Wi, Wh, Wo_a, Wo_m, bo, bf16=True)[:MOLS]
    np.testing.assert_allclose(np.asarray(mol_vecs), np.asarray(ref_bf16),
                               rtol=1e-2, atol=1e-2)

    # Loose check vs. the pure-f32 PyTorch-semantics reference.
    ref_f32 = reference_jax(f_atoms, f_bonds, a2b_j, b2a_j, b2revb_j, Pool_j,
                            Wi, Wh, Wo_a, Wo_m, bo, bf16=False)[:MOLS]
    np.testing.assert_allclose(np.asarray(mol_vecs), np.asarray(ref_f32),
                               rtol=5e-2, atol=5e-2)

    print("KERNEL_OK")
</pallas_src>

<mosaic_0001>
module attributes {stable_mosaic.version = 11 : i64} {
  func.func @step_kernel(%arg0: i32, %arg1: i32, %arg2: memref<256x256xbf16, #tpu.memory_space<vmem>>, %arg3: memref<256x128xbf16, #tpu.memory_space<vmem>>, %arg4: memref<256x128xf32, #tpu.memory_space<vmem>>, %arg5: memref<128x128xbf16, #tpu.memory_space<vmem>>, %arg6: memref<256x128xbf16, #tpu.memory_space<vmem>>, %arg7: memref<256x128xf32, #tpu.memory_space<vmem>>) attributes {dimension_semantics = [#tpu.dimension_semantics<parallel>, #tpu.dimension_semantics<arbitrary>], iteration_bounds = array<i64: 2, 2>, scalar_prefetch = 0 : i64, scratch_operands = 1 : i64, tpu.core_type = #tpu.core_type<tc>, window_params = [{transform_indices = @transform_0, window_bounds = array<i64: 256, 256>}, {transform_indices = @transform_1, window_bounds = array<i64: 256, 128>}, {transform_indices = @transform_2, window_bounds = array<i64: 256, 128>}, {pipeline_mode = #tpu.pipeline_mode<synchronous>, transform_indices = @transform_3, window_bounds = array<i64: 128, 128>}, {transform_indices = @transform_4, window_bounds = array<i64: 256, 128>}]} {
    %c0_i32 = arith.constant 0 : i32
    %0 = arith.cmpi eq, %arg1, %c0_i32 : i32
    %1 = arith.extui %0 : i1 to i32
    %c0_i32_0 = arith.constant 0 : i32
    %2 = arith.cmpi ne, %1, %c0_i32_0 : i32
    scf.if %2 {
      %cst_9 = arith.constant 0.000000e+00 : f32
      %12 = vector.broadcast %cst_9 : f32 to vector<256x128xf32>
      %c0_10 = arith.constant 0 : index
      %c0_11 = arith.constant 0 : index
      %13 = vector.load %arg7[%c0_10, %c0_11] : memref<256x128xf32, #tpu.memory_space<vmem>>, vector<256x128xf32>
      tpu.vector_store %arg7[%c0_10, %c0_11], %12 {strides = array<i32>} : memref<256x128xf32, #tpu.memory_space<vmem>>, vector<256x128xf32>,
    } else {
    }
    %c0 = arith.constant 0 : index
    %c0_1 = arith.constant 0 : index
    %3 = vector.load %arg7[%c0, %c0_1] : memref<256x128xf32, #tpu.memory_space<vmem>>, vector<256x128xf32>
    %c0_2 = arith.constant 0 : index
    %c0_3 = arith.constant 0 : index
    %4 = vector.load %arg2[%c0_2, %c0_3] : memref<256x256xbf16, #tpu.memory_space<vmem>>, vector<256x256xbf16>
    %c0_4 = arith.constant 0 : index
    %c0_5 = arith.constant 0 : index
    %5 = vector.load %arg3[%c0_4, %c0_5] : memref<256x128xbf16, #tpu.memory_space<vmem>>, vector<256x128xbf16>
    %cst = arith.constant dense<0.000000e+00> : vector<256x128xf32>
    %6 = tpu.matmul %4, %5, %cst {dimension_numbers = #tpu.dot_dimension_numbers<[1], [0], [0], [1], [0, 0, 1, 1], [], []>} : vector<256x256xbf16>, vector<256x128xbf16>, vector<256x128xf32> -> vector<256x128xf32>
    %7 = arith.addf %3, %6 : vector<256x128xf32>
    %c0_6 = arith.constant 0 : index
    %c0_7 = arith.constant 0 : index
    %8 = vector.load %arg7[%c0_6, %c0_7] : memref<256x128xf32, #tpu.memory_space<vmem>>, vector<256x128xf32>
    tpu.vector_store %arg7[%c0_6, %c0_7], %7 {strides = array<i32>} : memref<256x128xf32, #tpu.memory_space<vmem>>, vector<256x128xf32>,
    %c1_i32 = arith.constant 1 : i32
    %9 = arith.cmpi eq, %arg1, %c1_i32 : i32
    %10 = arith.extui %9 : i1 to i32
    %c0_i32_8 = arith.constant 0 : i32
    %11 = arith.cmpi ne, %10, %c0_i32_8 : i32
    scf.if %11 {
      %c0_9 = arith.constant 0 : index
      %c0_10 = arith.constant 0 : index
      %12 = vector.load %arg7[%c0_9, %c0_10] : memref<256x128xf32, #tpu.memory_space<vmem>>, vector<256x128xf32>
      %13 = arith.truncf %12 : vector<256x128xf32> to vector<256x128xbf16>
      %c0_11 = arith.constant 0 : index
      %c0_12 = arith.constant 0 : index
      %14 = vector.load %arg5[%c0_11, %c0_12] : memref<128x128xbf16, #tpu.memory_space<vmem>>, vector<128x128xbf16>
      %cst_13 = arith.constant dense<0.000000e+00> : vector<256x128xf32>
      %15 = tpu.matmul %13, %14, %cst_13 {dimension_numbers = #tpu.dot_dimension_numbers<[1], [0], [0], [1], [0, 0, 1, 1], [], []>} : vector<256x128xbf16>, vector<128x128xbf16>, vector<256x128xf32> -> vector<256x128xf32>
      %c0_14 = arith.constant 0 : index
      %c0_15 = arith.constant 0 : index
      %16 = vector.load %arg4[%c0_14, %c0_15] : memref<256x128xf32, #tpu.memory_space<vmem>>, vector<256x128xf32>
      %17 = arith.addf %16, %15 : vector<256x128xf32>
      %cst_16 = arith.constant 0.000000e+00 : f32
      %18 = vector.broadcast %cst_16 : f32 to vector<256x128xf32>
      %19 = arith.maximumf %17, %18 : vector<256x128xf32>
      %20 = arith.truncf %19 : vector<256x128xf32> to vector<256x128xbf16>
      %c0_17 = arith.constant 0 : index
      %c0_18 = arith.constant 0 : index
      %21 = vector.load %arg6[%c0_17, %c0_18] : memref<256x128xbf16, #tpu.memory_space<vmem>>, vector<256x128xbf16>
      tpu.vector_store %arg6[%c0_17, %c0_18], %20 {strides = array<i32>} : memref<256x128xbf16, #tpu.memory_space<vmem>>, vector<256x128xbf16>,
    } else {
    }
    return
  }
  func.func @transform_0(%arg0: i32, %arg1: i32) -> (i32, i32) {
    %c0_i32 = arith.constant 0 : i32
    return %arg0, %arg1 : i32, i32
  }
  func.func @transform_1(%arg0: i32, %arg1: i32) -> (i32, i32) {
    %c0_i32 = arith.constant 0 : i32
    %c0_i32_0 = arith.constant 0 : i32
    return %arg1, %c0_i32 : i32, i32
  }
  func.func @transform_2(%arg0: i32, %arg1: i32) -> (i32, i32) {
    %c0_i32 = arith.constant 0 : i32
    %c0_i32_0 = arith.constant 0 : i32
    return %arg0, %c0_i32 : i32, i32
  }
  func.func @transform_3(%arg0: i32, %arg1: i32) -> (i32, i32) {
    %c0_i32 = arith.constant 0 : i32
    %c0_i32_0 = arith.constant 0 : i32
    %c0_i32_1 = arith.constant 0 : i32
    return %c0_i32, %c0_i32_0 : i32, i32
  }
  func.func @transform_4(%arg0: i32, %arg1: i32) -> (i32, i32) {
    %c0_i32 = arith.constant 0 : i32
    %c0_i32_0 = arith.constant 0 : i32
    return %arg0, %c0_i32 : i32, i32
  }
}

module attributes {stable_mosaic.version = 11 : i64} {
  func.func @step_kernel(%arg0: i32, %arg1: i32, %arg2: memref<256x256xbf16, #tpu.memory_space<vmem>>, %arg3: memref<256x128xbf16, #tpu.memory_space<vmem>>, %arg4: memref<256x128xf32, #tpu.memory_space<vmem>>, %arg5: memref<128x128xbf16, #tpu.memory_space<vmem>>, %arg6: memref<256x128xbf16, #tpu.memory_space<vmem>>, %arg7: memref<256x128xf32, #tpu.memory_space<vmem>>) attributes {dimension_semantics = [#tpu.dimension_semantics<parallel>, #tpu.dimension_semantics<arbitrary>], iteration_bounds = array<i64: 2, 2>, scalar_prefetch = 0 : i64, scratch_operands = 1 : i64, tpu.core_type = #tpu.core_type<tc>, window_params = [{transform_indices = @transform_0, window_bounds = array<i64: 256, 256>}, {transform_indices = @transform_1, window_bounds = array<i64: 256, 128>}, {transform_indices = @transform_2, window_bounds = array<i64: 256, 128>}, {pipeline_mode = #tpu.pipeline_mode<synchronous>, transform_indices = @transform_3, window_bounds = array<i64: 128, 128>}, {transform_indices = @transform_4, window_bounds = array<i64: 256, 128>}]} {
    %c0_i32 = arith.constant 0 : i32
    %0 = arith.cmpi eq, %arg1, %c0_i32 : i32
    %1 = arith.extui %0 : i1 to i32
    %c0_i32_0 = arith.constant 0 : i32
    %2 = arith.cmpi ne, %1, %c0_i32_0 : i32
    scf.if %2 {
      %cst_9 = arith.constant 0.000000e+00 : f32
      %12 = vector.broadcast %cst_9 : f32 to vector<256x128xf32>
      %c0_10 = arith.constant 0 : index
      %c0_11 = arith.constant 0 : index
      %13 = vector.load %arg7[%c0_10, %c0_11] : memref<256x128xf32, #tpu.memory_space<vmem>>, vector<256x128xf32>
      tpu.vector_store %arg7[%c0_10, %c0_11], %12 {strides = array<i32>} : memref<256x128xf32, #tpu.memory_space<vmem>>, vector<256x128xf32>,
    } else {
    }
    %c0 = arith.constant 0 : index
    %c0_1 = arith.constant 0 : index
    %3 = vector.load %arg7[%c0, %c0_1] : memref<256x128xf32, #tpu.memory_space<vmem>>, vector<256x128xf32>
    %c0_2 = arith.constant 0 : index
    %c0_3 = arith.constant 0 : index
    %4 = vector.load %arg2[%c0_2, %c0_3] : memref<256x256xbf16, #tpu.memory_space<vmem>>, vector<256x256xbf16>
    %c0_4 = arith.constant 0 : index
    %c0_5 = arith.constant 0 : index
    %5 = vector.load %arg3[%c0_4, %c0_5] : memref<256x128xbf16, #tpu.memory_space<vmem>>, vector<256x128xbf16>
    %cst = arith.constant dense<0.000000e+00> : vector<256x128xf32>
    %6 = tpu.matmul %4, %5, %cst {dimension_numbers = #tpu.dot_dimension_numbers<[1], [0], [0], [1], [0, 0, 1, 1], [], []>} : vector<256x256xbf16>, vector<256x128xbf16>, vector<256x128xf32> -> vector<256x128xf32>
    %7 = arith.addf %3, %6 : vector<256x128xf32>
    %c0_6 = arith.constant 0 : index
    %c0_7 = arith.constant 0 : index
    %8 = vector.load %arg7[%c0_6, %c0_7] : memref<256x128xf32, #tpu.memory_space<vmem>>, vector<256x128xf32>
    tpu.vector_store %arg7[%c0_6, %c0_7], %7 {strides = array<i32>} : memref<256x128xf32, #tpu.memory_space<vmem>>, vector<256x128xf32>,
    %c1_i32 = arith.constant 1 : i32
    %9 = arith.cmpi eq, %arg1, %c1_i32 : i32
    %10 = arith.extui %9 : i1 to i32
    %c0_i32_8 = arith.constant 0 : i32
    %11 = arith.cmpi ne, %10, %c0_i32_8 : i32
    scf.if %11 {
      %c0_9 = arith.constant 0 : index
      %c0_10 = arith.constant 0 : index
      %12 = vector.load %arg7[%c0_9, %c0_10] : memref<256x128xf32, #tpu.memory_space<vmem>>, vector<256x128xf32>
      %13 = arith.truncf %12 : vector<256x128xf32> to vector<256x128xbf16>
      %c0_11 = arith.constant 0 : index
      %c0_12 = arith.constant 0 : index
      %14 = vector.load %arg5[%c0_11, %c0_12] : memref<128x128xbf16, #tpu.memory_space<vmem>>, vector<128x128xbf16>
      %cst_13 = arith.constant dense<0.000000e+00> : vector<256x128xf32>
      %15 = tpu.matmul %13, %14, %cst_13 {dimension_numbers = #tpu.dot_dimension_numbers<[1], [0], [0], [1], [0, 0, 1, 1], [], []>} : vector<256x128xbf16>, vector<128x128xbf16>, vector<256x128xf32> -> vector<256x128xf32>
      %c0_14 = arith.constant 0 : index
      %c0_15 = arith.constant 0 : index
      %16 = vector.load %arg4[%c0_14, %c0_15] : memref<256x128xf32, #tpu.memory_space<vmem>>, vector<256x128xf32>
      %17 = arith.addf %16, %15 : vector<256x128xf32>
      %cst_16 = arith.constant 0.000000e+00 : f32
      %18 = vector.broadcast %cst_16 : f32 to vector<256x128xf32>
      %19 = arith.maximumf %17, %18 : vector<256x128xf32>
      %20 = arith.truncf %19 : vector<256x128xf32> to vector<256x128xbf16>
      %c0_17 = arith.constant 0 : index
      %c0_18 = arith.constant 0 : index
      %21 = vector.load %arg6[%c0_17, %c0_18] : memref<256x128xbf16, #tpu.memory_space<vmem>>, vector<256x128xbf16>
      tpu.vector_store %arg6[%c0_17, %c0_18], %20 {strides = array<i32>} : memref<256x128xbf16, #tpu.memory_space<vmem>>, vector<256x128xbf16>,
    } else {
    }
    return
  }
  func.func @transform_0(%arg0: i32, %arg1: i32) -> (i32, i32) {
    %c0_i32 = arith.constant 0 : i32
    return %arg0, %arg1 : i32, i32
  }
  func.func @transform_1(%arg0: i32, %arg1: i32) -> (i32, i32) {
    %c0_i32 = arith.constant 0 : i32
    %c0_i32_0 = arith.constant 0 : i32
    return %arg1, %c0_i32 : i32, i32
  }
  func.func @transform_2(%arg0: i32, %arg1: i32) -> (i32, i32) {
    %c0_i32 = arith.constant 0 : i32
    %c0_i32_0 = arith.constant 0 : i32
    return %arg0, %c0_i32 : i32, i32
  }
  func.func @transform_3(%arg0: i32, %arg1: i32) -> (i32, i32) {
    %c0_i32 = arith.constant 0 : i32
    %c0_i32_0 = arith.constant 0 : i32
    %c0_i32_1 = arith.constant 0 : i32
    return %c0_i32, %c0_i32_0 : i32, i32
  }
  func.func @transform_4(%arg0: i32, %arg1: i32) -> (i32, i32) {
    %c0_i32 = arith.constant 0 : i32
    %c0_i32_0 = arith.constant 0 : i32
    return %arg0, %c0_i32 : i32, i32
  }
}

module attributes {stable_mosaic.version = 11 : i64} {
  func.func @init_kernel(%arg0: i32, %arg1: memref<256x128xbf16, #tpu.memory_space<vmem>>, %arg2: memref<128x128xbf16, #tpu.memory_space<vmem>>, %arg3: memref<256x128xf32, #tpu.memory_space<vmem>>, %arg4: memref<256x128xbf16, #tpu.memory_space<vmem>>) attributes {dimension_semantics = [#tpu.dimension_semantics<parallel>], iteration_bounds = array<i64: 2>, scalar_prefetch = 0 : i64, scratch_operands = 0 : i64, tpu.core_type = #tpu.core_type<tc>, window_params = [{transform_indices = @transform_0, window_bounds = array<i64: 256, 128>}, {pipeline_mode = #tpu.pipeline_mode<synchronous>, transform_indices = @transform_1, window_bounds = array<i64: 128, 128>}, {transform_indices = @transform_2, window_bounds = array<i64: 256, 128>}, {transform_indices = @transform_3, window_bounds = array<i64: 256, 128>}]} {
    %c0 = arith.constant 0 : index
    %c0_0 = arith.constant 0 : index
    %0 = vector.load %arg1[%c0, %c0_0] : memref<256x128xbf16, #tpu.memory_space<vmem>>, vector<256x128xbf16>
    %c0_1 = arith.constant 0 : index
    %c0_2 = arith.constant 0 : index
    %1 = vector.load %arg2[%c0_1, %c0_2] : memref<128x128xbf16, #tpu.memory_space<vmem>>, vector<128x128xbf16>
    %cst = arith.constant dense<0.000000e+00> : vector<256x128xf32>
    %2 = tpu.matmul %0, %1, %cst {dimension_numbers = #tpu.dot_dimension_numbers<[1], [0], [0], [1], [0, 0, 1, 1], [], []>} : vector<256x128xbf16>, vector<128x128xbf16>, vector<256x128xf32> -> vector<256x128xf32>
    %c0_3 = arith.constant 0 : index
    %c0_4 = arith.constant 0 : index
    %3 = vector.load %arg3[%c0_3, %c0_4] : memref<256x128xf32, #tpu.memory_space<vmem>>, vector<256x128xf32>
    tpu.vector_store %arg3[%c0_3, %c0_4], %2 {strides = array<i32>} : memref<256x128xf32, #tpu.memory_space<vmem>>, vector<256x128xf32>,
    %cst_5 = arith.constant 0.000000e+00 : f32
    %4 = vector.broadcast %cst_5 : f32 to vector<256x128xf32>
    %5 = arith.maximumf %2, %4 : vector<256x128xf32>
    %6 = arith.truncf %5 : vector<256x128xf32> to vector<256x128xbf16>
    %c0_6 = arith.constant 0 : index
    %c0_7 = arith.constant 0 : index
    %7 = vector.load %arg4[%c0_6, %c0_7] : memref<256x128xbf16, #tpu.memory_space<vmem>>, vector<256x128xbf16>
    tpu.vector_store %arg4[%c0_6, %c0_7], %6 {strides = array<i32>} : memref<256x128xbf16, #tpu.memory_space<vmem>>, vector<256x128xbf16>,
    return
  }
  func.func @transform_0(%arg0: i32) -> (i32, i32) {
    %c0_i32 = arith.constant 0 : i32
    %c0_i32_0 = arith.constant 0 : i32
    return %arg0, %c0_i32 : i32, i32
  }
  func.func @transform_1(%arg0: i32) -> (i32, i32) {
    %c0_i32 = arith.constant 0 : i32
    %c0_i32_0 = arith.constant 0 : i32
    %c0_i32_1 = arith.constant 0 : i32
    return %c0_i32, %c0_i32_0 : i32, i32
  }
  func.func @transform_2(%arg0: i32) -> (i32, i32) {
    %c0_i32 = arith.constant 0 : i32
    %c0_i32_0 = arith.constant 0 : i32
    return %arg0, %c0_i32 : i32, i32
  }
  func.func @transform_3(%arg0: i32) -> (i32, i32) {
    %c0_i32 = arith.constant 0 : i32
    %c0_i32_0 = arith.constant 0 : i32
    return %arg0, %c0_i32 : i32, i32
  }
}

module attributes {stable_mosaic.version = 11 : i64} {
  func.func @readout_kernel(%arg0: i32, %arg1: i32, %arg2: memref<256x256xbf16, #tpu.memory_space<vmem>>, %arg3: memref<256x128xbf16, #tpu.memory_space<vmem>>, %arg4: memref<256x128xbf16, #tpu.memory_space<vmem>>, %arg5: memref<256x128xbf16, #tpu.memory_space<vmem>>, %arg6: memref<1x128xf32, #tpu.memory_space<vmem>>, %arg7: memref<96x256xbf16, #tpu.memory_space<vmem>>, %arg8: memref<96x128xf32, #tpu.memory_space<vmem>>, %arg9: memref<256x128xf32, #tpu.memory_space<vmem>>) attributes {dimension_semantics = [#tpu.dimension_semantics<arbitrary>, #tpu.dimension_semantics<arbitrary>], iteration_bounds = array<i64: 2, 2>, scalar_prefetch = 0 : i64, scratch_operands = 1 : i64, tpu.core_type = #tpu.core_type<tc>, window_params = [{transform_indices = @transform_0, window_bounds = array<i64: 256, 256>}, {transform_indices = @transform_1, window_bounds = array<i64: 256, 128>}, {transform_indices = @transform_2, window_bounds = array<i64: 256, 128>}, {pipeline_mode = #tpu.pipeline_mode<synchronous>, transform_indices = @transform_3, window_bounds = array<i64: 256, 128>}, {pipeline_mode = #tpu.pipeline_mode<synchronous>, transform_indices = @transform_4, window_bounds = array<i64: 1, 128>}, {transform_indices = @transform_5, window_bounds = array<i64: 96, 256>}, {pipeline_mode = #tpu.pipeline_mode<synchronous>, transform_indices = @transform_6, window_bounds = array<i64: 96, 128>}]} {
    %c0_i32 = arith.constant 0 : i32
    %0 = arith.cmpi eq, %arg0, %c0_i32 : i32
    %c0_i32_0 = arith.constant 0 : i32
    %1 = arith.cmpi eq, %arg1, %c0_i32_0 : i32
    %2 = arith.andi %0, %1 : i1
    %3 = arith.extui %2 : i1 to i32
    %c0_i32_1 = arith.constant 0 : i32
    %4 = arith.cmpi ne, %3, %c0_i32_1 : i32
    scf.if %4 {
      %cst_12 = arith.constant 0.000000e+00 : f32
      %17 = vector.broadcast %cst_12 : f32 to vector<96x128xf32>
      %c0_13 = arith.constant 0 : index
      %c0_14 = arith.constant 0 : index
      %18 = vector.load %arg8[%c0_13, %c0_14] : memref<96x128xf32, #tpu.memory_space<vmem>>, vector<96x128xf32>
      tpu.vector_store %arg8[%c0_13, %c0_14], %17 {strides = array<i32>} : memref<96x128xf32, #tpu.memory_space<vmem>>, vector<96x128xf32>,
    } else {
    }
    %c0_i32_2 = arith.constant 0 : i32
    %5 = arith.cmpi eq, %arg1, %c0_i32_2 : i32
    %6 = arith.extui %5 : i1 to i32
    %c0_i32_3 = arith.constant 0 : i32
    %7 = arith.cmpi ne, %6, %c0_i32_3 : i32
    scf.if %7 {
      %cst_12 = arith.constant 0.000000e+00 : f32
      %17 = vector.broadcast %cst_12 : f32 to vector<256x128xf32>
      %c0_13 = arith.constant 0 : index
      %c0_14 = arith.constant 0 : index
      %18 = vector.load %arg9[%c0_13, %c0_14] : memref<256x128xf32, #tpu.memory_space<vmem>>, vector<256x128xf32>
      tpu.vector_store %arg9[%c0_13, %c0_14], %17 {strides = array<i32>} : memref<256x128xf32, #tpu.memory_space<vmem>>, vector<256x128xf32>,
    } else {
    }
    %c0 = arith.constant 0 : index
    %c0_4 = arith.constant 0 : index
    %8 = vector.load %arg9[%c0, %c0_4] : memref<256x128xf32, #tpu.memory_space<vmem>>, vector<256x128xf32>
    %c0_5 = arith.constant 0 : index
    %c0_6 = arith.constant 0 : index
    %9 = vector.load %arg2[%c0_5, %c0_6] : memref<256x256xbf16, #tpu.memory_space<vmem>>, vector<256x256xbf16>
    %c0_7 = arith.constant 0 : index
    %c0_8 = arith.constant 0 : index
    %10 = vector.load %arg3[%c0_7, %c0_8] : memref<256x128xbf16, #tpu.memory_space<vmem>>, vector<256x128xbf16>
    %cst = arith.constant dense<0.000000e+00> : vector<256x128xf32>
    %11 = tpu.matmul %9, %10, %cst {dimension_numbers = #tpu.dot_dimension_numbers<[1], [0], [0], [1], [0, 0, 1, 1], [], []>} : vector<256x256xbf16>, vector<256x128xbf16>, vector<256x128xf32> -> vector<256x128xf32>
    %12 = arith.addf %8, %11 : vector<256x128xf32>
    %c0_9 = arith.constant 0 : index
    %c0_10 = arith.constant 0 : index
    %13 = vector.load %arg9[%c0_9, %c0_10] : memref<256x128xf32, #tpu.memory_space<vmem>>, vector<256x128xf32>
    tpu.vector_store %arg9[%c0_9, %c0_10], %12 {strides = array<i32>} : memref<256x128xf32, #tpu.memory_space<vmem>>, vector<256x128xf32>,
    %c1_i32 = arith.constant 1 : i32
    %14 = arith.cmpi eq, %arg1, %c1_i32 : i32
    %15 = arith.extui %14 : i1 to i32
    %c0_i32_11 = arith.constant 0 : i32
    %16 = arith.cmpi ne, %15, %c0_i32_11 : i32
    scf.if %16 {
      %c0_12 = arith.constant 0 : index
      %c0_13 = arith.constant 0 : index
      %17 = vector.load %arg4[%c0_12, %c0_13] : memref<256x128xbf16, #tpu.memory_space<vmem>>, vector<256x128xbf16>
      %c0_14 = arith.constant 0 : index
      %c0_15 = arith.constant 0 : index
      %18 = vector.load %arg9[%c0_14, %c0_15] : memref<256x128xf32, #tpu.memory_space<vmem>>, vector<256x128xf32>
      %19 = arith.truncf %18 : vector<256x128xf32> to vector<256x128xbf16>
      %20 = tpu.concatenate %17, %19 in 1 : vector<256x128xbf16>, vector<256x128xbf16> -> vector<256x256xbf16>
      %c0_16 = arith.constant 0 : index
      %c0_17 = arith.constant 0 : index
      %21 = vector.load %arg5[%c0_16, %c0_17] : memref<256x128xbf16, #tpu.memory_space<vmem>>, vector<256x128xbf16>
      %cst_18 = arith.constant dense<0.000000e+00> : vector<256x128xf32>
      %22 = tpu.matmul %20, %21, %cst_18 {dimension_numbers = #tpu.dot_dimension_numbers<[1], [0], [0], [1], [0, 0, 1, 1], [], []>} : vector<256x256xbf16>, vector<256x128xbf16>, vector<256x128xf32> -> vector<256x128xf32>
      %c0_19 = arith.constant 0 : index
      %c0_20 = arith.constant 0 : index
      %23 = vector.load %arg6[%c0_19, %c0_20] : memref<1x128xf32, #tpu.memory_space<vmem>>, vector<1x128xf32>
      %24 = vector.broadcast %23 : vector<1x128xf32> to vector<256x128xf32>
      %25 = arith.addf %22, %24 : vector<256x128xf32>
      %cst_21 = arith.constant 0.000000e+00 : f32
      %26 = vector.broadcast %cst_21 : f32 to vector<256x128xf32>
      %27 = arith.maximumf %25, %26 : vector<256x128xf32>
      %c0_22 = arith.constant 0 : index
      %c0_23 = arith.constant 0 : index
      %28 = vector.load %arg8[%c0_22, %c0_23] : memref<96x128xf32, #tpu.memory_space<vmem>>, vector<96x128xf32>
      %c0_24 = arith.constant 0 : index
      %c0_25 = arith.constant 0 : index
      %29 = vector.load %arg7[%c0_24, %c0_25] : memref<96x256xbf16, #tpu.memory_space<vmem>>, vector<96x256xbf16>
      %30 = arith.truncf %27 : vector<256x128xf32> to vector<256x128xbf16>
      %cst_26 = arith.constant dense<0.000000e+00> : vector<96x128xf32>
      %31 = tpu.matmul %29, %30, %cst_26 {dimension_numbers = #tpu.dot_dimension_numbers<[1], [0], [0], [1], [0, 0, 1, 1], [], []>} : vector<96x256xbf16>, vector<256x128xbf16>, vector<96x128xf32> -> vector<96x128xf32>
      %32 = arith.addf %28, %31 : vector<96x128xf32>
      %c0_27 = arith.constant 0 : index
      %c0_28 = arith.constant 0 : index
      %33 = vector.load %arg8[%c0_27, %c0_28] : memref<96x128xf32, #tpu.memory_space<vmem>>, vector<96x128xf32>
      tpu.vector_store %arg8[%c0_27, %c0_28], %32 {strides = array<i32>} : memref<96x128xf32, #tpu.memory_space<vmem>>, vector<96x128xf32>,
    } else {
    }
    return
  }
  func.func @transform_0(%arg0: i32, %arg1: i32) -> (i32, i32) {
    %c0_i32 = arith.constant 0 : i32
    return %arg0, %arg1 : i32, i32
  }
  func.func @transform_1(%arg0: i32, %arg1: i32) -> (i32, i32) {
    %c0_i32 = arith.constant 0 : i32
    %c0_i32_0 = arith.constant 0 : i32
    return %arg1, %c0_i32 : i32, i32
  }
  func.func @transform_2(%arg0: i32, %arg1: i32) -> (i32, i32) {
    %c0_i32 = arith.constant 0 : i32
    %c0_i32_0 = arith.constant 0 : i32
    return %arg0, %c0_i32 : i32, i32
  }
  func.func @transform_3(%arg0: i32, %arg1: i32) -> (i32, i32) {
    %c0_i32 = arith.constant 0 : i32
    %c0_i32_0 = arith.constant 0 : i32
    %c0_i32_1 = arith.constant 0 : i32
    return %c0_i32, %c0_i32_0 : i32, i32
  }
  func.func @transform_4(%arg0: i32, %arg1: i32) -> (i32, i32) {
    %c0_i32 = arith.constant 0 : i32
    %c0_i32_0 = arith.constant 0 : i32
    %c0_i32_1 = arith.constant 0 : i32
    return %c0_i32, %c0_i32_0 : i32, i32
  }
  func.func @transform_5(%arg0: i32, %arg1: i32) -> (i32, i32) {
    %c0_i32 = arith.constant 0 : i32
    %c0_i32_0 = arith.constant 0 : i32
    return %c0_i32, %arg0 : i32, i32
  }
  func.func @transform_6(%arg0: i32, %arg1: i32) -> (i32, i32) {
    %c0_i32 = arith.constant 0 : i32
    %c0_i32_0 = arith.constant 0 : i32
    %c0_i32_1 = arith.constant 0 : i32
    return %c0_i32, %c0_i32_0 : i32, i32
  }
}

</mosaic_0001>

<bundles_post_ra>
// kernel: mpn_encoder_pallas.4
= control target key start
LH: loop header
LB: loop body
LE: loop exit
PB: predicated region body
PF: predicated region fallthrough
CT: control target
= control target key end

     0   :  { %9 = vsyncpa [#allocation3], 0  ;;  %s1602_s0 = inlined_call_operand.hbm [shape: bf16[512,128], index: 0, kind: input, shape index: {}]   ;;  %s1603_s1 = inlined_call_operand.hbm [shape: bf16[128,128], index: 1, kind: input, shape index: {}]   ;;  %s1604_s2 = inlined_call_operand.vmem [shape: f32[512,128], index: 2, kind: output, shape index: {0}]   ;;  %s1605_s3 = inlined_call_operand.vmem [shape: bf16[512,128], index: 3, kind: output, shape index: {1}]  }
   0x1   :  { %11 = vsyncpa [#allocation3 + $0x1], 0 }
   0x2   :  { %12 = vsyncpa [#allocation5], 0  ;;  %s1394_s12 = smov 0   ;;  %s1396_s13 = smov 0  }
   0x3   :  { %s1398_s14 = smov 0   ;;  %s1400_s15 = smov 0  }
   0x4 LB: > { %s911_s16 = sadd.s32 4294967295, %s1368_s15   ;;  %p38_p0 = scmp.ne.s32.totalorder %s1360_s13, %s1356_s12  ;;  %s1368_s15 = sphi %s1400_s15, %s1621_s15   ;;  %s1364_s14 = sphi %s1398_s14, %s1620_s14   ;;  %s1360_s13 = sphi %s1396_s13, %s1619_s13   ;;  %s1356_s12 = sphi %s1394_s12, %s1618_s12  }
   0x5   : > { %p1416_p1 = scmp.eq.s32.totalorder %s911_s16, 0  ;;  %p913_p2 = scmp.ge.s32.totalorder %s1368_s15, 1 }
   0x6   : > { %p122_p3 = scmp.lt.s32.totalorder %s1368_s15, 3  ;;  %s1370_s20 = smov [#allocation4]  }
   0x7   : > { %s1610_s17 = scalar_select %p1416_p1, 1, 0 }
   0x8   : > { %p1424_p4 = por %p1416_p1, %p38_p0  ;;  %p1428_p5 = pnand %p913_p2, %p122_p3 }
   0x9   : > { %s134_s21 = sshll.u32 %s1370_s20, 4  ;;  %s1441_s23 = sadd.s32 1, %s1368_s15   ;;  %s135_s21 = int_to_ptr.vmem [resolvable:$true] %s134_s21 }
   0xa   : > { %s1611_s18 = scalar_select %p1424_p4, 1, 0 }
   0xb   : > { %s1612_s19 = scalar_select %p1428_p5, 1, 0 }
   0xc   : > { %p1206_p6 = pneg %p1428_p5  ;;  %s25_s24 = sadd.s32 1, %s1364_s14 }
   0xd   : > { %s22_s25 = ssub.s32 %s1368_s15, %s1441_s23  ;;  %s1287_s26 = scalar_lea.vmem %s135_s21, 1024 }
   0xe   : > { %p1436_p7 = pnand %p1206_p6, %p1416_p1  ;;  %p1288_p9 = scmp.ne.s32.totalorder %s135_s21, %s1287_s26 }
   0xf   : > { %p1295_p12 = scmp.lt.s32.totalorder %s135_s21, %s135_s21  ;;  %p1296_p13 = scmp.lt.s32.totalorder %s1287_s26, %s1287_s26 }
  0x10   : > { %p1278_p8 = pneg %p1436_p7 }
  0x11   : > { %p1297_p0 = por %p1296_p13, %p1295_p12 }
  0x12   : > { %p1290_p10 = pnand %p1288_p9, %p1278_p8 }
  0x14   : > { %p1291_p11 = pneg %p1290_p10 }
  0x16   : > { %p1298_p2 = pnand %p1297_p0, %p1291_p11 }
  0x18   : > { %1301 = shalt.err (!%p1298_p2)
}
  0x19   : > { %s1371_s27 = smov 64   ;;  %s1372_s28 = smov 4  }
  0x1a   : > { %1209 = dma.hbm_to_vmem [thread:$0]  (!%p1436_p7), %s1603_s1, 1024, %s135_s21, [#allocation5], %s1371_s27, %s1371_s27, %s1372_s28  }
  0x1b   : > { %p23_p3 = scmp.eq.s32.totalorder %s22_s25, 0  ;;  %p32_p6 = scmp.ne.s32.totalorder %s1364_s14, %s1360_s13 }
  0x1c   : > { %p33_p8 = scmp.eq.s32.totalorder %s1368_s15, 0  ;;  %p1215_p9 = scmp.lt.s32.totalorder %s1368_s15, 2 }
  0x1d   : > { %s1461_s4 = scalar_select %p23_p3, %s1364_s14, %s25_s24  }
  0x1e   : > { %p34_p10 = por %p33_p8, %p32_p6  ;;  %s148_s5 = sand.u32 1, %s1364_s14  }
  0x1f   : > { %s916_s6 = sshll.u32 %s148_s5, 7  ;;  %s984_s7 = sshll.u32 %s1368_s15, 11 }
  0x20   : > { %s1468_s10 = scalar_lea.hbm %s1602_s0, %s984_s7  ;;  %s152_s11 = scalar_lea.vmem [#allocation2], %s916_s6 }
  0x21   : > { %s159_s12 = sshll.u32 %s152_s11, 4  ;;  %p1472_p7 = pnand %p1215_p9, %p34_p10  ;;  %s1470_s12 = int_to_ptr.vmem [resolvable:$true] %s159_s12 }
  0x22   : > { %s1476_s21 = scalar_lea.sflag [#allocation3], %s148_s5  ;;  %s1302_s22 = scalar_lea.hbm %s1468_s10, 2048 }
  0x23   : > { %p1303_p11 = scmp.ne.s32.totalorder %s1468_s10, %s1302_s22  ;;  %p1304_p12 = pneg %p1472_p7 }
  0x24   : > { %s1307_s26 = scalar_lea.hbm %s1602_s0, 4096  ;;  %p1308_p2 = scmp.lt.s32.totalorder %s1468_s10, %s1602_s0 }
  0x25   : > { %p1305_p13 = pnand %p1304_p12, %p1303_p11  ;;  %p1309_p3 = scmp.lt.s32.totalorder %s1307_s26, %s1302_s22 }
  0x27   : > { %p1306_p0 = pneg %p1305_p13  ;;  %p1310_p6 = por %p1309_p3, %p1308_p2 }
  0x29   : > { %p1311_p8 = pnand %p1310_p6, %p1306_p0 }
  0x2b   : > { %1314 = shalt.err (!%p1311_p8)
}
  0x2c   : > { %s1315_s5 = scalar_lea.vmem %s1470_s12, 2048  ;;  %s1373_s6 = smov [#allocation2]  }
  0x2d   : > { %p1316_p9 = scmp.ne.s32.totalorder %s1470_s12, %s1315_s5  ;;  %s1320_s7 = sshll.u32 %s1373_s6, 4  ;;  %s1321_s7 = int_to_ptr.vmem [resolvable:$false] %s1320_s7 }
  0x2e   : > { %s1322_s8 = scalar_lea.vmem %s1321_s7, 4096  ;;  %p1323_p13 = scmp.lt.s32.totalorder %s1470_s12, %s1321_s7 }
  0x2f   : > { %p1318_p10 = pnand %p1316_p9, %p1304_p12  ;;  %p1324_p1 = scmp.lt.s32.totalorder %s1322_s8, %s1315_s5 }
  0x31   : > { %p1319_p11 = pneg %p1318_p10  ;;  %p1325_p4 = por %p1324_p1, %p1323_p13 }
  0x33   : > { %p1326_p5 = pnand %p1325_p4, %p1319_p11 }
  0x35   : > { %1329 = shalt.err (!%p1326_p5)
}
  0x36   : > { %1213 = dma.hbm_to_vmem [thread:$0]  (!%p1472_p7), %s1468_s10, 2048, %s1470_s12, %s1476_s21, %s1371_s27, %s1371_s27, %s1372_s28  }
  0x37   : > { %p1615_p12 = scmp.ne.s32.totalorder %s1612_s19, 0 }
  0x38   : > { %s173_s9 = sand.u32 (!%p1615_p12), 1, %s1360_s13   ;;  %p1616_p1 = scmp.ne.s32.totalorder (!%p1615_p12), %s1611_s18, 0 }
  0x39   : > { %171 = sbr.rel (%p1615_p12) target bundleno = 327 (0x147), region = 28  ;;  %s920_s11 = sshll.u32 (!%p1615_p12), %s173_s9, 7 }
  0x3a   : > { %s174_s22 = scalar_lea.sflag (!%p1615_p12), [#allocation3], %s173_s9  ;;  %s1503_s24 = scalar_lea.vmem (!%p1615_p12), [#allocation2], %s920_s11 }
  0x3e   : > { %1347 = dma.done.wait (%p1616_p1), %s174_s22, 2048  }
  0x3f   : > { %1349 = vsyncadd (%p1616_p1), %s174_s22, 4294965248  ;;  %p1617_p4 = scmp.ne.s32.totalorder %s1610_s17, 0 }
  0x41   : > { %1351 = dma.done.wait (%p1617_p4), [#allocation5], 1024  }
  0x42   : > { %1353 = vsyncadd (%p1617_p4), [#allocation5], 4294966272  ;;  %v1252_v0 = vld [vmem:[#allocation4 + $0x38] sm:$0xff]   ;;  %v1253_v1 = vld [vmem:[#allocation4 + $0x30] sm:$0xff]   ;;  %s922_s17 = sshll.u32 %s911_s16, 5 }
  0x43   : > { %1136 = vmatprep.subr.bf16.mxu0 %v1252_v0  ;;  %1184 = vmatprep.subr.bf16.mxu1 %v1252_v0  ;;  %v1254_v2 = vld [vmem:[#allocation4 + $0x28] sm:$0xff]   ;;  %v1255_v3 = vld [vmem:[#allocation4 + $0x20] sm:$0xff]   ;;  %v1256_v6 = vld [vmem:[#allocation4 + $0x18] sm:$0xff]   ;;  %p211_p5 = scmp.lt.s32.totalorder %s922_s17, 63 }
  0x44   : > { %1137 = vmatpush3.bf16.msra.mxu0 %v1252_v0  ;;  %1192 = vmatpush3.bf16.msra.mxu1 %v1252_v0  ;;  %v1260_v4 = vld [vmem:[%s1503_s24] sm:$0xff]   ;;  %v1257_v7 = vld [vmem:[#allocation4 + $0x10] sm:$0xff]   ;;  %v1258_v8 = vld [vmem:[#allocation4 + $0x8] sm:$0xff]  }
  0x45   : > { %1138 = vmatprep.subr.bf16.mxu0 %v1253_v1  ;;  %1185 = vmatprep.subr.bf16.mxu1 %v1253_v1  ;;  %v1261_v5 = vld [vmem:[%s1503_s24 + $0x40] sm:$0xff]   ;;  %v1262_v10 = vld [vmem:[%s1503_s24 + $0x8] sm:$0xff]   ;;  %v1264_v12 = vld [vmem:[%s1503_s24 + $0x10] sm:$0xff]   ;;  %s1623_s17 = smov (!%p211_p5, %s922_s17), 63 }
  0x46   : > { %1152 = vmatprep.mubr.bf16.mxu0 %v1260_v4  ;;  %1168 = vmatprep.mubr.bf16.mxu1 %v1261_v5  ;;  %v1259_v9 = vld [vmem:[#allocation4] sm:$0xff]   ;;  %v1263_v11 = vld [vmem:[%s1503_s24 + $0x48] sm:$0xff]   ;;  %v1265_v13 = vld [vmem:[%s1503_s24 + $0x50] sm:$0xff]   ;;  %s923_s18 = sshll.u32 %s1623_s17, 3  ;;  %s925_s15 = sshll.u32 %s1623_s17, 2 }
  0x47   : > { %v1266_v14 = vld [vmem:[%s1503_s24 + $0x18] sm:$0xff]   ;;  %v1268_v16 = vld [vmem:[%s1503_s24 + $0x20] sm:$0xff]   ;;  %v1270_v18 = vld [vmem:[%s1503_s24 + $0x28] sm:$0xff]   ;;  %s1534_s28 = scalar_lea.vmem %s1604_s2, %s923_s18  ;;  %s1545_s12 = scalar_lea.vmem %s1605_s3, %s925_s15 }
  0x48   : > { %1139 = vmatpush3.bf16.msra.mxu0 %v1253_v1  ;;  %1193 = vmatpush3.bf16.msra.mxu1 %v1253_v1  ;;  %v1267_v15 = vld [vmem:[%s1503_s24 + $0x58] sm:$0xff]   ;;  %v1269_v17 = vld [vmem:[%s1503_s24 + $0x60] sm:$0xff]   ;;  %v1271_v19 = vld [vmem:[%s1503_s24 + $0x68] sm:$0xff]  }
  0x49   : > { %1140 = vmatprep.subr.bf16.mxu0 %v1254_v2  ;;  %1186 = vmatprep.subr.bf16.mxu1 %v1254_v2  ;;  %v1272_v20 = vld [vmem:[%s1503_s24 + $0x30] sm:$0xff]   ;;  %v1274_v22 = vld [vmem:[%s1503_s24 + $0x38] sm:$0xff]  }
  0x4a   : > { %v1273_v21 = vld [vmem:[%s1503_s24 + $0x70] sm:$0xff]   ;;  %v1275_v23 = vld [vmem:[%s1503_s24 + $0x78] sm:$0xff]  }
  0x4c   : > { %1141 = vmatpush3.bf16.msra.mxu0 %v1254_v2  ;;  %1194 = vmatpush3.bf16.msra.mxu1 %v1254_v2 }
  0x4d   : > { %1142 = vmatprep.subr.bf16.mxu0 %v1255_v3  ;;  %1187 = vmatprep.subr.bf16.mxu1 %v1255_v3 }
  0x50   : > { %1143 = vmatpush3.bf16.msra.mxu0 %v1255_v3  ;;  %1195 = vmatpush3.bf16.msra.mxu1 %v1255_v3 }
  0x51   : > { %1144 = vmatprep.subr.bf16.mxu0 %v1256_v6  ;;  %1188 = vmatprep.subr.bf16.mxu1 %v1256_v6 }
  0x54   : > { %1145 = vmatpush3.bf16.msra.mxu0 %v1256_v6  ;;  %1196 = vmatpush3.bf16.msra.mxu1 %v1256_v6 }
  0x55   : > { %1146 = vmatprep.subr.bf16.mxu0 %v1257_v7  ;;  %1189 = vmatprep.subr.bf16.mxu1 %v1257_v7 }
  0x58   : > { %1147 = vmatpush3.bf16.msra.mxu0 %v1257_v7  ;;  %1197 = vmatpush3.bf16.msra.mxu1 %v1257_v7 }
  0x59   : > { %1148 = vmatprep.subr.bf16.mxu0 %v1258_v8  ;;  %1190 = vmatprep.subr.bf16.mxu1 %v1258_v8 }
  0x5c   : > { %1149 = vmatpush3.bf16.msra.mxu0 %v1258_v8  ;;  %1198 = vmatpush3.bf16.msra.mxu1 %v1258_v8 }
  0x5d   : > { %1150 = vmatprep.subr.bf16.mxu0 %v1259_v9  ;;  %1191 = vmatprep.subr.bf16.mxu1 %v1259_v9 }
  0x60   : > { %1151 = vmatpush3.bf16.msra.mxu0 %v1259_v9  ;;  %1199 = vmatpush3.bf16.msra.mxu1 %v1259_v9 }
  0x63   : > { %1153 = vmatmul.mubr.bf16.vlgmr.msra.gmra.mxu0 %v1262_v10  ;;  %1169 = vmatmul.mubr.bf16.vlgmr.msra.gmra.mxu1 %v1263_v11 }
  0x64   : > { %1156 = vmatprep.mubr.bf16.mxu0 %v1264_v12  ;;  %1172 = vmatprep.mubr.bf16.mxu1 %v1265_v13 }
  0x6b   : > { %1157 = vmatmul.mubr.bf16.gmra.mxu0 %v1266_v14  ;;  %1173 = vmatmul.mubr.bf16.gmra.mxu1 %v1267_v15 }
  0x6c   : > { %1160 = vmatprep.mubr.bf16.mxu0 %v1268_v16  ;;  %1176 = vmatprep.mubr.bf16.mxu1 %v1269_v17 }
  0x73   : > { %1161 = vmatmul.mubr.bf16.gmra.mxu0 %v1270_v18  ;;  %1177 = vmatmul.mubr.bf16.gmra.mxu1 %v1271_v19 }
  0x74   : > { %1164 = vmatprep.mubr.bf16.mxu0 %v1272_v20  ;;  %1180 = vmatprep.mubr.bf16.mxu1 %v1273_v21 }
  0x7b   : > { %1165 = vmatmul.mubr.bf16.gmra.mxu0 %v1274_v22  ;;  %1181 = vmatmul.mubr.bf16.gmra.mxu1 %v1275_v23 }
 0x123   : > { %v1154_v24 = vpop.f32.mrf.mxu0  ;;  %v1170_v25 = vpop.f32.mrf.mxu1 }
 0x124   : > { %578 = vst [vmem:[%s1534_s28 + $0x10] sm:$0xff] %v1154_v24  ;;  %594 = vst [vmem:[%s1534_s28 + $0x90] sm:$0xff] %v1170_v25  ;;  %v610_v30 = vmax.f32 %v1154_v24, 0.0  ;;  %v626_v31 = vmax.f32 %v1170_v25, 0.0 }
 0x125   : > { %v449_v26 = vpop.f32.mrf.mxu0  ;;  %v513_v27 = vpop.f32.mrf.mxu1 }
 0x126   : > { %576 = vst [vmem:[%s1534_s28] sm:$0xff] %v449_v26  ;;  %592 = vst [vmem:[%s1534_s28 + $0x80] sm:$0xff] %v513_v27  ;;  %v608_v34 = vmax.f32 %v449_v26, 0.0  ;;  %v624_v35 = vmax.f32 %v513_v27, 0.0 }
 0x127   : > { %v1155_v28 = vpop.f32.mrf.mxu0  ;;  %v1171_v29 = vpop.f32.mrf.mxu1 }
 0x128   : > { %579 = vst [vmem:[%s1534_s28 + $0x18] sm:$0xff] %v1155_v28  ;;  %v611_v32 = vmax.f32 %v1155_v28, 0.0  ;;  %595 = vst [vmem:[%s1534_s28 + $0x98] sm:$0xff] %v1171_v29  ;;  %v627_v33 = vmax.f32 %v1171_v29, 0.0 }
 0x129   : > { %v452_v36 = vpop.f32.mrf.mxu0  ;;  %v516_v37 = vpop.f32.mrf.mxu1 }
 0x12a   : > { %v1025_v38 = vpack.c.bf16 %v611_v32, %v610_v30  ;;  %v1065_v39 = vpack.c.bf16 %v627_v33, %v626_v31  ;;  %577 = vst [vmem:[%s1534_s28 + $0x8] sm:$0xff] %v452_v36  ;;  %v609_v40 = vmax.f32 %v452_v36, 0.0  ;;  %593 = vst [vmem:[%s1534_s28 + $0x88] sm:$0xff] %v516_v37  ;;  %v625_v41 = vmax.f32 %v516_v37, 0.0 }
 0x12b   : > { %v1158_v42 = vpop.f32.mrf.mxu0  ;;  %v1174_v43 = vpop.f32.mrf.mxu1 }
 0x12c   : > { %1097 = vst [vmem:[%s1545_s12 + $0x8] sm:$0xff] %v1025_v38   ;;  %1105 = vst [vmem:[%s1545_s12 + $0x48] sm:$0xff] %v1065_v39   ;;  %v1020_v44 = vpack.c.bf16 %v609_v40, %v608_v34  ;;  %v1060_v45 = vpack.c.bf16 %v625_v41, %v624_v35  ;;  %v614_v50 = vmax.f32 %v1158_v42, 0.0  ;;  %v630_v51 = vmax.f32 %v1174_v43, 0.0 }
 0x12d   : > { %582 = vst [vmem:[%s1534_s28 + $0x30] sm:$0xff] %v1158_v42  ;;  %598 = vst [vmem:[%s1534_s28 + $0xb0] sm:$0xff] %v1174_v43  ;;  %v465_v46 = vpop.f32.mrf.mxu0  ;;  %v529_v47 = vpop.f32.mrf.mxu1 }
 0x12e   : > { %1021 = vst [vmem:[%s1545_s12] sm:$0xff] %v1020_v44   ;;  %1104 = vst [vmem:[%s1545_s12 + $0x40] sm:$0xff] %v1060_v45   ;;  %v612_v54 = vmax.f32 %v465_v46, 0.0  ;;  %v628_v55 = vmax.f32 %v529_v47, 0.0 }
 0x12f   : > { %580 = vst [vmem:[%s1534_s28 + $0x20] sm:$0xff] %v465_v46  ;;  %596 = vst [vmem:[%s1534_s28 + $0xa0] sm:$0xff] %v529_v47  ;;  %v1159_v48 = vpop.f32.mrf.mxu0  ;;  %v1175_v49 = vpop.f32.mrf.mxu1 }
 0x130   : > { %583 = vst [vmem:[%s1534_s28 + $0x38] sm:$0xff] %v1159_v48  ;;  %v615_v52 = vmax.f32 %v1159_v48, 0.0  ;;  %599 = vst [vmem:[%s1534_s28 + $0xb8] sm:$0xff] %v1175_v49  ;;  %v631_v53 = vmax.f32 %v1175_v49, 0.0 }
 0x131   : > { %v468_v56 = vpop.f32.mrf.mxu0  ;;  %v532_v57 = vpop.f32.mrf.mxu1 }
 0x132   : > { %v1035_v58 = vpack.c.bf16 %v615_v52, %v614_v50  ;;  %v1075_v59 = vpack.c.bf16 %v631_v53, %v630_v51  ;;  %581 = vst [vmem:[%s1534_s28 + $0x28] sm:$0xff] %v468_v56  ;;  %v613_v60 = vmax.f32 %v468_v56, 0.0  ;;  %597 = vst [vmem:[%s1534_s28 + $0xa8] sm:$0xff] %v532_v57  ;;  %v629_v61 = vmax.f32 %v532_v57, 0.0 }
 0x133   : > { %v1162_v62 = vpop.f32.mrf.mxu0  ;;  %v1178_v63 = vpop.f32.mrf.mxu1 }
 0x134   : > { %1099 = vst [vmem:[%s1545_s12 + $0x18] sm:$0xff] %v1035_v58   ;;  %1107 = vst [vmem:[%s1545_s12 + $0x58] sm:$0xff] %v1075_v59   ;;  %v1030_v0 = vpack.c.bf16 %v613_v60, %v612_v54  ;;  %v1070_v1 = vpack.c.bf16 %v629_v61, %v628_v55  ;;  %v618_v6 = vmax.f32 %v1162_v62, 0.0  ;;  %v634_v7 = vmax.f32 %v1178_v63, 0.0 }
 0x135   : > { %586 = vst [vmem:[%s1534_s28 + $0x50] sm:$0xff] %v1162_v62  ;;  %602 = vst [vmem:[%s1534_s28 + $0xd0] sm:$0xff] %v1178_v63  ;;  %v481_v2 = vpop.f32.mrf.mxu0  ;;  %v545_v3 = vpop.f32.mrf.mxu1 }
 0x136   : > { %1098 = vst [vmem:[%s1545_s12 + $0x10] sm:$0xff] %v1030_v0   ;;  %1106 = vst [vmem:[%s1545_s12 + $0x50] sm:$0xff] %v1070_v1   ;;  %v616_v10 = vmax.f32 %v481_v2, 0.0  ;;  %v632_v11 = vmax.f32 %v545_v3, 0.0 }
 0x137   : > { %584 = vst [vmem:[%s1534_s28 + $0x40] sm:$0xff] %v481_v2  ;;  %600 = vst [vmem:[%s1534_s28 + $0xc0] sm:$0xff] %v545_v3  ;;  %v1163_v4 = vpop.f32.mrf.mxu0  ;;  %v1179_v5 = vpop.f32.mrf.mxu1 }
 0x138   : > { %587 = vst [vmem:[%s1534_s28 + $0x58] sm:$0xff] %v1163_v4  ;;  %v619_v8 = vmax.f32 %v1163_v4, 0.0  ;;  %603 = vst [vmem:[%s1534_s28 + $0xd8] sm:$0xff] %v1179_v5  ;;  %v635_v9 = vmax.f32 %v1179_v5, 0.0 }
 0x139   : > { %v484_v12 = vpop.f32.mrf.mxu0  ;;  %v548_v13 = vpop.f32.mrf.mxu1 }
 0x13a   : > { %v1045_v14 = vpack.c.bf16 %v619_v8, %v618_v6  ;;  %v1085_v15 = vpack.c.bf16 %v635_v9, %v634_v7  ;;  %585 = vst [vmem:[%s1534_s28 + $0x48] sm:$0xff] %v484_v12  ;;  %v617_v16 = vmax.f32 %v484_v12, 0.0  ;;  %601 = vst [vmem:[%s1534_s28 + $0xc8] sm:$0xff] %v548_v13  ;;  %v633_v17 = vmax.f32 %v548_v13, 0.0 }
 0x13b   : > { %v1166_v18 = vpop.f32.mrf.mxu0  ;;  %v1182_v19 = vpop.f32.mrf.mxu1 }
 0x13c   : > { %1101 = vst [vmem:[%s1545_s12 + $0x28] sm:$0xff] %v1045_v14   ;;  %1109 = vst [vmem:[%s1545_s12 + $0x68] sm:$0xff] %v1085_v15   ;;  %v1040_v20 = vpack.c.bf16 %v617_v16, %v616_v10  ;;  %v1080_v21 = vpack.c.bf16 %v633_v17, %v632_v11  ;;  %v622_v26 = vmax.f32 %v1166_v18, 0.0  ;;  %v638_v27 = vmax.f32 %v1182_v19, 0.0 }
 0x13d   : > { %590 = vst [vmem:[%s1534_s28 + $0x70] sm:$0xff] %v1166_v18  ;;  %606 = vst [vmem:[%s1534_s28 + $0xf0] sm:$0xff] %v1182_v19  ;;  %v497_v22 = vpop.f32.mrf.mxu0  ;;  %v561_v23 = vpop.f32.mrf.mxu1 }
 0x13e   : > { %1100 = vst [vmem:[%s1545_s12 + $0x20] sm:$0xff] %v1040_v20   ;;  %1108 = vst [vmem:[%s1545_s12 + $0x60] sm:$0xff] %v1080_v21   ;;  %v620_v30 = vmax.f32 %v497_v22, 0.0  ;;  %v636_v31 = vmax.f32 %v561_v23, 0.0 }
 0x13f   : > { %588 = vst [vmem:[%s1534_s28 + $0x60] sm:$0xff] %v497_v22  ;;  %604 = vst [vmem:[%s1534_s28 + $0xe0] sm:$0xff] %v561_v23  ;;  %v1167_v24 = vpop.f32.mrf.mxu0  ;;  %v1183_v25 = vpop.f32.mrf.mxu1 }
 0x140   : > { %591 = vst [vmem:[%s1534_s28 + $0x78] sm:$0xff] %v1167_v24  ;;  %v623_v28 = vmax.f32 %v1167_v24, 0.0  ;;  %607 = vst [vmem:[%s1534_s28 + $0xf8] sm:$0xff] %v1183_v25  ;;  %v639_v29 = vmax.f32 %v1183_v25, 0.0 }
 0x141   : > { %v500_v32 = vpop.f32.mrf.mxu0  ;;  %v564_v33 = vpop.f32.mrf.mxu1 }
 0x142   : > { %v1055_v34 = vpack.c.bf16 %v623_v28, %v622_v26  ;;  %v1095_v35 = vpack.c.bf16 %v639_v29, %v638_v27  ;;  %589 = vst [vmem:[%s1534_s28 + $0x68] sm:$0xff] %v500_v32  ;;  %v621_v36 = vmax.f32 %v500_v32, 0.0  ;;  %605 = vst [vmem:[%s1534_s28 + $0xe8] sm:$0xff] %v564_v33  ;;  %v637_v37 = vmax.f32 %v564_v33, 0.0 }
 0x144   : > { %1103 = vst [vmem:[%s1545_s12 + $0x38] sm:$0xff] %v1055_v34   ;;  %1111 = vst [vmem:[%s1545_s12 + $0x78] sm:$0xff] %v1095_v35   ;;  %v1050_v38 = vpack.c.bf16 %v621_v36, %v620_v30  ;;  %v1090_v39 = vpack.c.bf16 %v637_v37, %v636_v31 }
 0x146   : > { %1102 = vst [vmem:[%s1545_s12 + $0x30] sm:$0xff] %v1050_v38   ;;  %1110 = vst [vmem:[%s1545_s12 + $0x70] sm:$0xff] %v1090_v39  }
 0x147 PF: > { %p15_p7 = scmp.ge.s32.totalorder %s1441_s23, 4   ;;  %s1618_s12 = smov %s1360_s13 }
 0x148   : > { %s1619_s13 = smov %s1364_s14  ;;  %s1620_s14 = smov %s1461_s4 }
 0x149   : > { %s1621_s15 = smov %s1441_s23  ;;  %17 = sbr.rel (!%p15_p7) target bundleno = 4 (0x4), region = 84 }
 0x14e   :  { %839 = vsyncpa [#allocation3], 1 }
 0x14f   :  { %841 = vsyncpa [#allocation3 + $0x1], 1 }
 0x150   :  { %842 = vsyncpa [#allocation5], 1 }

// kernel: mpn_encoder_pallas.6
= control target key start
LH: loop header
LB: loop body
LE: loop exit
PB: predicated region body
PF: predicated region fallthrough
CT: control target
= control target key end

     0   :  { %s2334_s15 = smov 0   ;;  %s2336_s16 = smov 0   ;;  %s2627_s0 = inlined_call_operand.vmem [shape: bf16[512,512], index: 0, kind: input, shape index: {}]   ;;  %s2628_s1 = inlined_call_operand.vmem [shape: bf16[512,128], index: 1, kind: input, shape index: {}]   ;;  %s2629_s2 = inlined_call_operand.vmem [shape: f32[512,128], index: 2, kind: input, shape index: {}]   ;;  %s2630_s3 = inlined_call_operand.vmem [shape: bf16[128,128], index: 3, kind: input, shape index: {}]   ;;  %s2631_s4 = inlined_call_operand.vmem [shape: bf16[512,128], index: 4, kind: output, shape index: {}]  }
   0x1   :  { %s2338_s17 = smov 0   ;;  %s2340_s18 = smov 0  }
   0x2   :  { %s2342_s19 = smov 0   ;;  %s2344_s20 = smov 0  }
   0x3   :  { %s2346_s21 = smov 0  }
   0x4 LB: > { %s23_s22 = sadd.s32 1, %s2298_s19  ;;  %s26_s23 = sadd.s32 1, %s2302_s20  ;;  %s2306_s21 = sphi %s2346_s21, %s14_s21   ;;  %s2302_s20 = sphi %s2344_s20, %s2637_s20   ;;  %s2298_s19 = sphi %s2342_s19, %s2636_s19   ;;  %s2294_s18 = sphi %s2340_s18, %s2635_s18   ;;  %s2290_s17 = sphi %s2338_s17, %s2634_s17   ;;  %s2286_s16 = sphi %s2336_s16, %s2633_s16   ;;  %s2282_s15 = sphi %s2334_s15, %s2632_s15  }
   0x5   : > { %p24_p0 = scmp.ge.s32.totalorder %s23_s22, 2  ;;  %p42_p1 = scmp.ne.s32.totalorder %s2286_s16, %s2282_s15 }
   0x6   : > { %p43_p2 = scmp.eq.s32.totalorder %s2306_s21, 0  ;;  %s35_s27 = sadd.s32 1, %s2286_s16 }
   0x7   : > { %s2639_s22 = smov (%p24_p0, %s23_s22), 0  ;;  %s2641_s23 = smov (!%p24_p0, %s26_s23), %s2302_s20 }
   0x8   : > { %p44_p3 = por %p43_p2, %p42_p1  ;;  %p28_p4 = scmp.ge.s32.totalorder %s2641_s23, 2 }
   0x9   : > { %s31_s24 = ssub.s32 %s2298_s19, %s2639_s22  ;;  %p1673_p6 = scmp.ge.s32.totalorder %s2306_s21, 4 }
   0xa   : > { %s2643_s23 = smov (%p28_p4, %s2641_s23), 0 }
   0xb   : > { %s30_s25 = ssub.s32 %s2302_s20, %s2643_s23  ;;  %170 = sbr.rel (%p1673_p6) target bundleno = 39 (0x27), region = 20 }
   0xc   : > { %s32_s26 = sor.u32 %s31_s24, %s30_s25 }
   0xd   : > { %p33_p5 = scmp.eq.s32.totalorder %s32_s26, 0 }
   0xf   : > { %s2385_s28 = scalar_select %p33_p5, %s2286_s16, %s35_s27  }
  0x10   : > { %173 = sbr.rel (!%p44_p3) target bundleno = 39 (0x27), region = 24  ;;  %s175_s29 = sand.u32 (%p44_p3), 1, %s2286_s16  }
  0x11   : > { %s1676_s30 = sshll.u32 (%p44_p3), %s2298_s19, 1  ;;  %s1674_s5 = sshll.u32 (%p44_p3), %s175_s29, 8 }
  0x12   : > { %s1779_s6 = sshll.u32 (%p44_p3), %s2302_s20, 7  ;;  %s2399_s12 = scalar_lea.vmem (%p44_p3), [#allocation3], %s1674_s5 }
  0x13   : > { %s181_s7 = sadd.s32 (%p44_p3), %s1779_s6, %s1676_s30 }
  0x14   : > { %s1678_s8 = sshll.u32 (%p44_p3), %s181_s7, 2 }
  0x15   : > { %s2394_s11 = scalar_lea.vmem %s2627_s0, %s1678_s8 }
  0x16   : > { %v274_v0 = vld [vmem:[%s2394_s11] sm:$0xff]  ;;  %v276_v1 = vld [vmem:[%s2394_s11 + $0x10] sm:$0xff] }
  0x17   : > { %v278_v2 = vld [vmem:[%s2394_s11 + $0x20] sm:$0xff]  ;;  %275 = vst [vmem:[%s2399_s12] sm:$0xff] %v274_v0  ;;  %277 = vst [vmem:[%s2399_s12 + $0x8] sm:$0xff] %v276_v1  ;;  %v280_v3 = vld [vmem:[%s2394_s11 + $0x30] sm:$0xff] }
  0x18   : > { %279 = vst [vmem:[%s2399_s12 + $0x10] sm:$0xff] %v278_v2  ;;  %v282_v4 = vld [vmem:[%s2394_s11 + $0x40] sm:$0xff]  ;;  %v284_v5 = vld [vmem:[%s2394_s11 + $0x50] sm:$0xff]  ;;  %281 = vst [vmem:[%s2399_s12 + $0x18] sm:$0xff] %v280_v3 }
  0x19   : > { %283 = vst [vmem:[%s2399_s12 + $0x20] sm:$0xff] %v282_v4  ;;  %285 = vst [vmem:[%s2399_s12 + $0x28] sm:$0xff] %v284_v5  ;;  %v286_v6 = vld [vmem:[%s2394_s11 + $0x60] sm:$0xff]  ;;  %v288_v7 = vld [vmem:[%s2394_s11 + $0x70] sm:$0xff] }
  0x1a   : > { %v290_v8 = vld [vmem:[%s2394_s11 + $0x80] sm:$0xff]  ;;  %287 = vst [vmem:[%s2399_s12 + $0x30] sm:$0xff] %v286_v6  ;;  %289 = vst [vmem:[%s2399_s12 + $0x38] sm:$0xff] %v288_v7  ;;  %v292_v9 = vld [vmem:[%s2394_s11 + $0x90] sm:$0xff] }
  0x1b   : > { %291 = vst [vmem:[%s2399_s12 + $0x40] sm:$0xff] %v290_v8  ;;  %v294_v10 = vld [vmem:[%s2394_s11 + $0xa0] sm:$0xff]  ;;  %v296_v11 = vld [vmem:[%s2394_s11 + $0xb0] sm:$0xff]  ;;  %293 = vst [vmem:[%s2399_s12 + $0x48] sm:$0xff] %v292_v9 }
  0x1c   : > { %295 = vst [vmem:[%s2399_s12 + $0x50] sm:$0xff] %v294_v10  ;;  %297 = vst [vmem:[%s2399_s12 + $0x58] sm:$0xff] %v296_v11  ;;  %v298_v12 = vld [vmem:[%s2394_s11 + $0xc0] sm:$0xff]  ;;  %v300_v13 = vld [vmem:[%s2394_s11 + $0xd0] sm:$0xff] }
  0x1d   : > { %v302_v14 = vld [vmem:[%s2394_s11 + $0xe0] sm:$0xff]  ;;  %299 = vst [vmem:[%s2399_s12 + $0x60] sm:$0xff] %v298_v12  ;;  %301 = vst [vmem:[%s2399_s12 + $0x68] sm:$0xff] %v300_v13  ;;  %v304_v15 = vld [vmem:[%s2394_s11 + $0xf0] sm:$0xff] }
  0x1e   : > { %303 = vst [vmem:[%s2399_s12 + $0x70] sm:$0xff] %v302_v14  ;;  %v306_v16 = vld [vmem:[%s2394_s11 + $0x100] sm:$0xff]  ;;  %v308_v17 = vld [vmem:[%s2394_s11 + $0x110] sm:$0xff]  ;;  %305 = vst [vmem:[%s2399_s12 + $0x78] sm:$0xff] %v304_v15 }
  0x1f   : > { %307 = vst [vmem:[%s2399_s12 + $0x80] sm:$0xff] %v306_v16  ;;  %309 = vst [vmem:[%s2399_s12 + $0x88] sm:$0xff] %v308_v17  ;;  %v310_v18 = vld [vmem:[%s2394_s11 + $0x120] sm:$0xff]  ;;  %v312_v19 = vld [vmem:[%s2394_s11 + $0x130] sm:$0xff] }
  0x20   : > { %v314_v20 = vld [vmem:[%s2394_s11 + $0x140] sm:$0xff]  ;;  %311 = vst [vmem:[%s2399_s12 + $0x90] sm:$0xff] %v310_v18  ;;  %313 = vst [vmem:[%s2399_s12 + $0x98] sm:$0xff] %v312_v19  ;;  %v316_v21 = vld [vmem:[%s2394_s11 + $0x150] sm:$0xff] }
  0x21   : > { %315 = vst [vmem:[%s2399_s12 + $0xa0] sm:$0xff] %v314_v20  ;;  %v318_v22 = vld [vmem:[%s2394_s11 + $0x160] sm:$0xff]  ;;  %v320_v23 = vld [vmem:[%s2394_s11 + $0x170] sm:$0xff]  ;;  %317 = vst [vmem:[%s2399_s12 + $0xa8] sm:$0xff] %v316_v21 }
  0x22   : > { %319 = vst [vmem:[%s2399_s12 + $0xb0] sm:$0xff] %v318_v22  ;;  %321 = vst [vmem:[%s2399_s12 + $0xb8] sm:$0xff] %v320_v23  ;;  %v322_v24 = vld [vmem:[%s2394_s11 + $0x180] sm:$0xff]  ;;  %v324_v25 = vld [vmem:[%s2394_s11 + $0x190] sm:$0xff] }
  0x23   : > { %v326_v26 = vld [vmem:[%s2394_s11 + $0x1a0] sm:$0xff]  ;;  %323 = vst [vmem:[%s2399_s12 + $0xc0] sm:$0xff] %v322_v24  ;;  %325 = vst [vmem:[%s2399_s12 + $0xc8] sm:$0xff] %v324_v25  ;;  %v328_v27 = vld [vmem:[%s2394_s11 + $0x1b0] sm:$0xff] }
  0x24   : > { %327 = vst [vmem:[%s2399_s12 + $0xd0] sm:$0xff] %v326_v26  ;;  %v330_v28 = vld [vmem:[%s2394_s11 + $0x1c0] sm:$0xff]  ;;  %v332_v29 = vld [vmem:[%s2394_s11 + $0x1d0] sm:$0xff]  ;;  %329 = vst [vmem:[%s2399_s12 + $0xd8] sm:$0xff] %v328_v27 }
  0x25   : > { %331 = vst [vmem:[%s2399_s12 + $0xe0] sm:$0xff] %v330_v28  ;;  %333 = vst [vmem:[%s2399_s12 + $0xe8] sm:$0xff] %v332_v29  ;;  %v334_v30 = vld [vmem:[%s2394_s11 + $0x1e0] sm:$0xff]  ;;  %v336_v31 = vld [vmem:[%s2394_s11 + $0x1f0] sm:$0xff] }
  0x26   : > { %335 = vst [vmem:[%s2399_s12 + $0xf0] sm:$0xff] %v334_v30  ;;  %337 = vst [vmem:[%s2399_s12 + $0xf8] sm:$0xff] %v336_v31 }
  0x27 PF: > { %p1679_p7 = scmp.ge.s32.totalorder %s2306_s21, 1  ;;  %p360_p8 = scmp.lt.s32.totalorder %s2306_s21, 5 }
  0x29   : > { %p361_p9 = pnand %p1679_p7, %p360_p8 }
  0x2a   : > { %s367_s13 = sand.u32 (!%p361_p9), 1, %s2282_s15   ;;  %s1681_s14 = sshll.u32 (!%p361_p9), %s2290_s17, 5 }
  0x2b   : > { %364 = sbr.rel (%p361_p9) target bundleno = 630 (0x276), region = 70  ;;  %s1680_s24 = sshll.u32 (!%p361_p9), %s367_s13, 8 }
  0x2c   : > { %p405_p10 = scmp.lt.s32.totalorder (!%p361_p9), %s1681_s14, 63  ;;  %s1683_s25 = sshll.u32 (!%p361_p9), %s2294_s18, 5 }
  0x2d   : > { %p411_p11 = scmp.lt.s32.totalorder (!%p361_p9), %s1683_s25, 63  ;;  %s2482_s11 = scalar_lea.vmem (!%p361_p9), [#allocation3], %s1680_s24 }
  0x2e   : > { %p1687_p12 = scmp.ne.s32.totalorder (!%p361_p9), %s2290_s17, 0 }
  0x30   : > { %s2645_s14 = smov (!%p405_p10, %s1681_s14), 63  ;;  %s2647_s25 = smov (!%p411_p11, %s1683_s25), 63 }
  0x31   : > { %s1682_s26 = sshll.u32 %s2645_s14, 2  ;;  %s1684_s5 = sshll.u32 %s2647_s25, 3 }
  0x32   : > { %s2470_s30 = scalar_lea.vmem %s2628_s1, %s1682_s26  ;;  %s1686_s6 = sshll.u32 %s2647_s25, 2 }
  0x33   : > { %s2475_s9 = scalar_lea.vmem %s2629_s2, %s1684_s5  ;;  %s2480_s18 = scalar_lea.vmem %s2631_s4, %s1686_s6 }
  0x34   : > { %426 = sbr.rel (%p1687_p12) target bundleno = 74 (0x4a), region = 78 }
  0x39   : > { %v2308_v32 = vmov 0.0  }
  0x3a   : > { %427 = vst [vmem:[#allocation2 + $0xb0] sm:$0xff] %v2308_v32  ;;  %428 = vst [vmem:[#allocation2] sm:$0xff] %v2308_v32 }
  0x3b   : > { %429 = vst [vmem:[#allocation2 + $0xd8] sm:$0xff] %v2308_v32  ;;  %430 = vst [vmem:[#allocation2 + $0x18] sm:$0xff] %v2308_v32 }
  0x3c   : > { %431 = vst [vmem:[#allocation2 + $0x50] sm:$0xff] %v2308_v32  ;;  %432 = vst [vmem:[#allocation2 + $0x68] sm:$0xff] %v2308_v32 }
  0x3d   : > { %433 = vst [vmem:[#allocation2 + $0x30] sm:$0xff] %v2308_v32  ;;  %434 = vst [vmem:[#allocation2 + $0x48] sm:$0xff] %v2308_v32 }
  0x3e   : > { %435 = vst [vmem:[#allocation2 + $0x80] sm:$0xff] %v2308_v32  ;;  %436 = vst [vmem:[#allocation2 + $0x88] sm:$0xff] %v2308_v32 }
  0x3f   : > { %437 = vst [vmem:[#allocation2 + $0xe8] sm:$0xff] %v2308_v32  ;;  %438 = vst [vmem:[#allocation2 + $0xb8] sm:$0xff] %v2308_v32 }
  0x40   : > { %439 = vst [vmem:[#allocation2 + $0x60] sm:$0xff] %v2308_v32  ;;  %440 = vst [vmem:[#allocation2 + $0xf0] sm:$0xff] %v2308_v32 }
  0x41   : > { %441 = vst [vmem:[#allocation2 + $0x8] sm:$0xff] %v2308_v32  ;;  %442 = vst [vmem:[#allocation2 + $0x78] sm:$0xff] %v2308_v32 }
  0x42   : > { %443 = vst [vmem:[#allocation2 + $0x38] sm:$0xff] %v2308_v32  ;;  %444 = vst [vmem:[#allocation2 + $0x58] sm:$0xff] %v2308_v32 }
  0x43   : > { %445 = vst [vmem:[#allocation2 + $0x40] sm:$0xff] %v2308_v32  ;;  %446 = vst [vmem:[#allocation2 + $0xc8] sm:$0xff] %v2308_v32 }
  0x44   : > { %447 = vst [vmem:[#allocation2 + $0xe0] sm:$0xff] %v2308_v32  ;;  %448 = vst [vmem:[#allocation2 + $0x90] sm:$0xff] %v2308_v32 }
  0x45   : > { %449 = vst [vmem:[#allocation2 + $0x70] sm:$0xff] %v2308_v32  ;;  %450 = vst [vmem:[#allocation2 + $0xc0] sm:$0xff] %v2308_v32 }
  0x46   : > { %451 = vst [vmem:[#allocation2 + $0xa8] sm:$0xff] %v2308_v32  ;;  %452 = vst [vmem:[#allocation2 + $0xd0] sm:$0xff] %v2308_v32 }
  0x47   : > { %453 = vst [vmem:[#allocation2 + $0x10] sm:$0xff] %v2308_v32  ;;  %454 = vst [vmem:[#allocation2 + $0x28] sm:$0xff] %v2308_v32 }
  0x48   : > { %455 = vst [vmem:[#allocation2 + $0xa0] sm:$0xff] %v2308_v32  ;;  %456 = vst [vmem:[#allocation2 + $0xf8] sm:$0xff] %v2308_v32 }
  0x49   : > { %457 = vst [vmem:[#allocation2 + $0x20] sm:$0xff] %v2308_v32  ;;  %458 = vst [vmem:[#allocation2 + $0x98] sm:$0xff] %v2308_v32 }
  0x4a PF: > { %v2180_v33 = vld [vmem:[%s2470_s30 + $0x78] sm:$0xff]   ;;  %v2182_v35 = vld [vmem:[%s2470_s30 + $0x70] sm:$0xff]   ;;  %v2184_v37 = vld [vmem:[%s2470_s30 + $0x68] sm:$0xff]   ;;  %p1736_p13 = scmp.ne.s32.totalorder %s2290_s17, 1 }
  0x4b   : > { %v2181_v34 = vld [vmem:[%s2470_s30 + $0x38] sm:$0xff]   ;;  %1907 = vmatprep.subr.bf16.mxu0 %v2180_v33  ;;  %2091 = vmatprep.subr.bf16.mxu1 %v2180_v33  ;;  %v2183_v36 = vld [vmem:[%s2470_s30 + $0x30] sm:$0xff]   ;;  %v2185_v38 = vld [vmem:[%s2470_s30 + $0x28] sm:$0xff]  }
  0x4c   : > { %1908 = vmatpush3.bf16.msra.mxu0 %v2181_v34  ;;  %2099 = vmatpush3.bf16.msra.mxu1 %v2181_v34  ;;  %v2186_v39 = vld [vmem:[%s2470_s30 + $0x60] sm:$0xff]   ;;  %v2188_v41 = vld [vmem:[%s2470_s30 + $0x58] sm:$0xff]   ;;  %v2190_v43 = vld [vmem:[%s2470_s30 + $0x50] sm:$0xff]  }
  0x4d   : > { %1909 = vmatprep.subr.bf16.mxu0 %v2182_v35  ;;  %2092 = vmatprep.subr.bf16.mxu1 %v2182_v35  ;;  %v2187_v40 = vld [vmem:[%s2470_s30 + $0x20] sm:$0xff]   ;;  %v2189_v42 = vld [vmem:[%s2470_s30 + $0x18] sm:$0xff]   ;;  %v2191_v46 = vld [vmem:[%s2470_s30 + $0x10] sm:$0xff]  }
  0x4e   : > { %v2198_v44 = vld [vmem:[%s2482_s11 + $0x4] ss:$8 sps:$4 sm:$0xff]   ;;  %v2196_v51 = vld [vmem:[%s2482_s11] ss:$8 sps:$4 sm:$0xff]   ;;  %v2202_v53 = vld [vmem:[%s2482_s11 + $0x14] ss:$8 sps:$4 sm:$0xff]  }
  0x4f   : > { %v2201_v45 = vld [vmem:[%s2482_s11 + $0x84] ss:$8 sps:$4 sm:$0xff]   ;;  %843 = vmatprep.mubr.bf16.mxu0 %v2198_v44  ;;  %v2199_v52 = vld [vmem:[%s2482_s11 + $0x80] ss:$8 sps:$4 sm:$0xff]   ;;  %v2204_v54 = vld [vmem:[%s2482_s11 + $0x94] ss:$8 sps:$4 sm:$0xff]  }
  0x50   : > { %1910 = vmatpush3.bf16.msra.mxu0 %v2183_v36  ;;  %2100 = vmatpush3.bf16.msra.mxu1 %v2183_v36  ;;  %v2192_v47 = vld [vmem:[%s2470_s30 + $0x48] sm:$0xff]   ;;  %v2194_v49 = vld [vmem:[%s2470_s30 + $0x40] sm:$0xff]   ;;  %v2206_v55 = vld [vmem:[%s2482_s11 + $0x10] ss:$8 sps:$4 sm:$0xff]  }
  0x51   : > { %1911 = vmatprep.subr.bf16.mxu0 %v2184_v37  ;;  %2093 = vmatprep.subr.bf16.mxu1 %v2184_v37  ;;  %v2193_v48 = vld [vmem:[%s2470_s30 + $0x8] sm:$0xff]   ;;  %v2195_v50 = vld [vmem:[%s2470_s30] sm:$0xff]   ;;  %v2207_v56 = vld [vmem:[%s2482_s11 + $0x90] ss:$8 sps:$4 sm:$0xff]  }
  0x52   : > { %907 = vmatprep.mubr.bf16.mxu1 %v2201_v45  ;;  %v2208_v57 = vld [vmem:[%s2482_s11 + $0x24] ss:$8 sps:$4 sm:$0xff]   ;;  %v2212_v59 = vld [vmem:[%s2482_s11 + $0x20] ss:$8 sps:$4 sm:$0xff]   ;;  %v2214_v61 = vld [vmem:[%s2482_s11 + $0x34] ss:$8 sps:$4 sm:$0xff]  }
  0x53   : > { %v2210_v58 = vld [vmem:[%s2482_s11 + $0xa4] ss:$8 sps:$4 sm:$0xff]   ;;  %v2213_v60 = vld [vmem:[%s2482_s11 + $0xa0] ss:$8 sps:$4 sm:$0xff]   ;;  %v2216_v62 = vld [vmem:[%s2482_s11 + $0xb4] ss:$8 sps:$4 sm:$0xff]  }
  0x54   : > { %1912 = vmatpush3.bf16.msra.mxu0 %v2185_v38  ;;  %2101 = vmatpush3.bf16.msra.mxu1 %v2185_v38  ;;  %v2218_v63 = vld [vmem:[%s2482_s11 + $0x30] ss:$8 sps:$4 sm:$0xff]   ;;  %v2220_v1 = vld [vmem:[%s2482_s11 + $0x44] ss:$8 sps:$4 sm:$0xff]   ;;  %v2224_v3 = vld [vmem:[%s2482_s11 + $0x40] ss:$8 sps:$4 sm:$0xff]  }
  0x55   : > { %1913 = vmatprep.subr.bf16.mxu0 %v2186_v39  ;;  %2094 = vmatprep.subr.bf16.mxu1 %v2186_v39  ;;  %v2219_v0 = vld [vmem:[%s2482_s11 + $0xb0] ss:$8 sps:$4 sm:$0xff]   ;;  %v2222_v2 = vld [vmem:[%s2482_s11 + $0xc4] ss:$8 sps:$4 sm:$0xff]   ;;  %v2225_v4 = vld [vmem:[%s2482_s11 + $0xc0] ss:$8 sps:$4 sm:$0xff]  }
  0x56   : > { %v2226_v5 = vld [vmem:[%s2482_s11 + $0x54] ss:$8 sps:$4 sm:$0xff]   ;;  %v2230_v7 = vld [vmem:[%s2482_s11 + $0x50] ss:$8 sps:$4 sm:$0xff]   ;;  %v2232_v9 = vld [vmem:[%s2482_s11 + $0x64] ss:$8 sps:$4 sm:$0xff]  }
  0x57   : > { %v2228_v6 = vld [vmem:[%s2482_s11 + $0xd4] ss:$8 sps:$4 sm:$0xff]   ;;  %v2231_v8 = vld [vmem:[%s2482_s11 + $0xd0] ss:$8 sps:$4 sm:$0xff]   ;;  %v2234_v10 = vld [vmem:[%s2482_s11 + $0xe4] ss:$8 sps:$4 sm:$0xff]  }
  0x58   : > { %1914 = vmatpush3.bf16.msra.mxu0 %v2187_v40  ;;  %2102 = vmatpush3.bf16.msra.mxu1 %v2187_v40  ;;  %v2236_v11 = vld [vmem:[%s2482_s11 + $0x60] ss:$8 sps:$4 sm:$0xff]   ;;  %v2238_v13 = vld [vmem:[%s2482_s11 + $0x74] ss:$8 sps:$4 sm:$0xff]   ;;  %v2242_v15 = vld [vmem:[%s2482_s11 + $0x70] ss:$8 sps:$4 sm:$0xff]  }
  0x59   : > { %1915 = vmatprep.subr.bf16.mxu0 %v2188_v41  ;;  %2095 = vmatprep.subr.bf16.mxu1 %v2188_v41  ;;  %v2237_v12 = vld [vmem:[%s2482_s11 + $0xe0] ss:$8 sps:$4 sm:$0xff]   ;;  %v2240_v14 = vld [vmem:[%s2482_s11 + $0xf4] ss:$8 sps:$4 sm:$0xff]   ;;  %v2243_v16 = vld [vmem:[%s2482_s11 + $0xf0] ss:$8 sps:$4 sm:$0xff]  }
  0x5a   : > { %v459_v19 = vld [vmem:[#allocation2 + $0xb0] sm:$0xff]  ;;  %v475_v21 = vld [vmem:[#allocation2 + $0x38] sm:$0xff]  ;;  %v460_v29 = vld [vmem:[#allocation2] sm:$0xff] }
  0x5b   : > { %v476_v31 = vld [vmem:[#allocation2 + $0x58] sm:$0xff]  ;;  %v477_v41 = vld [vmem:[#allocation2 + $0x40] sm:$0xff] }
  0x5c   : > { %1916 = vmatpush3.bf16.msra.mxu0 %v2189_v42  ;;  %2103 = vmatpush3.bf16.msra.mxu1 %v2189_v42  ;;  %v461_v39 = vld [vmem:[#allocation2 + $0xd8] sm:$0xff] }
  0x5d   : > { %1917 = vmatprep.subr.bf16.mxu0 %v2190_v43  ;;  %2096 = vmatprep.subr.bf16.mxu1 %v2190_v43 }
  0x60   : > { %1918 = vmatpush3.bf16.msra.mxu0 %v2191_v46  ;;  %2104 = vmatpush3.bf16.msra.mxu1 %v2191_v46 }
  0x61   : > { %1919 = vmatprep.subr.bf16.mxu0 %v2192_v47  ;;  %2097 = vmatprep.subr.bf16.mxu1 %v2192_v47 }
  0x64   : > { %1920 = vmatpush3.bf16.msra.mxu0 %v2193_v48  ;;  %2105 = vmatpush3.bf16.msra.mxu1 %v2193_v48 }
  0x65   : > { %1921 = vmatprep.subr.bf16.mxu0 %v2194_v49  ;;  %2098 = vmatprep.subr.bf16.mxu1 %v2194_v49  ;;  %v462_v49 = vld [vmem:[#allocation2 + $0x18] sm:$0xff] }
  0x68   : > { %1922 = vmatpush3.bf16.msra.mxu0 %v2195_v50  ;;  %2106 = vmatpush3.bf16.msra.mxu1 %v2195_v50 }
  0x6b   : > { %844 = vmatmul.mubr.bf16.vlgmr.msra.gmra.mxu0 %v2196_v51  ;;  %908 = vmatmul.mubr.bf16.vlgmr.msra.gmra.mxu1 %v2199_v52  ;;  %v478_v51 = vld [vmem:[#allocation2 + $0xc8] sm:$0xff] }
  0x6c   : > { %851 = vmatprep.mubr.bf16.mxu0 %v2202_v53  ;;  %915 = vmatprep.mubr.bf16.mxu1 %v2204_v54 }
  0x73   : > { %852 = vmatmul.mubr.bf16.gmra.mxu0 %v2206_v55  ;;  %916 = vmatmul.mubr.bf16.gmra.mxu1 %v2207_v56 }
  0x74   : > { %859 = vmatprep.mubr.bf16.mxu0 %v2208_v57  ;;  %923 = vmatprep.mubr.bf16.mxu1 %v2210_v58 }
  0x7b   : > { %860 = vmatmul.mubr.bf16.gmra.mxu0 %v2212_v59  ;;  %924 = vmatmul.mubr.bf16.gmra.mxu1 %v2213_v60  ;;  %v463_v59 = vld [vmem:[#allocation2 + $0x50] sm:$0xff] }
  0x7c   : > { %867 = vmatprep.mubr.bf16.mxu0 %v2214_v61  ;;  %931 = vmatprep.mubr.bf16.mxu1 %v2216_v62  ;;  %v479_v61 = vld [vmem:[#allocation2 + $0xe0] sm:$0xff] }
  0x83   : > { %868 = vmatmul.mubr.bf16.gmra.mxu0 %v2218_v63  ;;  %932 = vmatmul.mubr.bf16.gmra.mxu1 %v2219_v0 }
  0x84   : > { %875 = vmatprep.mubr.bf16.mxu0 %v2220_v1  ;;  %939 = vmatprep.mubr.bf16.mxu1 %v2222_v2 }
  0x8b   : > { %876 = vmatmul.mubr.bf16.gmra.mxu0 %v2224_v3  ;;  %940 = vmatmul.mubr.bf16.gmra.mxu1 %v2225_v4 }
  0x8c   : > { %883 = vmatprep.mubr.bf16.mxu0 %v2226_v5  ;;  %947 = vmatprep.mubr.bf16.mxu1 %v2228_v6  ;;  %v464_v5 = vld [vmem:[#allocation2 + $0x68] sm:$0xff] }
  0x93   : > { %884 = vmatmul.mubr.bf16.gmra.mxu0 %v2230_v7  ;;  %948 = vmatmul.mubr.bf16.gmra.mxu1 %v2231_v8  ;;  %v480_v7 = vld [vmem:[#allocation2 + $0x90] sm:$0xff] }
  0x94   : > { %891 = vmatprep.mubr.bf16.mxu0 %v2232_v9  ;;  %955 = vmatprep.mubr.bf16.mxu1 %v2234_v10 }
  0x9b   : > { %892 = vmatmul.mubr.bf16.gmra.mxu0 %v2236_v11  ;;  %956 = vmatmul.mubr.bf16.gmra.mxu1 %v2237_v12 }
  0x9c   : > { %899 = vmatprep.mubr.bf16.mxu0 %v2238_v13  ;;  %963 = vmatprep.mubr.bf16.mxu1 %v2240_v14 }
  0xa3   : > { %900 = vmatmul.mubr.bf16.gmra.mxu0 %v2242_v15  ;;  %964 = vmatmul.mubr.bf16.gmra.mxu1 %v2243_v16  ;;  %v465_v15 = vld [vmem:[#allocation2 + $0x30] sm:$0xff] }
 0x12b   : > { %v1923_v17 = vpop.f32.mrf.mxu0  ;;  %v1971_v18 = vpop.f32.mrf.mxu1 }
 0x12d   : > { %v1924_v20 = vpop.f32.mrf.mxu0  ;;  %v1972_v22 = vpop.f32.mrf.mxu1 }
 0x12e   : > { %v1925_v23 = vadd.f32 %v1924_v20, %v1923_v17  ;;  %v1973_v24 = vadd.f32 %v1972_v22, %v1971_v18  ;;  %v481_v17 = vld [vmem:[#allocation2 + $0x70] sm:$0xff] }
 0x12f   : > { %v1926_v25 = vpop.f32.mrf.mxu0  ;;  %v1974_v26 = vpop.f32.mrf.mxu1 }
 0x130   : > { %v972_v27 = vadd.f32 %v1925_v23, %v459_v19  ;;  %v988_v28 = vadd.f32 %v1973_v24, %v475_v21 }
 0x131   : > { %v1927_v30 = vpop.f32.mrf.mxu0  ;;  %v1975_v32 = vpop.f32.mrf.mxu1 }
 0x132   : > { %1004 = vst [vmem:[#allocation2 + $0xb0] sm:$0xff] %v972_v27  ;;  %1020 = vst [vmem:[#allocation2 + $0x38] sm:$0xff] %v988_v28  ;;  %v1928_v33 = vadd.f32 %v1927_v30, %v1926_v25  ;;  %v1976_v34 = vadd.f32 %v1975_v32, %v1974_v26  ;;  %v466_v25 = vld [vmem:[#allocation2 + $0x48] sm:$0xff]  ;;  %v482_v27 = vld [vmem:[#allocation2 + $0xc0] sm:$0xff] }
 0x133   : > { %v1929_v35 = vpop.f32.mrf.mxu0  ;;  %v1977_v36 = vpop.f32.mrf.mxu1 }
 0x134   : > { %v973_v37 = vadd.f32 %v1928_v33, %v460_v29  ;;  %v989_v38 = vadd.f32 %v1976_v34, %v476_v31 }
 0x135   : > { %v1930_v40 = vpop.f32.mrf.mxu0  ;;  %v1978_v42 = vpop.f32.mrf.mxu1 }
 0x136   : > { %1005 = vst [vmem:[#allocation2] sm:$0xff] %v973_v37  ;;  %1021 = vst [vmem:[#allocation2 + $0x58] sm:$0xff] %v989_v38  ;;  %v1931_v43 = vadd.f32 %v1930_v40, %v1929_v35  ;;  %v1979_v44 = vadd.f32 %v1978_v42, %v1977_v36  ;;  %v467_v35 = vld [vmem:[#allocation2 + $0x80] sm:$0xff]  ;;  %v483_v37 = vld [vmem:[#allocation2 + $0xa8] sm:$0xff] }
 0x137   : > { %v1932_v45 = vpop.f32.mrf.mxu0  ;;  %v1980_v46 = vpop.f32.mrf.mxu1 }
 0x138   : > { %v974_v47 = vadd.f32 %v1931_v43, %v461_v39  ;;  %v990_v48 = vadd.f32 %v1979_v44, %v477_v41 }
 0x139   : > { %v1933_v50 = vpop.f32.mrf.mxu0  ;;  %v1981_v52 = vpop.f32.mrf.mxu1 }
 0x13a   : > { %1006 = vst [vmem:[#allocation2 + $0xd8] sm:$0xff] %v974_v47  ;;  %1022 = vst [vmem:[#allocation2 + $0x40] sm:$0xff] %v990_v48  ;;  %v1934_v53 = vadd.f32 %v1933_v50, %v1932_v45  ;;  %v1982_v54 = vadd.f32 %v1981_v52, %v1980_v46  ;;  %v468_v45 = vld [vmem:[#allocation2 + $0x88] sm:$0xff]  ;;  %v484_v47 = vld [vmem:[#allocation2 + $0xd0] sm:$0xff] }
 0x13b   : > { %v1935_v55 = vpop.f32.mrf.mxu0  ;;  %v1983_v56 = vpop.f32.mrf.mxu1 }
 0x13c   : > { %v975_v57 = vadd.f32 %v1934_v53, %v462_v49  ;;  %v991_v58 = vadd.f32 %v1982_v54, %v478_v51 }
 0x13d   : > { %v1936_v60 = vpop.f32.mrf.mxu0  ;;  %v1984_v62 = vpop.f32.mrf.mxu1 }
 0x13e   : > { %1007 = vst [vmem:[#allocation2 + $0x18] sm:$0xff] %v975_v57  ;;  %1023 = vst [vmem:[#allocation2 + $0xc8] sm:$0xff] %v991_v58  ;;  %v1937_v63 = vadd.f32 %v1936_v60, %v1935_v55  ;;  %v1985_v0 = vadd.f32 %v1984_v62, %v1983_v56  ;;  %v469_v55 = vld [vmem:[#allocation2 + $0xe8] sm:$0xff]  ;;  %v485_v57 = vld [vmem:[#allocation2 + $0x10] sm:$0xff] }
 0x13f   : > { %v1938_v1 = vpop.f32.mrf.mxu0  ;;  %v1986_v2 = vpop.f32.mrf.mxu1 }
 0x140   : > { %v976_v3 = vadd.f32 %v1937_v63, %v463_v59  ;;  %v992_v4 = vadd.f32 %v1985_v0, %v479_v61 }
 0x141   : > { %v1939_v6 = vpop.f32.mrf.mxu0  ;;  %v1987_v8 = vpop.f32.mrf.mxu1 }
 0x142   : > { %1008 = vst [vmem:[#allocation2 + $0x50] sm:$0xff] %v976_v3  ;;  %1024 = vst [vmem:[#allocation2 + $0xe0] sm:$0xff] %v992_v4  ;;  %v1940_v9 = vadd.f32 %v1939_v6, %v1938_v1  ;;  %v1988_v10 = vadd.f32 %v1987_v8, %v1986_v2  ;;  %v470_v1 = vld [vmem:[#allocation2 + $0xb8] sm:$0xff]  ;;  %v486_v3 = vld [vmem:[#allocation2 + $0x28] sm:$0xff] }
 0x143   : > { %v1941_v11 = vpop.f32.mrf.mxu0  ;;  %v1989_v12 = vpop.f32.mrf.mxu1 }
 0x144   : > { %v977_v13 = vadd.f32 %v1940_v9, %v464_v5  ;;  %v993_v14 = vadd.f32 %v1988_v10, %v480_v7 }
 0x145   : > { %v1942_v16 = vpop.f32.mrf.mxu0  ;;  %v1990_v18 = vpop.f32.mrf.mxu1 }
 0x146   : > { %1009 = vst [vmem:[#allocation2 + $0x68] sm:$0xff] %v977_v13  ;;  %1025 = vst [vmem:[#allocation2 + $0x90] sm:$0xff] %v993_v14  ;;  %v1943_v19 = vadd.f32 %v1942_v16, %v1941_v11  ;;  %v1991_v20 = vadd.f32 %v1990_v18, %v1989_v12  ;;  %v471_v11 = vld [vmem:[#allocation2 + $0x60] sm:$0xff] }
 0x147   : > { %v1944_v21 = vpop.f32.mrf.mxu0  ;;  %v1992_v22 = vpop.f32.mrf.mxu1  ;;  %v487_v13 = vld [vmem:[#allocation2 + $0xa0] sm:$0xff] }
 0x148   : > { %v978_v23 = vadd.f32 %v1943_v19, %v465_v15  ;;  %v994_v24 = vadd.f32 %v1991_v20, %v481_v17 }
 0x149   : > { %v1945_v26 = vpop.f32.mrf.mxu0  ;;  %v1993_v28 = vpop.f32.mrf.mxu1 }
 0x14a   : > { %1010 = vst [vmem:[#allocation2 + $0x30] sm:$0xff] %v978_v23  ;;  %1026 = vst [vmem:[#allocation2 + $0x70] sm:$0xff] %v994_v24  ;;  %v1946_v29 = vadd.f32 %v1945_v26, %v1944_v21  ;;  %v1994_v30 = vadd.f32 %v1993_v28, %v1992_v22  ;;  %v472_v21 = vld [vmem:[#allocation2 + $0xf0] sm:$0xff]  ;;  %v488_v23 = vld [vmem:[#allocation2 + $0xf8] sm:$0xff] }
 0x14b   : > { %v1947_v31 = vpop.f32.mrf.mxu0  ;;  %v1995_v32 = vpop.f32.mrf.mxu1 }
 0x14c   : > { %v979_v33 = vadd.f32 %v1946_v29, %v466_v25  ;;  %v995_v34 = vadd.f32 %v1994_v30, %v482_v27 }
 0x14d   : > { %v1948_v36 = vpop.f32.mrf.mxu0  ;;  %v1996_v38 = vpop.f32.mrf.mxu1 }
 0x14e   : > { %1011 = vst [vmem:[#allocation2 + $0x48] sm:$0xff] %v979_v33  ;;  %1027 = vst [vmem:[#allocation2 + $0xc0] sm:$0xff] %v995_v34  ;;  %v1949_v39 = vadd.f32 %v1948_v36, %v1947_v31  ;;  %v1997_v40 = vadd.f32 %v1996_v38, %v1995_v32  ;;  %v473_v31 = vld [vmem:[#allocation2 + $0x8] sm:$0xff]  ;;  %v489_v33 = vld [vmem:[#allocation2 + $0x20] sm:$0xff] }
 0x14f   : > { %v1950_v41 = vpop.f32.mrf.mxu0  ;;  %v1998_v42 = vpop.f32.mrf.mxu1 }
 0x150   : > { %v980_v43 = vadd.f32 %v1949_v39, %v467_v35  ;;  %v996_v44 = vadd.f32 %v1997_v40, %v483_v37 }
 0x151   : > { %v1951_v46 = vpop.f32.mrf.mxu0  ;;  %v1999_v48 = vpop.f32.mrf.mxu1 }
 0x152   : > { %1012 = vst [vmem:[#allocation2 + $0x80] sm:$0xff] %v980_v43  ;;  %1028 = vst [vmem:[#allocation2 + $0xa8] sm:$0xff] %v996_v44  ;;  %v1952_v49 = vadd.f32 %v1951_v46, %v1950_v41  ;;  %v2000_v50 = vadd.f32 %v1999_v48, %v1998_v42  ;;  %v474_v41 = vld [vmem:[#allocation2 + $0x78] sm:$0xff] }
 0x153   : > { %v1953_v51 = vpop.f32.mrf.mxu0  ;;  %v2001_v52 = vpop.f32.mrf.mxu1  ;;  %v490_v43 = vld [vmem:[#allocation2 + $0x98] sm:$0xff] }
 0x154   : > { %v981_v53 = vadd.f32 %v1952_v49, %v468_v45  ;;  %v997_v54 = vadd.f32 %v2000_v50, %v484_v47 }
 0x155   : > { %v1954_v56 = vpop.f32.mrf.mxu0  ;;  %v2002_v58 = vpop.f32.mrf.mxu1 }
 0x156   : > { %1013 = vst [vmem:[#allocation2 + $0x88] sm:$0xff] %v981_v53  ;;  %1029 = vst [vmem:[#allocation2 + $0xd0] sm:$0xff] %v997_v54  ;;  %v1955_v59 = vadd.f32 %v1954_v56, %v1953_v51  ;;  %v2003_v60 = vadd.f32 %v2002_v58, %v2001_v52 }
 0x157   : > { %v1956_v61 = vpop.f32.mrf.mxu0  ;;  %v2004_v62 = vpop.f32.mrf.mxu1 }
 0x158   : > { %v982_v63 = vadd.f32 %v1955_v59, %v469_v55  ;;  %v998_v0 = vadd.f32 %v2003_v60, %v485_v57 }
 0x159   : > { %v1957_v2 = vpop.f32.mrf.mxu0  ;;  %v2005_v4 = vpop.f32.mrf.mxu1 }
 0x15a   : > { %1014 = vst [vmem:[#allocation2 + $0xe8] sm:$0xff] %v982_v63  ;;  %1030 = vst [vmem:[#allocation2 + $0x10] sm:$0xff] %v998_v0  ;;  %v1958_v5 = vadd.f32 %v1957_v2, %v1956_v61  ;;  %v2006_v6 = vadd.f32 %v2005_v4, %v2004_v62 }
 0x15b   : > { %v1959_v7 = vpop.f32.mrf.mxu0  ;;  %v2007_v8 = vpop.f32.mrf.mxu1 }
 0x15c   : > { %v983_v9 = vadd.f32 %v1958_v5, %v470_v1  ;;  %v999_v10 = vadd.f32 %v2006_v6, %v486_v3 }
 0x15d   : > { %v1960_v12 = vpop.f32.mrf.mxu0  ;;  %v2008_v14 = vpop.f32.mrf.mxu1 }
 0x15e   : > { %1015 = vst [vmem:[#allocation2 + $0xb8] sm:$0xff] %v983_v9  ;;  %1031 = vst [vmem:[#allocation2 + $0x28] sm:$0xff] %v999_v10  ;;  %v1961_v15 = vadd.f32 %v1960_v12, %v1959_v7  ;;  %v2009_v16 = vadd.f32 %v2008_v14, %v2007_v8 }
 0x15f   : > { %v1962_v17 = vpop.f32.mrf.mxu0  ;;  %v2010_v18 = vpop.f32.mrf.mxu1 }
 0x160   : > { %v984_v19 = vadd.f32 %v1961_v15, %v471_v11  ;;  %v1000_v20 = vadd.f32 %v2009_v16, %v487_v13 }
 0x161   : > { %v1963_v22 = vpop.f32.mrf.mxu0  ;;  %v2011_v24 = vpop.f32.mrf.mxu1 }
 0x162   : > { %1016 = vst [vmem:[#allocation2 + $0x60] sm:$0xff] %v984_v19  ;;  %1032 = vst [vmem:[#allocation2 + $0xa0] sm:$0xff] %v1000_v20  ;;  %v1964_v25 = vadd.f32 %v1963_v22, %v1962_v17  ;;  %v2012_v26 = vadd.f32 %v2011_v24, %v2010_v18 }
 0x163   : > { %v1965_v27 = vpop.f32.mrf.mxu0  ;;  %v2013_v28 = vpop.f32.mrf.mxu1 }
 0x164   : > { %v985_v29 = vadd.f32 %v1964_v25, %v472_v21  ;;  %v1001_v30 = vadd.f32 %v2012_v26, %v488_v23 }
 0x165   : > { %v1966_v32 = vpop.f32.mrf.mxu0  ;;  %v2014_v34 = vpop.f32.mrf.mxu1 }
 0x166   : > { %1017 = vst [vmem:[#allocation2 + $0xf0] sm:$0xff] %v985_v29  ;;  %1033 = vst [vmem:[#allocation2 + $0xf8] sm:$0xff] %v1001_v30  ;;  %v1967_v35 = vadd.f32 %v1966_v32, %v1965_v27  ;;  %v2015_v36 = vadd.f32 %v2014_v34, %v2013_v28 }
 0x167   : > { %v1968_v37 = vpop.f32.mrf.mxu0  ;;  %v2016_v38 = vpop.f32.mrf.mxu1 }
 0x168   : > { %v986_v39 = vadd.f32 %v1967_v35, %v473_v31  ;;  %v1002_v40 = vadd.f32 %v2015_v36, %v489_v33 }
 0x169   : > { %v1969_v42 = vpop.f32.mrf.mxu0  ;;  %v2017_v44 = vpop.f32.mrf.mxu1 }
 0x16a   : > { %1018 = vst [vmem:[#allocation2 + $0x8] sm:$0xff] %v986_v39  ;;  %1034 = vst [vmem:[#allocation2 + $0x20] sm:$0xff] %v1002_v40  ;;  %v1970_v45 = vadd.f32 %v1969_v42, %v1968_v37  ;;  %v2018_v46 = vadd.f32 %v2017_v44, %v2016_v38  ;;  %1039 = sbr.rel (%p1736_p13) target bundleno = 630 (0x276), region = 82 }
 0x16c   : > { %v987_v47 = vadd.f32 %v1970_v45, %v474_v41  ;;  %v1003_v48 = vadd.f32 %v2018_v46, %v490_v43 }
 0x16e   : > { %1019 = vst [vmem:[#allocation2 + $0x78] sm:$0xff] %v987_v47  ;;  %1035 = vst [vmem:[#allocation2 + $0x98] sm:$0xff] %v1003_v48 }
 0x16f   : > { %v2244_v49 = vld [vmem:[%s2630_s3 + $0x38] sm:$0xff]   ;;  %v2245_v50 = vld [vmem:[%s2630_s3 + $0x30] sm:$0xff]   ;;  %v2246_v51 = vld [vmem:[%s2630_s3 + $0x28] sm:$0xff]  }
 0x170   : > { %2043 = vmatprep.subr.bf16.mxu0 %v2244_v49  ;;  %2107 = vmatprep.subr.bf16.mxu1 %v2244_v49  ;;  %v2247_v52 = vld [vmem:[%s2630_s3 + $0x20] sm:$0xff]   ;;  %v1040_v53 = vld [vmem:[#allocation2 + $0xb0] sm:$0xff]  ;;  %v1056_v55 = vld [vmem:[#allocation2 + $0x38] sm:$0xff] }
 0x171   : > { %2044 = vmatpush3.bf16.msra.mxu0 %v2244_v49  ;;  %2115 = vmatpush3.bf16.msra.mxu1 %v2244_v49  ;;  %v1041_v54 = vld [vmem:[#allocation2] sm:$0xff]  ;;  %v1057_v57 = vld [vmem:[#allocation2 + $0x58] sm:$0xff]  ;;  %v2249_v60 = vld [vmem:[%s2630_s3 + $0x10] sm:$0xff]  }
 0x172   : > { %2045 = vmatprep.subr.bf16.mxu0 %v2245_v50  ;;  %2108 = vmatprep.subr.bf16.mxu1 %v2245_v50  ;;  %v1072_v56 = vpack.c.bf16 %v1041_v54, %v1040_v53  ;;  %v1080_v58 = vpack.c.bf16 %v1057_v57, %v1056_v55  ;;  %v2248_v59 = vld [vmem:[%s2630_s3 + $0x18] sm:$0xff]   ;;  %v2250_v61 = vld [vmem:[%s2630_s3 + $0x8] sm:$0xff]   ;;  %v2251_v62 = vld [vmem:[%s2630_s3] sm:$0xff]  }
 0x173   : > { %v1042_v63 = vld [vmem:[#allocation2 + $0xd8] sm:$0xff]  ;;  %v1058_v1 = vld [vmem:[#allocation2 + $0x40] sm:$0xff]  ;;  %v1059_v2 = vld [vmem:[#allocation2 + $0xc8] sm:$0xff] }
 0x174   : > { %2059 = vmatprep.mubr.bf16.mxu0 %v1072_v56  ;;  %2075 = vmatprep.mubr.bf16.mxu1 %v1080_v58  ;;  %v1043_v0 = vld [vmem:[#allocation2 + $0x18] sm:$0xff]  ;;  %v1044_v3 = vld [vmem:[#allocation2 + $0x50] sm:$0xff]  ;;  %v1045_v4 = vld [vmem:[#allocation2 + $0x68] sm:$0xff]  ;;  %v1081_v8 = vpack.c.bf16 %v1059_v2, %v1058_v1 }
 0x175   : > { %2046 = vmatpush3.bf16.msra.mxu0 %v2245_v50  ;;  %2116 = vmatpush3.bf16.msra.mxu1 %v2245_v50  ;;  %v1060_v5 = vld [vmem:[#allocation2 + $0xe0] sm:$0xff]  ;;  %v1061_v6 = vld [vmem:[#allocation2 + $0x90] sm:$0xff]  ;;  %v1073_v7 = vpack.c.bf16 %v1043_v0, %v1042_v63  ;;  %v1074_v9 = vpack.c.bf16 %v1045_v4, %v1044_v3  ;;  %v1047_v12 = vld [vmem:[#allocation2 + $0x48] sm:$0xff] }
 0x176   : > { %2047 = vmatprep.subr.bf16.mxu0 %v2246_v51  ;;  %2109 = vmatprep.subr.bf16.mxu1 %v2246_v51  ;;  %v1082_v10 = vpack.c.bf16 %v1061_v6, %v1060_v5  ;;  %v1046_v11 = vld [vmem:[#allocation2 + $0x30] sm:$0xff]  ;;  %v1063_v14 = vld [vmem:[#allocation2 + $0xc0] sm:$0xff]  ;;  %v1049_v16 = vld [vmem:[#allocation2 + $0x88] sm:$0xff] }
 0x177   : > { %v1062_v13 = vld [vmem:[#allocation2 + $0x70] sm:$0xff]  ;;  %v1048_v15 = vld [vmem:[#allocation2 + $0x80] sm:$0xff]  ;;  %v1064_v17 = vld [vmem:[#allocation2 + $0xa8] sm:$0xff]  ;;  %v1075_v19 = vpack.c.bf16 %v1047_v12, %v1046_v11 }
 0x178   : > { %v1065_v18 = vld [vmem:[#allocation2 + $0xd0] sm:$0xff]  ;;  %v1083_v20 = vpack.c.bf16 %v1063_v14, %v1062_v13  ;;  %v1076_v21 = vpack.c.bf16 %v1049_v16, %v1048_v15  ;;  %v1050_v23 = vld [vmem:[#allocation2 + $0xe8] sm:$0xff]  ;;  %v1051_v24 = vld [vmem:[#allocation2 + $0xb8] sm:$0xff] }
 0x179   : > { %2048 = vmatpush3.bf16.msra.mxu0 %v2246_v51  ;;  %2117 = vmatpush3.bf16.msra.mxu1 %v2246_v51  ;;  %v1084_v22 = vpack.c.bf16 %v1065_v18, %v1064_v17  ;;  %v1066_v25 = vld [vmem:[#allocation2 + $0x10] sm:$0xff]  ;;  %v1067_v26 = vld [vmem:[#allocation2 + $0x28] sm:$0xff]  ;;  %v1052_v27 = vld [vmem:[#allocation2 + $0x60] sm:$0xff]  ;;  %v1077_v31 = vpack.c.bf16 %v1051_v24, %v1050_v23 }
 0x17a   : > { %2049 = vmatprep.subr.bf16.mxu0 %v2247_v52  ;;  %2110 = vmatprep.subr.bf16.mxu1 %v2247_v52  ;;  %v1053_v28 = vld [vmem:[#allocation2 + $0xf0] sm:$0xff]  ;;  %v1068_v29 = vld [vmem:[#allocation2 + $0xa0] sm:$0xff]  ;;  %v1069_v30 = vld [vmem:[#allocation2 + $0xf8] sm:$0xff]  ;;  %v1085_v32 = vpack.c.bf16 %v1067_v26, %v1066_v25 }
 0x17b   : > { %v1078_v33 = vpack.c.bf16 %v1053_v28, %v1052_v27  ;;  %v1086_v34 = vpack.c.bf16 %v1069_v30, %v1068_v29  ;;  %v1054_v35 = vld [vmem:[#allocation2 + $0x8] sm:$0xff]  ;;  %v1055_v36 = vld [vmem:[#allocation2 + $0x78] sm:$0xff]  ;;  %v1070_v37 = vld [vmem:[#allocation2 + $0x20] sm:$0xff] }
 0x17c   : > { %v1071_v38 = vld [vmem:[#allocation2 + $0x98] sm:$0xff]  ;;  %v1079_v39 = vpack.c.bf16 %v1055_v36, %v1054_v35  ;;  %v1315_v41 = vld [vmem:[%s2475_s9 + $0x10] sm:$0xff]  ;;  %v1313_v45 = vld [vmem:[%s2475_s9] sm:$0xff] }
 0x17d   : > { %2050 = vmatpush3.bf16.msra.mxu0 %v2247_v52  ;;  %2118 = vmatpush3.bf16.msra.mxu1 %v2247_v52  ;;  %v1087_v40 = vpack.c.bf16 %v1071_v38, %v1070_v37  ;;  %v1331_v42 = vld [vmem:[%s2475_s9 + $0x90] sm:$0xff]  ;;  %v1329_v46 = vld [vmem:[%s2475_s9 + $0x80] sm:$0xff]  ;;  %v1316_v51 = vld [vmem:[%s2475_s9 + $0x18] sm:$0xff] }
 0x17e   : > { %2051 = vmatprep.subr.bf16.mxu0 %v2248_v59  ;;  %2111 = vmatprep.subr.bf16.mxu1 %v2248_v59  ;;  %v1332_v52 = vld [vmem:[%s2475_s9 + $0x98] sm:$0xff]  ;;  %v1314_v57 = vld [vmem:[%s2475_s9 + $0x8] sm:$0xff]  ;;  %v1319_v5 = vld [vmem:[%s2475_s9 + $0x30] sm:$0xff] }
 0x17f   : > { %v1330_v58 = vld [vmem:[%s2475_s9 + $0x88] sm:$0xff]  ;;  %v1335_v6 = vld [vmem:[%s2475_s9 + $0xb0] sm:$0xff]  ;;  %v1317_v15 = vld [vmem:[%s2475_s9 + $0x20] sm:$0xff] }
 0x180   : > { %v1333_v16 = vld [vmem:[%s2475_s9 + $0xa0] sm:$0xff]  ;;  %v1318_v29 = vld [vmem:[%s2475_s9 + $0x28] sm:$0xff] }
 0x181   : > { %2052 = vmatpush3.bf16.msra.mxu0 %v2248_v59  ;;  %2119 = vmatpush3.bf16.msra.mxu1 %v2248_v59  ;;  %v1334_v30 = vld [vmem:[%s2475_s9 + $0xa8] sm:$0xff] }
 0x182   : > { %2053 = vmatprep.subr.bf16.mxu0 %v2249_v60  ;;  %2112 = vmatprep.subr.bf16.mxu1 %v2249_v60 }
 0x185   : > { %2054 = vmatpush3.bf16.msra.mxu0 %v2249_v60  ;;  %2120 = vmatpush3.bf16.msra.mxu1 %v2249_v60 }
 0x186   : > { %2055 = vmatprep.subr.bf16.mxu0 %v2250_v61  ;;  %2113 = vmatprep.subr.bf16.mxu1 %v2250_v61 }
 0x189   : > { %2056 = vmatpush3.bf16.msra.mxu0 %v2250_v61  ;;  %2121 = vmatpush3.bf16.msra.mxu1 %v2250_v61 }
 0x18a   : > { %2057 = vmatprep.subr.bf16.mxu0 %v2251_v62  ;;  %2114 = vmatprep.subr.bf16.mxu1 %v2251_v62 }
 0x18d   : > { %2058 = vmatpush3.bf16.msra.mxu0 %v2251_v62  ;;  %2122 = vmatpush3.bf16.msra.mxu1 %v2251_v62 }
 0x190   : > { %2060 = vmatmul.mubr.bf16.vlgmr.msra.gmra.mxu0 %v1073_v7  ;;  %2076 = vmatmul.mubr.bf16.vlgmr.msra.gmra.mxu1 %v1081_v8 }
 0x191   : > { %2063 = vmatprep.mubr.bf16.mxu0 %v1074_v9  ;;  %2079 = vmatprep.mubr.bf16.mxu1 %v1082_v10 }
 0x198   : > { %2064 = vmatmul.mubr.bf16.gmra.mxu0 %v1075_v19  ;;  %2080 = vmatmul.mubr.bf16.gmra.mxu1 %v1083_v20 }
 0x199   : > { %2067 = vmatprep.mubr.bf16.mxu0 %v1076_v21  ;;  %2083 = vmatprep.mubr.bf16.mxu1 %v1084_v22  ;;  %v1320_v21 = vld [vmem:[%s2475_s9 + $0x38] sm:$0xff] }
 0x19a   : > { %v1336_v22 = vld [vmem:[%s2475_s9 + $0xb8] sm:$0xff] }
 0x1a0   : > { %2068 = vmatmul.mubr.bf16.gmra.mxu0 %v1077_v31  ;;  %2084 = vmatmul.mubr.bf16.gmra.mxu1 %v1085_v32 }
 0x1a1   : > { %2071 = vmatprep.mubr.bf16.mxu0 %v1078_v33  ;;  %2087 = vmatprep.mubr.bf16.mxu1 %v1086_v34 }
 0x1a8   : > { %2072 = vmatmul.mubr.bf16.gmra.mxu0 %v1079_v39  ;;  %2088 = vmatmul.mubr.bf16.gmra.mxu1 %v1087_v40 }
 0x250   : > { %v2061_v43 = vpop.f32.mrf.mxu0  ;;  %v2077_v44 = vpop.f32.mrf.mxu1 }
 0x251   : > { %v1347_v47 = vadd.f32 %v2061_v43, %v1315_v41  ;;  %v1363_v48 = vadd.f32 %v2077_v44, %v1331_v42  ;;  %v1323_v41 = vld [vmem:[%s2475_s9 + $0x50] sm:$0xff] }
 0x252   : > { %v1186_v49 = vpop.f32.mrf.mxu0  ;;  %v1250_v50 = vpop.f32.mrf.mxu1  ;;  %v1339_v42 = vld [vmem:[%s2475_s9 + $0xd0] sm:$0xff] }
 0x253   : > { %v1345_v53 = vadd.f32 %v1313_v45, %v1186_v49  ;;  %v1361_v54 = vadd.f32 %v1329_v46, %v1250_v50  ;;  %v1379_v61 = vmax.f32 %v1347_v47, 0.0  ;;  %v1395_v62 = vmax.f32 %v1363_v48, 0.0 }
 0x254   : > { %v2062_v55 = vpop.f32.mrf.mxu0  ;;  %v2078_v56 = vpop.f32.mrf.mxu1 }
 0x255   : > { %v1348_v59 = vadd.f32 %v2062_v55, %v1316_v51  ;;  %v1364_v60 = vadd.f32 %v2078_v56, %v1332_v52  ;;  %v1377_v7 = vmax.f32 %v1345_v53, 0.0  ;;  %v1393_v8 = vmax.f32 %v1361_v54, 0.0  ;;  %v1321_v51 = vld [vmem:[%s2475_s9 + $0x40] sm:$0xff] }
 0x256   : > { %v1189_v63 = vpop.f32.mrf.mxu0  ;;  %v1253_v0 = vpop.f32.mrf.mxu1  ;;  %v1337_v52 = vld [vmem:[%s2475_s9 + $0xc0] sm:$0xff] }
 0x257   : > { %v1380_v1 = vmax.f32 %v1348_v59, 0.0  ;;  %v1396_v2 = vmax.f32 %v1364_v60, 0.0  ;;  %v1346_v3 = vadd.f32 %v1314_v57, %v1189_v63  ;;  %v1362_v4 = vadd.f32 %v1330_v58, %v1253_v0  ;;  %v1324_v57 = vld [vmem:[%s2475_s9 + $0x58] sm:$0xff] }
 0x258   : > { %v2065_v9 = vpop.f32.mrf.mxu0  ;;  %v2081_v10 = vpop.f32.mrf.mxu1  ;;  %v1340_v58 = vld [vmem:[%s2475_s9 + $0xd8] sm:$0xff] }
 0x259   : > { %v1820_v11 = vpack.c.bf16 %v1380_v1, %v1379_v61  ;;  %v1860_v12 = vpack.c.bf16 %v1396_v2, %v1395_v62  ;;  %v1378_v13 = vmax.f32 %v1346_v3, 0.0  ;;  %v1394_v14 = vmax.f32 %v1362_v4, 0.0  ;;  %v1322_v1 = vld [vmem:[%s2475_s9 + $0x48] sm:$0xff] }
 0x25a   : > { %v1351_v17 = vadd.f32 %v2065_v9, %v1319_v5  ;;  %v1367_v18 = vadd.f32 %v2081_v10, %v1335_v6  ;;  %v1202_v19 = vpop.f32.mrf.mxu0  ;;  %v1266_v20 = vpop.f32.mrf.mxu1  ;;  %v1338_v2 = vld [vmem:[%s2475_s9 + $0xc8] sm:$0xff] }
 0x25b   : > { %1892 = vst [vmem:[%s2480_s18 + $0x8] sm:$0xff] %v1820_v11   ;;  %1900 = vst [vmem:[%s2480_s18 + $0x48] sm:$0xff] %v1860_v12   ;;  %v1815_v23 = vpack.c.bf16 %v1378_v13, %v1377_v7  ;;  %v1855_v24 = vpack.c.bf16 %v1394_v14, %v1393_v8  ;;  %v1349_v25 = vadd.f32 %v1317_v15, %v1202_v19  ;;  %v1327_v13 = vld [vmem:[%s2475_s9 + $0x70] sm:$0xff] }
 0x25c   : > { %v1365_v26 = vadd.f32 %v1333_v16, %v1266_v20  ;;  %v2066_v27 = vpop.f32.mrf.mxu0  ;;  %v2082_v28 = vpop.f32.mrf.mxu1  ;;  %v1383_v33 = vmax.f32 %v1351_v17, 0.0  ;;  %v1399_v34 = vmax.f32 %v1367_v18, 0.0  ;;  %v1343_v14 = vld [vmem:[%s2475_s9 + $0xf0] sm:$0xff] }
 0x25d   : > { %1816 = vst [vmem:[%s2480_s18] sm:$0xff] %v1815_v23   ;;  %1899 = vst [vmem:[%s2480_s18 + $0x40] sm:$0xff] %v1855_v24   ;;  %v1352_v31 = vadd.f32 %v2066_v27, %v1320_v21  ;;  %v1368_v32 = vadd.f32 %v2082_v28, %v1336_v22  ;;  %v1381_v43 = vmax.f32 %v1349_v25, 0.0  ;;  %v1325_v23 = vld [vmem:[%s2475_s9 + $0x60] sm:$0xff] }
 0x25e   : > { %v1205_v35 = vpop.f32.mrf.mxu0  ;;  %v1269_v36 = vpop.f32.mrf.mxu1  ;;  %v1397_v44 = vmax.f32 %v1365_v26, 0.0  ;;  %v1341_v24 = vld [vmem:[%s2475_s9 + $0xe0] sm:$0xff] }
 0x25f   : > { %v1384_v37 = vmax.f32 %v1352_v31, 0.0  ;;  %v1400_v38 = vmax.f32 %v1368_v32, 0.0  ;;  %v1350_v39 = vadd.f32 %v1318_v29, %v1205_v35  ;;  %v1366_v40 = vadd.f32 %v1334_v30, %v1269_v36  ;;  %v1328_v29 = vld [vmem:[%s2475_s9 + $0x78] sm:$0xff] }
 0x260   : > { %v2069_v45 = vpop.f32.mrf.mxu0  ;;  %v2085_v46 = vpop.f32.mrf.mxu1  ;;  %v1344_v30 = vld [vmem:[%s2475_s9 + $0xf8] sm:$0xff] }
 0x261   : > { %v1830_v47 = vpack.c.bf16 %v1384_v37, %v1383_v33  ;;  %v1870_v48 = vpack.c.bf16 %v1400_v38, %v1399_v34  ;;  %v1382_v49 = vmax.f32 %v1350_v39, 0.0  ;;  %v1398_v50 = vmax.f32 %v1366_v40, 0.0  ;;  %v1326_v37 = vld [vmem:[%s2475_s9 + $0x68] sm:$0xff] }
 0x262   : > { %v1355_v53 = vadd.f32 %v2069_v45, %v1323_v41  ;;  %v1371_v54 = vadd.f32 %v2085_v46, %v1339_v42  ;;  %v1218_v55 = vpop.f32.mrf.mxu0  ;;  %v1282_v56 = vpop.f32.mrf.mxu1  ;;  %v1342_v38 = vld [vmem:[%s2475_s9 + $0xe8] sm:$0xff] }
 0x263   : > { %1894 = vst [vmem:[%s2480_s18 + $0x18] sm:$0xff] %v1830_v47   ;;  %1902 = vst [vmem:[%s2480_s18 + $0x58] sm:$0xff] %v1870_v48   ;;  %v1825_v59 = vpack.c.bf16 %v1382_v49, %v1381_v43  ;;  %v1865_v60 = vpack.c.bf16 %v1398_v50, %v1397_v44  ;;  %v1353_v61 = vadd.f32 %v1321_v51, %v1218_v55 }
 0x264   : > { %v1369_v62 = vadd.f32 %v1337_v52, %v1282_v56  ;;  %v2070_v63 = vpop.f32.mrf.mxu0  ;;  %v2086_v0 = vpop.f32.mrf.mxu1  ;;  %v1387_v5 = vmax.f32 %v1355_v53, 0.0  ;;  %v1403_v6 = vmax.f32 %v1371_v54, 0.0 }
 0x265   : > { %1893 = vst [vmem:[%s2480_s18 + $0x10] sm:$0xff] %v1825_v59   ;;  %1901 = vst [vmem:[%s2480_s18 + $0x50] sm:$0xff] %v1865_v60   ;;  %v1356_v3 = vadd.f32 %v2070_v63, %v1324_v57  ;;  %v1372_v4 = vadd.f32 %v2086_v0, %v1340_v58  ;;  %v1385_v15 = vmax.f32 %v1353_v61, 0.0 }
 0x266   : > { %v1221_v7 = vpop.f32.mrf.mxu0  ;;  %v1285_v8 = vpop.f32.mrf.mxu1  ;;  %v1401_v16 = vmax.f32 %v1369_v62, 0.0 }
 0x267   : > { %v1388_v9 = vmax.f32 %v1356_v3, 0.0  ;;  %v1404_v10 = vmax.f32 %v1372_v4, 0.0  ;;  %v1354_v11 = vadd.f32 %v1322_v1, %v1221_v7  ;;  %v1370_v12 = vadd.f32 %v1338_v2, %v1285_v8 }
 0x268   : > { %v2073_v17 = vpop.f32.mrf.mxu0  ;;  %v2089_v18 = vpop.f32.mrf.mxu1 }
 0x269   : > { %v1840_v19 = vpack.c.bf16 %v1388_v9, %v1387_v5  ;;  %v1880_v20 = vpack.c.bf16 %v1404_v10, %v1403_v6  ;;  %v1386_v21 = vmax.f32 %v1354_v11, 0.0  ;;  %v1402_v22 = vmax.f32 %v1370_v12, 0.0 }
 0x26a   : > { %v1359_v25 = vadd.f32 %v2073_v17, %v1327_v13  ;;  %v1375_v26 = vadd.f32 %v2089_v18, %v1343_v14  ;;  %v1234_v27 = vpop.f32.mrf.mxu0  ;;  %v1298_v28 = vpop.f32.mrf.mxu1 }
 0x26b   : > { %1896 = vst [vmem:[%s2480_s18 + $0x28] sm:$0xff] %v1840_v19   ;;  %1904 = vst [vmem:[%s2480_s18 + $0x68] sm:$0xff] %v1880_v20   ;;  %v1835_v31 = vpack.c.bf16 %v1386_v21, %v1385_v15  ;;  %v1875_v32 = vpack.c.bf16 %v1402_v22, %v1401_v16  ;;  %v1357_v33 = vadd.f32 %v1325_v23, %v1234_v27 }
 0x26c   : > { %v1373_v34 = vadd.f32 %v1341_v24, %v1298_v28  ;;  %v2074_v35 = vpop.f32.mrf.mxu0  ;;  %v2090_v36 = vpop.f32.mrf.mxu1  ;;  %v1391_v41 = vmax.f32 %v1359_v25, 0.0  ;;  %v1407_v42 = vmax.f32 %v1375_v26, 0.0 }
 0x26d   : > { %1895 = vst [vmem:[%s2480_s18 + $0x20] sm:$0xff] %v1835_v31   ;;  %1903 = vst [vmem:[%s2480_s18 + $0x60] sm:$0xff] %v1875_v32   ;;  %v1360_v39 = vadd.f32 %v2074_v35, %v1328_v29  ;;  %v1376_v40 = vadd.f32 %v2090_v36, %v1344_v30  ;;  %v1389_v49 = vmax.f32 %v1357_v33, 0.0 }
 0x26e   : > { %v1237_v43 = vpop.f32.mrf.mxu0  ;;  %v1301_v44 = vpop.f32.mrf.mxu1  ;;  %v1405_v50 = vmax.f32 %v1373_v34, 0.0 }
 0x26f   : > { %v1392_v45 = vmax.f32 %v1360_v39, 0.0  ;;  %v1408_v46 = vmax.f32 %v1376_v40, 0.0  ;;  %v1358_v47 = vadd.f32 %v1326_v37, %v1237_v43  ;;  %v1374_v48 = vadd.f32 %v1342_v38, %v1301_v44 }
 0x271   : > { %v1850_v51 = vpack.c.bf16 %v1392_v45, %v1391_v41  ;;  %v1890_v52 = vpack.c.bf16 %v1408_v46, %v1407_v42  ;;  %v1390_v53 = vmax.f32 %v1358_v47, 0.0  ;;  %v1406_v54 = vmax.f32 %v1374_v48, 0.0 }
 0x273   : > { %1898 = vst [vmem:[%s2480_s18 + $0x38] sm:$0xff] %v1850_v51   ;;  %1906 = vst [vmem:[%s2480_s18 + $0x78] sm:$0xff] %v1890_v52   ;;  %v1845_v55 = vpack.c.bf16 %v1390_v53, %v1389_v49  ;;  %v1885_v56 = vpack.c.bf16 %v1406_v54, %v1405_v50 }
 0x275   : > { %1897 = vst [vmem:[%s2480_s18 + $0x30] sm:$0xff] %v1845_v55   ;;  %1905 = vst [vmem:[%s2480_s18 + $0x70] sm:$0xff] %v1885_v56  }
 0x276 PF: > { %s14_s21 = sadd.s32 1, %s2306_s21   ;;  %s2632_s15 = smov %s2286_s16 }
 0x277   : > { %p11_p0 = scmp.ge.s32.totalorder %s14_s21, 6   ;;  %s2633_s16 = smov %s2385_s28 }
 0x278   : > { %s2634_s17 = smov %s2298_s19  ;;  %s2635_s18 = smov %s2302_s20 }
 0x279   : > { %s2636_s19 = smov %s2639_s22  ;;  %s2637_s20 = smov %s2643_s23 }
 0x27a   :  { %13 = sbr.rel (!%p11_p0) target bundleno = 4 (0x4), region = 123 }

// kernel: mpn_encoder_pallas.5
= control target key start
LH: loop header
LB: loop body
LE: loop exit
PB: predicated region body
PF: predicated region fallthrough
CT: control target
= control target key end

     0   :  { %9 = vsyncpa [#allocation4], 0  ;;  %s2518_s0 = inlined_call_operand.hbm [shape: bf16[512,512], index: 0, kind: input, shape index: {}]   ;;  %s2519_s1 = inlined_call_operand.vmem [shape: bf16[512,128], index: 1, kind: input, shape index: {}]   ;;  %s2520_s2 = inlined_call_operand.vmem [shape: f32[512,128], index: 2, kind: input, shape index: {}]   ;;  %s2521_s3 = inlined_call_operand.vmem [shape: bf16[128,128], index: 3, kind: input, shape index: {}]   ;;  %s2522_s4 = inlined_call_operand.vmem [shape: bf16[512,128], index: 4, kind: output, shape index: {}]  }
   0x1   :  { %11 = vsyncpa [#allocation4 + $0x1], 0  ;;  %s2261_s15 = smov 0   ;;  %s2263_s16 = smov 0  }
   0x2   :  { %s2265_s17 = smov 0   ;;  %s2267_s18 = smov 0  }
   0x3   :  { %s2269_s19 = smov 0   ;;  %s2271_s20 = smov 0  }
   0x4   :  { %s2273_s21 = smov 0   ;;  %s2275_s22 = smov 0  }
   0x5 LB: > { %s1535_s23 = sadd.s32 4294967295, %s2229_s22   ;;  %s26_s24 = sadd.s32 1, %s2221_s20  ;;  %s2229_s22 = sphi %s2275_s22, %s17_s22   ;;  %s2225_s21 = sphi %s2273_s21, %s2535_s21   ;;  %s2221_s20 = sphi %s2271_s20, %s2534_s20   ;;  %s2217_s19 = sphi %s2269_s19, %s2533_s19   ;;  %s2213_s18 = sphi %s2267_s18, %s2532_s18   ;;  %s2209_s17 = sphi %s2265_s17, %s2531_s17   ;;  %s2205_s16 = sphi %s2263_s16, %s2530_s16   ;;  %s2201_s15 = sphi %s2261_s15, %s2529_s15  }
   0x6   : > { %p27_p0 = scmp.ge.s32.totalorder %s26_s24, 2  ;;  %s29_s25 = sadd.s32 1, %s2225_s21 }
   0x7   : > { %s38_s26 = sadd.s32 1, %s2209_s17  ;;  %p45_p1 = scmp.ne.s32.totalorder %s2209_s17, %s2205_s16 }
   0x8   : > { %s2537_s24 = smov (%p27_p0, %s26_s24), 0  ;;  %s2539_s25 = smov (!%p27_p0, %s29_s25), %s2225_s21 }
   0x9   : > { %2524 = sst [smem:[#allocation6_spill]] %s2537_s24  ;;  %s34_s27 = ssub.s32 %s2221_s20, %s2537_s24 }
   0xa   : > { %p46_p2 = scmp.eq.s32.totalorder %s2229_s22, 0  ;;  %p31_p3 = scmp.ge.s32.totalorder %s2539_s25, 2 }
   0xb   : > { %p51_p4 = scmp.ne.s32.totalorder %s2205_s16, %s2201_s15  ;;  %p52_p6 = scmp.eq.s32.totalorder %s1535_s23, 0 }
   0xc   : > { %p2312_p5 = por %p46_p2, %p45_p1  ;;  %s2541_s25 = smov (%p31_p3, %s2539_s25), 0 }
   0xd   : > { %p2318_p7 = por %p52_p6, %p51_p4  ;;  %s33_s30 = ssub.s32 %s2225_s21, %s2541_s25 }
   0xe   : > { %p1994_p8 = scmp.lt.s32.totalorder %s2229_s22, 4  ;;  %s35_s5 = sor.u32 %s34_s27, %s33_s30 }
   0xf   : > { %s177_s6 = sand.u32 1, %s2209_s17   ;;  %p36_p9 = scmp.eq.s32.totalorder %s35_s5, 0 }
  0x10   : > { %s1539_s7 = sshll.u32 %s177_s6, 8  ;;  %s1541_s8 = sshll.u32 %s2221_s20, 1 }
  0x11   : > { %s2328_s9 = scalar_select %p36_p9, %s2209_s17, %s38_s26  }
  0x12   : > { %s1644_s10 = sshll.u32 %s2225_s21, 7  ;;  %s181_s12 = scalar_lea.vmem [#allocation3], %s1539_s7 }
  0x13   : > { %s188_s11 = sadd.s32 %s1644_s10, %s1541_s8  ;;  %s191_s13 = sshll.u32 %s181_s12, 4  ;;  %s192_s13 = int_to_ptr.vmem [resolvable:$true] %s191_s13 }
  0x14   : > { %s1543_s14 = sshll.u32 %s188_s11, 6  ;;  %p2338_p10 = pnand %p1994_p8, %p2312_p5 }
  0x15   : > { %s190_s24 = scalar_lea.hbm %s2518_s0, %s1543_s14  ;;  %s178_s30 = scalar_lea.sflag [#allocation4], %s177_s6 }
  0x16   : > { %p2137_p11 = pneg %p2338_p10  ;;  %s2148_s26 = scalar_lea.vmem %s192_s13, 4096 }
  0x17   : > { %p2149_p12 = scmp.ne.s32.totalorder %s192_s13, %s2148_s26  ;;  %s2231_s5 = smov [#allocation3]  }
  0x18   : > { %s2153_s7 = sshll.u32 %s2231_s5, 4  ;;  %s2154_s7 = int_to_ptr.vmem [resolvable:$false] %s2153_s7 }
  0x19   : > { %p2151_p13 = pnand %p2149_p12, %p2137_p11  ;;  %s2155_s8 = scalar_lea.vmem %s2154_s7, 8192 }
  0x1a   : > { %p2156_p1 = scmp.lt.s32.totalorder %s192_s13, %s2154_s7  ;;  %p2157_p2 = scmp.lt.s32.totalorder %s2155_s8, %s2148_s26 }
  0x1b   : > { %p2152_p0 = pneg %p2151_p13 }
  0x1c   : > { %p2158_p3 = por %p2157_p2, %p2156_p1 }
  0x1e   : > { %p2159_p4 = pnand %p2158_p3, %p2152_p0 }
  0x20   : > { %2162 = shalt.err (!%p2159_p4)
}
  0x21   : > { %s2232_s28 = smov 256   ;;  %s2233_s6 = smov 128  }
  0x22   : > { %s2234_s10 = smov 8   ;;  %p1544_p5 = scmp.ge.s32.totalorder %s2229_s22, 1 }
  0x23   : > { %1993 = dma.hbm_to_vmem [thread:$0]  (!%p2338_p10), %s190_s24, 4096, %s192_s13, %s178_s30, %s2232_s28, %s2233_s6, %s2234_s10  }
  0x24   : > { %p217_p6 = scmp.lt.s32.totalorder %s2229_s22, 5 }
  0x26   : > { %p218_p8 = pnand %p1544_p5, %p217_p6 }
  0x27   : > { %s223_s11 = sand.u32 (!%p218_p8), 1, %s2205_s16  }
  0x28   : > { %221 = sbr.rel (%p218_p8) target bundleno = 630 (0x276), region = 36  ;;  %s1545_s12 = sshll.u32 (!%p218_p8), %s223_s11, 8 }
  0x29   : > { %s224_s14 = scalar_lea.sflag (!%p218_p8), [#allocation4], %s223_s11  ;;  %s2349_s15 = scalar_lea.vmem (!%p218_p8), [#allocation3], %s1545_s12 }
  0x2d   : > { %2196 = dma.done.wait (%p2318_p7), %s224_s14, 4096  }
  0x2e   : > { %2198 = vsyncadd (%p2318_p7), %s224_s14, 4294963200  ;;  %s1546_s23 = sshll.u32 %s2213_s18, 5  ;;  %s1548_s24 = sshll.u32 %s2217_s19, 5 }
  0x2f   : > { %p265_p9 = scmp.lt.s32.totalorder %s1546_s23, 63  ;;  %p271_p10 = scmp.lt.s32.totalorder %s1548_s24, 63 }
  0x30   : > { %p1552_p7 = scmp.ne.s32.totalorder %s2213_s18, 0 }
  0x31   : > { %s2543_s23 = smov (!%p265_p9, %s1546_s23), 63  ;;  %s2545_s24 = smov (!%p271_p10, %s1548_s24), 63 }
  0x32   : > { %s1547_s13 = sshll.u32 %s2543_s23, 2  ;;  %s1549_s5 = sshll.u32 %s2545_s24, 3 }
  0x33   : > { %s2360_s26 = scalar_lea.vmem %s2519_s1, %s1547_s13  ;;  %s2365_s29 = scalar_lea.vmem %s2520_s2, %s1549_s5 }
  0x34   : > { %s1551_s28 = sshll.u32 %s2545_s24, 2  ;;  %286 = sbr.rel (%p1552_p7) target bundleno = 74 (0x4a), region = 44 }
  0x35   : > { %s2370_s19 = scalar_lea.vmem %s2522_s4, %s1551_s28 }
  0x39   : > { %v2235_v0 = vmov 0.0  }
  0x3a   : > { %287 = vst [vmem:[#allocation2 + $0xb0] sm:$0xff] %v2235_v0  ;;  %288 = vst [vmem:[#allocation2] sm:$0xff] %v2235_v0 }
  0x3b   : > { %289 = vst [vmem:[#allocation2 + $0xd8] sm:$0xff] %v2235_v0  ;;  %290 = vst [vmem:[#allocation2 + $0x18] sm:$0xff] %v2235_v0 }
  0x3c   : > { %291 = vst [vmem:[#allocation2 + $0x50] sm:$0xff] %v2235_v0  ;;  %292 = vst [vmem:[#allocation2 + $0x68] sm:$0xff] %v2235_v0 }
  0x3d   : > { %293 = vst [vmem:[#allocation2 + $0x30] sm:$0xff] %v2235_v0  ;;  %294 = vst [vmem:[#allocation2 + $0x48] sm:$0xff] %v2235_v0 }
  0x3e   : > { %295 = vst [vmem:[#allocation2 + $0x80] sm:$0xff] %v2235_v0  ;;  %296 = vst [vmem:[#allocation2 + $0x88] sm:$0xff] %v2235_v0 }
  0x3f   : > { %297 = vst [vmem:[#allocation2 + $0xe8] sm:$0xff] %v2235_v0  ;;  %298 = vst [vmem:[#allocation2 + $0xb8] sm:$0xff] %v2235_v0 }
  0x40   : > { %299 = vst [vmem:[#allocation2 + $0x60] sm:$0xff] %v2235_v0  ;;  %300 = vst [vmem:[#allocation2 + $0xf0] sm:$0xff] %v2235_v0 }
  0x41   : > { %301 = vst [vmem:[#allocation2 + $0x8] sm:$0xff] %v2235_v0  ;;  %302 = vst [vmem:[#allocation2 + $0x78] sm:$0xff] %v2235_v0 }
  0x42   : > { %303 = vst [vmem:[#allocation2 + $0x38] sm:$0xff] %v2235_v0  ;;  %304 = vst [vmem:[#allocation2 + $0x58] sm:$0xff] %v2235_v0 }
  0x43   : > { %305 = vst [vmem:[#allocation2 + $0x40] sm:$0xff] %v2235_v0  ;;  %306 = vst [vmem:[#allocation2 + $0xc8] sm:$0xff] %v2235_v0 }
  0x44   : > { %307 = vst [vmem:[#allocation2 + $0xe0] sm:$0xff] %v2235_v0  ;;  %308 = vst [vmem:[#allocation2 + $0x90] sm:$0xff] %v2235_v0 }
  0x45   : > { %309 = vst [vmem:[#allocation2 + $0x70] sm:$0xff] %v2235_v0  ;;  %310 = vst [vmem:[#allocation2 + $0xc0] sm:$0xff] %v2235_v0 }
  0x46   : > { %311 = vst [vmem:[#allocation2 + $0xa8] sm:$0xff] %v2235_v0  ;;  %312 = vst [vmem:[#allocation2 + $0xd0] sm:$0xff] %v2235_v0 }
  0x47   : > { %313 = vst [vmem:[#allocation2 + $0x10] sm:$0xff] %v2235_v0  ;;  %314 = vst [vmem:[#allocation2 + $0x28] sm:$0xff] %v2235_v0 }
  0x48   : > { %315 = vst [vmem:[#allocation2 + $0xa0] sm:$0xff] %v2235_v0  ;;  %316 = vst [vmem:[#allocation2 + $0xf8] sm:$0xff] %v2235_v0 }
  0x49   : > { %317 = vst [vmem:[#allocation2 + $0x20] sm:$0xff] %v2235_v0  ;;  %318 = vst [vmem:[#allocation2 + $0x98] sm:$0xff] %v2235_v0 }
  0x4a PF: > { %v2063_v1 = vld [vmem:[%s2360_s26 + $0x78] sm:$0xff]   ;;  %v2065_v3 = vld [vmem:[%s2360_s26 + $0x70] sm:$0xff]   ;;  %v2067_v5 = vld [vmem:[%s2360_s26 + $0x68] sm:$0xff]   ;;  %p1601_p11 = scmp.ne.s32.totalorder %s2213_s18, 1 }
  0x4b   : > { %v2064_v2 = vld [vmem:[%s2360_s26 + $0x38] sm:$0xff]   ;;  %1772 = vmatprep.subr.bf16.mxu0 %v2063_v1  ;;  %1956 = vmatprep.subr.bf16.mxu1 %v2063_v1  ;;  %v2066_v4 = vld [vmem:[%s2360_s26 + $0x30] sm:$0xff]   ;;  %v2068_v6 = vld [vmem:[%s2360_s26 + $0x28] sm:$0xff]  }
  0x4c   : > { %1773 = vmatpush3.bf16.msra.mxu0 %v2064_v2  ;;  %1964 = vmatpush3.bf16.msra.mxu1 %v2064_v2  ;;  %v2069_v7 = vld [vmem:[%s2360_s26 + $0x60] sm:$0xff]   ;;  %v2071_v9 = vld [vmem:[%s2360_s26 + $0x58] sm:$0xff]   ;;  %v2073_v11 = vld [vmem:[%s2360_s26 + $0x50] sm:$0xff]  }
  0x4d   : > { %1774 = vmatprep.subr.bf16.mxu0 %v2065_v3  ;;  %1957 = vmatprep.subr.bf16.mxu1 %v2065_v3  ;;  %v2070_v8 = vld [vmem:[%s2360_s26 + $0x20] sm:$0xff]   ;;  %v2072_v10 = vld [vmem:[%s2360_s26 + $0x18] sm:$0xff]   ;;  %v2074_v14 = vld [vmem:[%s2360_s26 + $0x10] sm:$0xff]  }
  0x4e   : > { %v2081_v12 = vld [vmem:[%s2349_s15 + $0x4] ss:$8 sps:$4 sm:$0xff]   ;;  %v2079_v19 = vld [vmem:[%s2349_s15] ss:$8 sps:$4 sm:$0xff]   ;;  %v2085_v21 = vld [vmem:[%s2349_s15 + $0x14] ss:$8 sps:$4 sm:$0xff]  }
  0x4f   : > { %v2084_v13 = vld [vmem:[%s2349_s15 + $0x84] ss:$8 sps:$4 sm:$0xff]   ;;  %703 = vmatprep.mubr.bf16.mxu0 %v2081_v12  ;;  %v2082_v20 = vld [vmem:[%s2349_s15 + $0x80] ss:$8 sps:$4 sm:$0xff]   ;;  %v2087_v22 = vld [vmem:[%s2349_s15 + $0x94] ss:$8 sps:$4 sm:$0xff]  }
  0x50   : > { %1775 = vmatpush3.bf16.msra.mxu0 %v2066_v4  ;;  %1965 = vmatpush3.bf16.msra.mxu1 %v2066_v4  ;;  %v2075_v15 = vld [vmem:[%s2360_s26 + $0x48] sm:$0xff]   ;;  %v2077_v17 = vld [vmem:[%s2360_s26 + $0x40] sm:$0xff]   ;;  %v2089_v23 = vld [vmem:[%s2349_s15 + $0x10] ss:$8 sps:$4 sm:$0xff]  }
  0x51   : > { %1776 = vmatprep.subr.bf16.mxu0 %v2067_v5  ;;  %1958 = vmatprep.subr.bf16.mxu1 %v2067_v5  ;;  %v2076_v16 = vld [vmem:[%s2360_s26 + $0x8] sm:$0xff]   ;;  %v2078_v18 = vld [vmem:[%s2360_s26] sm:$0xff]   ;;  %v2090_v24 = vld [vmem:[%s2349_s15 + $0x90] ss:$8 sps:$4 sm:$0xff]  }
  0x52   : > { %767 = vmatprep.mubr.bf16.mxu1 %v2084_v13  ;;  %v2091_v25 = vld [vmem:[%s2349_s15 + $0x24] ss:$8 sps:$4 sm:$0xff]   ;;  %v2095_v27 = vld [vmem:[%s2349_s15 + $0x20] ss:$8 sps:$4 sm:$0xff]   ;;  %v2097_v29 = vld [vmem:[%s2349_s15 + $0x34] ss:$8 sps:$4 sm:$0xff]  }
  0x53   : > { %v2093_v26 = vld [vmem:[%s2349_s15 + $0xa4] ss:$8 sps:$4 sm:$0xff]   ;;  %v2096_v28 = vld [vmem:[%s2349_s15 + $0xa0] ss:$8 sps:$4 sm:$0xff]   ;;  %v2099_v30 = vld [vmem:[%s2349_s15 + $0xb4] ss:$8 sps:$4 sm:$0xff]  }
  0x54   : > { %1777 = vmatpush3.bf16.msra.mxu0 %v2068_v6  ;;  %1966 = vmatpush3.bf16.msra.mxu1 %v2068_v6  ;;  %v2101_v31 = vld [vmem:[%s2349_s15 + $0x30] ss:$8 sps:$4 sm:$0xff]   ;;  %v2103_v33 = vld [vmem:[%s2349_s15 + $0x44] ss:$8 sps:$4 sm:$0xff]   ;;  %v2107_v35 = vld [vmem:[%s2349_s15 + $0x40] ss:$8 sps:$4 sm:$0xff]  }
  0x55   : > { %1778 = vmatprep.subr.bf16.mxu0 %v2069_v7  ;;  %1959 = vmatprep.subr.bf16.mxu1 %v2069_v7  ;;  %v2102_v32 = vld [vmem:[%s2349_s15 + $0xb0] ss:$8 sps:$4 sm:$0xff]   ;;  %v2105_v34 = vld [vmem:[%s2349_s15 + $0xc4] ss:$8 sps:$4 sm:$0xff]   ;;  %v2108_v36 = vld [vmem:[%s2349_s15 + $0xc0] ss:$8 sps:$4 sm:$0xff]  }
  0x56   : > { %v2109_v37 = vld [vmem:[%s2349_s15 + $0x54] ss:$8 sps:$4 sm:$0xff]   ;;  %v2113_v39 = vld [vmem:[%s2349_s15 + $0x50] ss:$8 sps:$4 sm:$0xff]   ;;  %v2115_v41 = vld [vmem:[%s2349_s15 + $0x64] ss:$8 sps:$4 sm:$0xff]  }
  0x57   : > { %v2111_v38 = vld [vmem:[%s2349_s15 + $0xd4] ss:$8 sps:$4 sm:$0xff]   ;;  %v2114_v40 = vld [vmem:[%s2349_s15 + $0xd0] ss:$8 sps:$4 sm:$0xff]   ;;  %v2117_v42 = vld [vmem:[%s2349_s15 + $0xe4] ss:$8 sps:$4 sm:$0xff]  }
  0x58   : > { %1779 = vmatpush3.bf16.msra.mxu0 %v2070_v8  ;;  %1967 = vmatpush3.bf16.msra.mxu1 %v2070_v8  ;;  %v2119_v43 = vld [vmem:[%s2349_s15 + $0x60] ss:$8 sps:$4 sm:$0xff]   ;;  %v2121_v45 = vld [vmem:[%s2349_s15 + $0x74] ss:$8 sps:$4 sm:$0xff]   ;;  %v2125_v47 = vld [vmem:[%s2349_s15 + $0x70] ss:$8 sps:$4 sm:$0xff]  }
  0x59   : > { %1780 = vmatprep.subr.bf16.mxu0 %v2071_v9  ;;  %1960 = vmatprep.subr.bf16.mxu1 %v2071_v9  ;;  %v2120_v44 = vld [vmem:[%s2349_s15 + $0xe0] ss:$8 sps:$4 sm:$0xff]   ;;  %v2123_v46 = vld [vmem:[%s2349_s15 + $0xf4] ss:$8 sps:$4 sm:$0xff]   ;;  %v2126_v48 = vld [vmem:[%s2349_s15 + $0xf0] ss:$8 sps:$4 sm:$0xff]  }
  0x5a   : > { %v319_v51 = vld [vmem:[#allocation2 + $0xb0] sm:$0xff]  ;;  %v335_v53 = vld [vmem:[#allocation2 + $0x38] sm:$0xff]  ;;  %v320_v61 = vld [vmem:[#allocation2] sm:$0xff] }
  0x5b   : > { %v336_v63 = vld [vmem:[#allocation2 + $0x58] sm:$0xff]  ;;  %v337_v9 = vld [vmem:[#allocation2 + $0x40] sm:$0xff] }
  0x5c   : > { %1781 = vmatpush3.bf16.msra.mxu0 %v2072_v10  ;;  %1968 = vmatpush3.bf16.msra.mxu1 %v2072_v10  ;;  %v321_v7 = vld [vmem:[#allocation2 + $0xd8] sm:$0xff] }
  0x5d   : > { %1782 = vmatprep.subr.bf16.mxu0 %v2073_v11  ;;  %1961 = vmatprep.subr.bf16.mxu1 %v2073_v11 }
  0x60   : > { %1783 = vmatpush3.bf16.msra.mxu0 %v2074_v14  ;;  %1969 = vmatpush3.bf16.msra.mxu1 %v2074_v14 }
  0x61   : > { %1784 = vmatprep.subr.bf16.mxu0 %v2075_v15  ;;  %1962 = vmatprep.subr.bf16.mxu1 %v2075_v15 }
  0x64   : > { %1785 = vmatpush3.bf16.msra.mxu0 %v2076_v16  ;;  %1970 = vmatpush3.bf16.msra.mxu1 %v2076_v16 }
  0x65   : > { %1786 = vmatprep.subr.bf16.mxu0 %v2077_v17  ;;  %1963 = vmatprep.subr.bf16.mxu1 %v2077_v17  ;;  %v322_v17 = vld [vmem:[#allocation2 + $0x18] sm:$0xff] }
  0x68   : > { %1787 = vmatpush3.bf16.msra.mxu0 %v2078_v18  ;;  %1971 = vmatpush3.bf16.msra.mxu1 %v2078_v18 }
  0x6b   : > { %704 = vmatmul.mubr.bf16.vlgmr.msra.gmra.mxu0 %v2079_v19  ;;  %768 = vmatmul.mubr.bf16.vlgmr.msra.gmra.mxu1 %v2082_v20  ;;  %v338_v19 = vld [vmem:[#allocation2 + $0xc8] sm:$0xff] }
  0x6c   : > { %711 = vmatprep.mubr.bf16.mxu0 %v2085_v21  ;;  %775 = vmatprep.mubr.bf16.mxu1 %v2087_v22 }
  0x73   : > { %712 = vmatmul.mubr.bf16.gmra.mxu0 %v2089_v23  ;;  %776 = vmatmul.mubr.bf16.gmra.mxu1 %v2090_v24 }
  0x74   : > { %719 = vmatprep.mubr.bf16.mxu0 %v2091_v25  ;;  %783 = vmatprep.mubr.bf16.mxu1 %v2093_v26 }
  0x7b   : > { %720 = vmatmul.mubr.bf16.gmra.mxu0 %v2095_v27  ;;  %784 = vmatmul.mubr.bf16.gmra.mxu1 %v2096_v28  ;;  %v323_v27 = vld [vmem:[#allocation2 + $0x50] sm:$0xff] }
  0x7c   : > { %727 = vmatprep.mubr.bf16.mxu0 %v2097_v29  ;;  %791 = vmatprep.mubr.bf16.mxu1 %v2099_v30  ;;  %v339_v29 = vld [vmem:[#allocation2 + $0xe0] sm:$0xff] }
  0x83   : > { %728 = vmatmul.mubr.bf16.gmra.mxu0 %v2101_v31  ;;  %792 = vmatmul.mubr.bf16.gmra.mxu1 %v2102_v32 }
  0x84   : > { %735 = vmatprep.mubr.bf16.mxu0 %v2103_v33  ;;  %799 = vmatprep.mubr.bf16.mxu1 %v2105_v34 }
  0x8b   : > { %736 = vmatmul.mubr.bf16.gmra.mxu0 %v2107_v35  ;;  %800 = vmatmul.mubr.bf16.gmra.mxu1 %v2108_v36 }
  0x8c   : > { %743 = vmatprep.mubr.bf16.mxu0 %v2109_v37  ;;  %807 = vmatprep.mubr.bf16.mxu1 %v2111_v38  ;;  %v324_v37 = vld [vmem:[#allocation2 + $0x68] sm:$0xff] }
  0x93   : > { %744 = vmatmul.mubr.bf16.gmra.mxu0 %v2113_v39  ;;  %808 = vmatmul.mubr.bf16.gmra.mxu1 %v2114_v40  ;;  %v340_v39 = vld [vmem:[#allocation2 + $0x90] sm:$0xff] }
  0x94   : > { %751 = vmatprep.mubr.bf16.mxu0 %v2115_v41  ;;  %815 = vmatprep.mubr.bf16.mxu1 %v2117_v42 }
  0x9b   : > { %752 = vmatmul.mubr.bf16.gmra.mxu0 %v2119_v43  ;;  %816 = vmatmul.mubr.bf16.gmra.mxu1 %v2120_v44 }
  0x9c   : > { %759 = vmatprep.mubr.bf16.mxu0 %v2121_v45  ;;  %823 = vmatprep.mubr.bf16.mxu1 %v2123_v46 }
  0xa3   : > { %760 = vmatmul.mubr.bf16.gmra.mxu0 %v2125_v47  ;;  %824 = vmatmul.mubr.bf16.gmra.mxu1 %v2126_v48  ;;  %v325_v47 = vld [vmem:[#allocation2 + $0x30] sm:$0xff] }
 0x12b   : > { %v1788_v49 = vpop.f32.mrf.mxu0  ;;  %v1836_v50 = vpop.f32.mrf.mxu1 }
 0x12d   : > { %v1789_v52 = vpop.f32.mrf.mxu0  ;;  %v1837_v54 = vpop.f32.mrf.mxu1 }
 0x12e   : > { %v1790_v55 = vadd.f32 %v1789_v52, %v1788_v49  ;;  %v1838_v56 = vadd.f32 %v1837_v54, %v1836_v50  ;;  %v341_v49 = vld [vmem:[#allocation2 + $0x70] sm:$0xff] }
 0x12f   : > { %v1791_v57 = vpop.f32.mrf.mxu0  ;;  %v1839_v58 = vpop.f32.mrf.mxu1 }
 0x130   : > { %v832_v59 = vadd.f32 %v1790_v55, %v319_v51  ;;  %v848_v60 = vadd.f32 %v1838_v56, %v335_v53 }
 0x131   : > { %v1792_v62 = vpop.f32.mrf.mxu0  ;;  %v1840_v0 = vpop.f32.mrf.mxu1 }
 0x132   : > { %864 = vst [vmem:[#allocation2 + $0xb0] sm:$0xff] %v832_v59  ;;  %880 = vst [vmem:[#allocation2 + $0x38] sm:$0xff] %v848_v60  ;;  %v1793_v1 = vadd.f32 %v1792_v62, %v1791_v57  ;;  %v1841_v2 = vadd.f32 %v1840_v0, %v1839_v58  ;;  %v326_v57 = vld [vmem:[#allocation2 + $0x48] sm:$0xff]  ;;  %v342_v59 = vld [vmem:[#allocation2 + $0xc0] sm:$0xff] }
 0x133   : > { %v1794_v3 = vpop.f32.mrf.mxu0  ;;  %v1842_v4 = vpop.f32.mrf.mxu1 }
 0x134   : > { %v833_v5 = vadd.f32 %v1793_v1, %v320_v61  ;;  %v849_v6 = vadd.f32 %v1841_v2, %v336_v63 }
 0x135   : > { %v1795_v8 = vpop.f32.mrf.mxu0  ;;  %v1843_v10 = vpop.f32.mrf.mxu1 }
 0x136   : > { %865 = vst [vmem:[#allocation2] sm:$0xff] %v833_v5  ;;  %881 = vst [vmem:[#allocation2 + $0x58] sm:$0xff] %v849_v6  ;;  %v1796_v11 = vadd.f32 %v1795_v8, %v1794_v3  ;;  %v1844_v12 = vadd.f32 %v1843_v10, %v1842_v4  ;;  %v327_v3 = vld [vmem:[#allocation2 + $0x80] sm:$0xff]  ;;  %v343_v5 = vld [vmem:[#allocation2 + $0xa8] sm:$0xff] }
 0x137   : > { %v1797_v13 = vpop.f32.mrf.mxu0  ;;  %v1845_v14 = vpop.f32.mrf.mxu1 }
 0x138   : > { %v834_v15 = vadd.f32 %v1796_v11, %v321_v7  ;;  %v850_v16 = vadd.f32 %v1844_v12, %v337_v9 }
 0x139   : > { %v1798_v18 = vpop.f32.mrf.mxu0  ;;  %v1846_v20 = vpop.f32.mrf.mxu1 }
 0x13a   : > { %866 = vst [vmem:[#allocation2 + $0xd8] sm:$0xff] %v834_v15  ;;  %882 = vst [vmem:[#allocation2 + $0x40] sm:$0xff] %v850_v16  ;;  %v1799_v21 = vadd.f32 %v1798_v18, %v1797_v13  ;;  %v1847_v22 = vadd.f32 %v1846_v20, %v1845_v14  ;;  %v328_v13 = vld [vmem:[#allocation2 + $0x88] sm:$0xff]  ;;  %v344_v15 = vld [vmem:[#allocation2 + $0xd0] sm:$0xff] }
 0x13b   : > { %v1800_v23 = vpop.f32.mrf.mxu0  ;;  %v1848_v24 = vpop.f32.mrf.mxu1 }
 0x13c   : > { %v835_v25 = vadd.f32 %v1799_v21, %v322_v17  ;;  %v851_v26 = vadd.f32 %v1847_v22, %v338_v19 }
 0x13d   : > { %v1801_v28 = vpop.f32.mrf.mxu0  ;;  %v1849_v30 = vpop.f32.mrf.mxu1 }
 0x13e   : > { %867 = vst [vmem:[#allocation2 + $0x18] sm:$0xff] %v835_v25  ;;  %883 = vst [vmem:[#allocation2 + $0xc8] sm:$0xff] %v851_v26  ;;  %v1802_v31 = vadd.f32 %v1801_v28, %v1800_v23  ;;  %v1850_v32 = vadd.f32 %v1849_v30, %v1848_v24  ;;  %v329_v23 = vld [vmem:[#allocation2 + $0xe8] sm:$0xff]  ;;  %v345_v25 = vld [vmem:[#allocation2 + $0x10] sm:$0xff] }
 0x13f   : > { %v1803_v33 = vpop.f32.mrf.mxu0  ;;  %v1851_v34 = vpop.f32.mrf.mxu1 }
 0x140   : > { %v836_v35 = vadd.f32 %v1802_v31, %v323_v27  ;;  %v852_v36 = vadd.f32 %v1850_v32, %v339_v29 }
 0x141   : > { %v1804_v38 = vpop.f32.mrf.mxu0  ;;  %v1852_v40 = vpop.f32.mrf.mxu1 }
 0x142   : > { %868 = vst [vmem:[#allocation2 + $0x50] sm:$0xff] %v836_v35  ;;  %884 = vst [vmem:[#allocation2 + $0xe0] sm:$0xff] %v852_v36  ;;  %v1805_v41 = vadd.f32 %v1804_v38, %v1803_v33  ;;  %v1853_v42 = vadd.f32 %v1852_v40, %v1851_v34  ;;  %v330_v33 = vld [vmem:[#allocation2 + $0xb8] sm:$0xff]  ;;  %v346_v35 = vld [vmem:[#allocation2 + $0x28] sm:$0xff] }
 0x143   : > { %v1806_v43 = vpop.f32.mrf.mxu0  ;;  %v1854_v44 = vpop.f32.mrf.mxu1 }
 0x144   : > { %v837_v45 = vadd.f32 %v1805_v41, %v324_v37  ;;  %v853_v46 = vadd.f32 %v1853_v42, %v340_v39 }
 0x145   : > { %v1807_v48 = vpop.f32.mrf.mxu0  ;;  %v1855_v50 = vpop.f32.mrf.mxu1 }
 0x146   : > { %869 = vst [vmem:[#allocation2 + $0x68] sm:$0xff] %v837_v45  ;;  %885 = vst [vmem:[#allocation2 + $0x90] sm:$0xff] %v853_v46  ;;  %v1808_v51 = vadd.f32 %v1807_v48, %v1806_v43  ;;  %v1856_v52 = vadd.f32 %v1855_v50, %v1854_v44  ;;  %v331_v43 = vld [vmem:[#allocation2 + $0x60] sm:$0xff] }
 0x147   : > { %v1809_v53 = vpop.f32.mrf.mxu0  ;;  %v1857_v54 = vpop.f32.mrf.mxu1  ;;  %v347_v45 = vld [vmem:[#allocation2 + $0xa0] sm:$0xff] }
 0x148   : > { %v838_v55 = vadd.f32 %v1808_v51, %v325_v47  ;;  %v854_v56 = vadd.f32 %v1856_v52, %v341_v49 }
 0x149   : > { %v1810_v58 = vpop.f32.mrf.mxu0  ;;  %v1858_v60 = vpop.f32.mrf.mxu1 }
 0x14a   : > { %870 = vst [vmem:[#allocation2 + $0x30] sm:$0xff] %v838_v55  ;;  %886 = vst [vmem:[#allocation2 + $0x70] sm:$0xff] %v854_v56  ;;  %v1811_v61 = vadd.f32 %v1810_v58, %v1809_v53  ;;  %v1859_v62 = vadd.f32 %v1858_v60, %v1857_v54  ;;  %v332_v53 = vld [vmem:[#allocation2 + $0xf0] sm:$0xff]  ;;  %v348_v55 = vld [vmem:[#allocation2 + $0xf8] sm:$0xff] }
 0x14b   : > { %v1812_v63 = vpop.f32.mrf.mxu0  ;;  %v1860_v0 = vpop.f32.mrf.mxu1 }
 0x14c   : > { %v839_v1 = vadd.f32 %v1811_v61, %v326_v57  ;;  %v855_v2 = vadd.f32 %v1859_v62, %v342_v59 }
 0x14d   : > { %v1813_v4 = vpop.f32.mrf.mxu0  ;;  %v1861_v6 = vpop.f32.mrf.mxu1 }
 0x14e   : > { %871 = vst [vmem:[#allocation2 + $0x48] sm:$0xff] %v839_v1  ;;  %887 = vst [vmem:[#allocation2 + $0xc0] sm:$0xff] %v855_v2  ;;  %v1814_v7 = vadd.f32 %v1813_v4, %v1812_v63  ;;  %v1862_v8 = vadd.f32 %v1861_v6, %v1860_v0  ;;  %v333_v63 = vld [vmem:[#allocation2 + $0x8] sm:$0xff]  ;;  %v349_v1 = vld [vmem:[#allocation2 + $0x20] sm:$0xff] }
 0x14f   : > { %v1815_v9 = vpop.f32.mrf.mxu0  ;;  %v1863_v10 = vpop.f32.mrf.mxu1 }
 0x150   : > { %v840_v11 = vadd.f32 %v1814_v7, %v327_v3  ;;  %v856_v12 = vadd.f32 %v1862_v8, %v343_v5 }
 0x151   : > { %v1816_v14 = vpop.f32.mrf.mxu0  ;;  %v1864_v16 = vpop.f32.mrf.mxu1 }
 0x152   : > { %872 = vst [vmem:[#allocation2 + $0x80] sm:$0xff] %v840_v11  ;;  %888 = vst [vmem:[#allocation2 + $0xa8] sm:$0xff] %v856_v12  ;;  %v1817_v17 = vadd.f32 %v1816_v14, %v1815_v9  ;;  %v1865_v18 = vadd.f32 %v1864_v16, %v1863_v10  ;;  %v334_v9 = vld [vmem:[#allocation2 + $0x78] sm:$0xff] }
 0x153   : > { %v1818_v19 = vpop.f32.mrf.mxu0  ;;  %v1866_v20 = vpop.f32.mrf.mxu1  ;;  %v350_v11 = vld [vmem:[#allocation2 + $0x98] sm:$0xff] }
 0x154   : > { %v841_v21 = vadd.f32 %v1817_v17, %v328_v13  ;;  %v857_v22 = vadd.f32 %v1865_v18, %v344_v15 }
 0x155   : > { %v1819_v24 = vpop.f32.mrf.mxu0  ;;  %v1867_v26 = vpop.f32.mrf.mxu1 }
 0x156   : > { %873 = vst [vmem:[#allocation2 + $0x88] sm:$0xff] %v841_v21  ;;  %889 = vst [vmem:[#allocation2 + $0xd0] sm:$0xff] %v857_v22  ;;  %v1820_v27 = vadd.f32 %v1819_v24, %v1818_v19  ;;  %v1868_v28 = vadd.f32 %v1867_v26, %v1866_v20 }
 0x157   : > { %v1821_v29 = vpop.f32.mrf.mxu0  ;;  %v1869_v30 = vpop.f32.mrf.mxu1 }
 0x158   : > { %v842_v31 = vadd.f32 %v1820_v27, %v329_v23  ;;  %v858_v32 = vadd.f32 %v1868_v28, %v345_v25 }
 0x159   : > { %v1822_v34 = vpop.f32.mrf.mxu0  ;;  %v1870_v36 = vpop.f32.mrf.mxu1 }
 0x15a   : > { %874 = vst [vmem:[#allocation2 + $0xe8] sm:$0xff] %v842_v31  ;;  %890 = vst [vmem:[#allocation2 + $0x10] sm:$0xff] %v858_v32  ;;  %v1823_v37 = vadd.f32 %v1822_v34, %v1821_v29  ;;  %v1871_v38 = vadd.f32 %v1870_v36, %v1869_v30 }
 0x15b   : > { %v1824_v39 = vpop.f32.mrf.mxu0  ;;  %v1872_v40 = vpop.f32.mrf.mxu1 }
 0x15c   : > { %v843_v41 = vadd.f32 %v1823_v37, %v330_v33  ;;  %v859_v42 = vadd.f32 %v1871_v38, %v346_v35 }
 0x15d   : > { %v1825_v44 = vpop.f32.mrf.mxu0  ;;  %v1873_v46 = vpop.f32.mrf.mxu1 }
 0x15e   : > { %875 = vst [vmem:[#allocation2 + $0xb8] sm:$0xff] %v843_v41  ;;  %891 = vst [vmem:[#allocation2 + $0x28] sm:$0xff] %v859_v42  ;;  %v1826_v47 = vadd.f32 %v1825_v44, %v1824_v39  ;;  %v1874_v48 = vadd.f32 %v1873_v46, %v1872_v40 }
 0x15f   : > { %v1827_v49 = vpop.f32.mrf.mxu0  ;;  %v1875_v50 = vpop.f32.mrf.mxu1 }
 0x160   : > { %v844_v51 = vadd.f32 %v1826_v47, %v331_v43  ;;  %v860_v52 = vadd.f32 %v1874_v48, %v347_v45 }
 0x161   : > { %v1828_v54 = vpop.f32.mrf.mxu0  ;;  %v1876_v56 = vpop.f32.mrf.mxu1 }
 0x162   : > { %876 = vst [vmem:[#allocation2 + $0x60] sm:$0xff] %v844_v51  ;;  %892 = vst [vmem:[#allocation2 + $0xa0] sm:$0xff] %v860_v52  ;;  %v1829_v57 = vadd.f32 %v1828_v54, %v1827_v49  ;;  %v1877_v58 = vadd.f32 %v1876_v56, %v1875_v50 }
 0x163   : > { %v1830_v59 = vpop.f32.mrf.mxu0  ;;  %v1878_v60 = vpop.f32.mrf.mxu1 }
 0x164   : > { %v845_v61 = vadd.f32 %v1829_v57, %v332_v53  ;;  %v861_v62 = vadd.f32 %v1877_v58, %v348_v55 }
 0x165   : > { %v1831_v0 = vpop.f32.mrf.mxu0  ;;  %v1879_v2 = vpop.f32.mrf.mxu1 }
 0x166   : > { %877 = vst [vmem:[#allocation2 + $0xf0] sm:$0xff] %v845_v61  ;;  %893 = vst [vmem:[#allocation2 + $0xf8] sm:$0xff] %v861_v62  ;;  %v1832_v3 = vadd.f32 %v1831_v0, %v1830_v59  ;;  %v1880_v4 = vadd.f32 %v1879_v2, %v1878_v60 }
 0x167   : > { %v1833_v5 = vpop.f32.mrf.mxu0  ;;  %v1881_v6 = vpop.f32.mrf.mxu1 }
 0x168   : > { %v846_v7 = vadd.f32 %v1832_v3, %v333_v63  ;;  %v862_v8 = vadd.f32 %v1880_v4, %v349_v1 }
 0x169   : > { %v1834_v10 = vpop.f32.mrf.mxu0  ;;  %v1882_v12 = vpop.f32.mrf.mxu1 }
 0x16a   : > { %878 = vst [vmem:[#allocation2 + $0x8] sm:$0xff] %v846_v7  ;;  %894 = vst [vmem:[#allocation2 + $0x20] sm:$0xff] %v862_v8  ;;  %v1835_v13 = vadd.f32 %v1834_v10, %v1833_v5  ;;  %v1883_v14 = vadd.f32 %v1882_v12, %v1881_v6  ;;  %899 = sbr.rel (%p1601_p11) target bundleno = 630 (0x276), region = 48 }
 0x16c   : > { %v847_v15 = vadd.f32 %v1835_v13, %v334_v9  ;;  %v863_v16 = vadd.f32 %v1883_v14, %v350_v11 }
 0x16e   : > { %879 = vst [vmem:[#allocation2 + $0x78] sm:$0xff] %v847_v15  ;;  %895 = vst [vmem:[#allocation2 + $0x98] sm:$0xff] %v863_v16 }
 0x16f   : > { %v2127_v17 = vld [vmem:[%s2521_s3 + $0x38] sm:$0xff]   ;;  %v2128_v18 = vld [vmem:[%s2521_s3 + $0x30] sm:$0xff]   ;;  %v2129_v19 = vld [vmem:[%s2521_s3 + $0x28] sm:$0xff]  }
 0x170   : > { %1908 = vmatprep.subr.bf16.mxu0 %v2127_v17  ;;  %1972 = vmatprep.subr.bf16.mxu1 %v2127_v17  ;;  %v2130_v20 = vld [vmem:[%s2521_s3 + $0x20] sm:$0xff]   ;;  %v900_v21 = vld [vmem:[#allocation2 + $0xb0] sm:$0xff]  ;;  %v916_v23 = vld [vmem:[#allocation2 + $0x38] sm:$0xff] }
 0x171   : > { %1909 = vmatpush3.bf16.msra.mxu0 %v2127_v17  ;;  %1980 = vmatpush3.bf16.msra.mxu1 %v2127_v17  ;;  %v901_v22 = vld [vmem:[#allocation2] sm:$0xff]  ;;  %v917_v25 = vld [vmem:[#allocation2 + $0x58] sm:$0xff]  ;;  %v2132_v28 = vld [vmem:[%s2521_s3 + $0x10] sm:$0xff]  }
 0x172   : > { %1910 = vmatprep.subr.bf16.mxu0 %v2128_v18  ;;  %1973 = vmatprep.subr.bf16.mxu1 %v2128_v18  ;;  %v932_v24 = vpack.c.bf16 %v901_v22, %v900_v21  ;;  %v940_v26 = vpack.c.bf16 %v917_v25, %v916_v23  ;;  %v2131_v27 = vld [vmem:[%s2521_s3 + $0x18] sm:$0xff]   ;;  %v2133_v29 = vld [vmem:[%s2521_s3 + $0x8] sm:$0xff]   ;;  %v2134_v30 = vld [vmem:[%s2521_s3] sm:$0xff]  }
 0x173   : > { %v902_v31 = vld [vmem:[#allocation2 + $0xd8] sm:$0xff]  ;;  %v918_v33 = vld [vmem:[#allocation2 + $0x40] sm:$0xff]  ;;  %v919_v34 = vld [vmem:[#allocation2 + $0xc8] sm:$0xff] }
 0x174   : > { %1924 = vmatprep.mubr.bf16.mxu0 %v932_v24  ;;  %1940 = vmatprep.mubr.bf16.mxu1 %v940_v26  ;;  %v903_v32 = vld [vmem:[#allocation2 + $0x18] sm:$0xff]  ;;  %v904_v35 = vld [vmem:[#allocation2 + $0x50] sm:$0xff]  ;;  %v905_v36 = vld [vmem:[#allocation2 + $0x68] sm:$0xff]  ;;  %v941_v40 = vpack.c.bf16 %v919_v34, %v918_v33 }
 0x175   : > { %1911 = vmatpush3.bf16.msra.mxu0 %v2128_v18  ;;  %1981 = vmatpush3.bf16.msra.mxu1 %v2128_v18  ;;  %v920_v37 = vld [vmem:[#allocation2 + $0xe0] sm:$0xff]  ;;  %v921_v38 = vld [vmem:[#allocation2 + $0x90] sm:$0xff]  ;;  %v933_v39 = vpack.c.bf16 %v903_v32, %v902_v31  ;;  %v934_v41 = vpack.c.bf16 %v905_v36, %v904_v35  ;;  %v907_v44 = vld [vmem:[#allocation2 + $0x48] sm:$0xff] }
 0x176   : > { %1912 = vmatprep.subr.bf16.mxu0 %v2129_v19  ;;  %1974 = vmatprep.subr.bf16.mxu1 %v2129_v19  ;;  %v942_v42 = vpack.c.bf16 %v921_v38, %v920_v37  ;;  %v906_v43 = vld [vmem:[#allocation2 + $0x30] sm:$0xff]  ;;  %v923_v46 = vld [vmem:[#allocation2 + $0xc0] sm:$0xff]  ;;  %v909_v48 = vld [vmem:[#allocation2 + $0x88] sm:$0xff] }
 0x177   : > { %v922_v45 = vld [vmem:[#allocation2 + $0x70] sm:$0xff]  ;;  %v908_v47 = vld [vmem:[#allocation2 + $0x80] sm:$0xff]  ;;  %v924_v49 = vld [vmem:[#allocation2 + $0xa8] sm:$0xff]  ;;  %v935_v51 = vpack.c.bf16 %v907_v44, %v906_v43 }
 0x178   : > { %v925_v50 = vld [vmem:[#allocation2 + $0xd0] sm:$0xff]  ;;  %v943_v52 = vpack.c.bf16 %v923_v46, %v922_v45  ;;  %v936_v53 = vpack.c.bf16 %v909_v48, %v908_v47  ;;  %v910_v55 = vld [vmem:[#allocation2 + $0xe8] sm:$0xff]  ;;  %v911_v56 = vld [vmem:[#allocation2 + $0xb8] sm:$0xff] }
 0x179   : > { %1913 = vmatpush3.bf16.msra.mxu0 %v2129_v19  ;;  %1982 = vmatpush3.bf16.msra.mxu1 %v2129_v19  ;;  %v944_v54 = vpack.c.bf16 %v925_v50, %v924_v49  ;;  %v926_v57 = vld [vmem:[#allocation2 + $0x10] sm:$0xff]  ;;  %v927_v58 = vld [vmem:[#allocation2 + $0x28] sm:$0xff]  ;;  %v912_v59 = vld [vmem:[#allocation2 + $0x60] sm:$0xff]  ;;  %v937_v63 = vpack.c.bf16 %v911_v56, %v910_v55 }
 0x17a   : > { %1914 = vmatprep.subr.bf16.mxu0 %v2130_v20  ;;  %1975 = vmatprep.subr.bf16.mxu1 %v2130_v20  ;;  %v913_v60 = vld [vmem:[#allocation2 + $0xf0] sm:$0xff]  ;;  %v928_v61 = vld [vmem:[#allocation2 + $0xa0] sm:$0xff]  ;;  %v929_v62 = vld [vmem:[#allocation2 + $0xf8] sm:$0xff]  ;;  %v945_v0 = vpack.c.bf16 %v927_v58, %v926_v57 }
 0x17b   : > { %v938_v1 = vpack.c.bf16 %v913_v60, %v912_v59  ;;  %v946_v2 = vpack.c.bf16 %v929_v62, %v928_v61  ;;  %v914_v3 = vld [vmem:[#allocation2 + $0x8] sm:$0xff]  ;;  %v915_v4 = vld [vmem:[#allocation2 + $0x78] sm:$0xff]  ;;  %v930_v5 = vld [vmem:[#allocation2 + $0x20] sm:$0xff] }
 0x17c   : > { %v931_v6 = vld [vmem:[#allocation2 + $0x98] sm:$0xff]  ;;  %v939_v7 = vpack.c.bf16 %v915_v4, %v914_v3  ;;  %v1175_v9 = vld [vmem:[%s2365_s29 + $0x10] sm:$0xff]  ;;  %v1173_v13 = vld [vmem:[%s2365_s29] sm:$0xff] }
 0x17d   : > { %1915 = vmatpush3.bf16.msra.mxu0 %v2130_v20  ;;  %1983 = vmatpush3.bf16.msra.mxu1 %v2130_v20  ;;  %v947_v8 = vpack.c.bf16 %v931_v6, %v930_v5  ;;  %v1191_v10 = vld [vmem:[%s2365_s29 + $0x90] sm:$0xff]  ;;  %v1189_v14 = vld [vmem:[%s2365_s29 + $0x80] sm:$0xff]  ;;  %v1176_v19 = vld [vmem:[%s2365_s29 + $0x18] sm:$0xff] }
 0x17e   : > { %1916 = vmatprep.subr.bf16.mxu0 %v2131_v27  ;;  %1976 = vmatprep.subr.bf16.mxu1 %v2131_v27  ;;  %v1192_v20 = vld [vmem:[%s2365_s29 + $0x98] sm:$0xff]  ;;  %v1174_v25 = vld [vmem:[%s2365_s29 + $0x8] sm:$0xff]  ;;  %v1179_v37 = vld [vmem:[%s2365_s29 + $0x30] sm:$0xff] }
 0x17f   : > { %v1190_v26 = vld [vmem:[%s2365_s29 + $0x88] sm:$0xff]  ;;  %v1195_v38 = vld [vmem:[%s2365_s29 + $0xb0] sm:$0xff]  ;;  %v1177_v47 = vld [vmem:[%s2365_s29 + $0x20] sm:$0xff] }
 0x180   : > { %v1193_v48 = vld [vmem:[%s2365_s29 + $0xa0] sm:$0xff]  ;;  %v1178_v61 = vld [vmem:[%s2365_s29 + $0x28] sm:$0xff] }
 0x181   : > { %1917 = vmatpush3.bf16.msra.mxu0 %v2131_v27  ;;  %1984 = vmatpush3.bf16.msra.mxu1 %v2131_v27  ;;  %v1194_v62 = vld [vmem:[%s2365_s29 + $0xa8] sm:$0xff] }
 0x182   : > { %1918 = vmatprep.subr.bf16.mxu0 %v2132_v28  ;;  %1977 = vmatprep.subr.bf16.mxu1 %v2132_v28 }
 0x185   : > { %1919 = vmatpush3.bf16.msra.mxu0 %v2132_v28  ;;  %1985 = vmatpush3.bf16.msra.mxu1 %v2132_v28 }
 0x186   : > { %1920 = vmatprep.subr.bf16.mxu0 %v2133_v29  ;;  %1978 = vmatprep.subr.bf16.mxu1 %v2133_v29 }
 0x189   : > { %1921 = vmatpush3.bf16.msra.mxu0 %v2133_v29  ;;  %1986 = vmatpush3.bf16.msra.mxu1 %v2133_v29 }
 0x18a   : > { %1922 = vmatprep.subr.bf16.mxu0 %v2134_v30  ;;  %1979 = vmatprep.subr.bf16.mxu1 %v2134_v30 }
 0x18d   : > { %1923 = vmatpush3.bf16.msra.mxu0 %v2134_v30  ;;  %1987 = vmatpush3.bf16.msra.mxu1 %v2134_v30 }
 0x190   : > { %1925 = vmatmul.mubr.bf16.vlgmr.msra.gmra.mxu0 %v933_v39  ;;  %1941 = vmatmul.mubr.bf16.vlgmr.msra.gmra.mxu1 %v941_v40 }
 0x191   : > { %1928 = vmatprep.mubr.bf16.mxu0 %v934_v41  ;;  %1944 = vmatprep.mubr.bf16.mxu1 %v942_v42 }
 0x198   : > { %1929 = vmatmul.mubr.bf16.gmra.mxu0 %v935_v51  ;;  %1945 = vmatmul.mubr.bf16.gmra.mxu1 %v943_v52 }
 0x199   : > { %1932 = vmatprep.mubr.bf16.mxu0 %v936_v53  ;;  %1948 = vmatprep.mubr.bf16.mxu1 %v944_v54  ;;  %v1180_v53 = vld [vmem:[%s2365_s29 + $0x38] sm:$0xff] }
 0x19a   : > { %v1196_v54 = vld [vmem:[%s2365_s29 + $0xb8] sm:$0xff] }
 0x1a0   : > { %1933 = vmatmul.mubr.bf16.gmra.mxu0 %v937_v63  ;;  %1949 = vmatmul.mubr.bf16.gmra.mxu1 %v945_v0 }
 0x1a1   : > { %1936 = vmatprep.mubr.bf16.mxu0 %v938_v1  ;;  %1952 = vmatprep.mubr.bf16.mxu1 %v946_v2 }
 0x1a8   : > { %1937 = vmatmul.mubr.bf16.gmra.mxu0 %v939_v7  ;;  %1953 = vmatmul.mubr.bf16.gmra.mxu1 %v947_v8 }
 0x250   : > { %v1926_v11 = vpop.f32.mrf.mxu0  ;;  %v1942_v12 = vpop.f32.mrf.mxu1 }
 0x251   : > { %v1207_v15 = vadd.f32 %v1926_v11, %v1175_v9  ;;  %v1223_v16 = vadd.f32 %v1942_v12, %v1191_v10  ;;  %v1183_v9 = vld [vmem:[%s2365_s29 + $0x50] sm:$0xff] }
 0x252   : > { %v1046_v17 = vpop.f32.mrf.mxu0  ;;  %v1110_v18 = vpop.f32.mrf.mxu1  ;;  %v1199_v10 = vld [vmem:[%s2365_s29 + $0xd0] sm:$0xff] }
 0x253   : > { %v1205_v21 = vadd.f32 %v1173_v13, %v1046_v17  ;;  %v1221_v22 = vadd.f32 %v1189_v14, %v1110_v18  ;;  %v1239_v29 = vmax.f32 %v1207_v15, 0.0  ;;  %v1255_v30 = vmax.f32 %v1223_v16, 0.0 }
 0x254   : > { %v1927_v23 = vpop.f32.mrf.mxu0  ;;  %v1943_v24 = vpop.f32.mrf.mxu1 }
 0x255   : > { %v1208_v27 = vadd.f32 %v1927_v23, %v1176_v19  ;;  %v1224_v28 = vadd.f32 %v1943_v24, %v1192_v20  ;;  %v1237_v39 = vmax.f32 %v1205_v21, 0.0  ;;  %v1253_v40 = vmax.f32 %v1221_v22, 0.0  ;;  %v1181_v19 = vld [vmem:[%s2365_s29 + $0x40] sm:$0xff] }
 0x256   : > { %v1049_v31 = vpop.f32.mrf.mxu0  ;;  %v1113_v32 = vpop.f32.mrf.mxu1  ;;  %v1197_v20 = vld [vmem:[%s2365_s29 + $0xc0] sm:$0xff] }
 0x257   : > { %v1240_v33 = vmax.f32 %v1208_v27, 0.0  ;;  %v1256_v34 = vmax.f32 %v1224_v28, 0.0  ;;  %v1206_v35 = vadd.f32 %v1174_v25, %v1049_v31  ;;  %v1222_v36 = vadd.f32 %v1190_v26, %v1113_v32  ;;  %v1184_v25 = vld [vmem:[%s2365_s29 + $0x58] sm:$0xff] }
 0x258   : > { %v1930_v41 = vpop.f32.mrf.mxu0  ;;  %v1946_v42 = vpop.f32.mrf.mxu1  ;;  %v1200_v26 = vld [vmem:[%s2365_s29 + $0xd8] sm:$0xff] }
 0x259   : > { %v1685_v43 = vpack.c.bf16 %v1240_v33, %v1239_v29  ;;  %v1725_v44 = vpack.c.bf16 %v1256_v34, %v1255_v30  ;;  %v1238_v45 = vmax.f32 %v1206_v35, 0.0  ;;  %v1254_v46 = vmax.f32 %v1222_v36, 0.0  ;;  %v1182_v33 = vld [vmem:[%s2365_s29 + $0x48] sm:$0xff] }
 0x25a   : > { %v1211_v49 = vadd.f32 %v1930_v41, %v1179_v37  ;;  %v1227_v50 = vadd.f32 %v1946_v42, %v1195_v38  ;;  %v1062_v51 = vpop.f32.mrf.mxu0  ;;  %v1126_v52 = vpop.f32.mrf.mxu1  ;;  %v1198_v34 = vld [vmem:[%s2365_s29 + $0xc8] sm:$0xff] }
 0x25b   : > { %1757 = vst [vmem:[%s2370_s19 + $0x8] sm:$0xff] %v1685_v43   ;;  %1765 = vst [vmem:[%s2370_s19 + $0x48] sm:$0xff] %v1725_v44   ;;  %v1680_v55 = vpack.c.bf16 %v1238_v45, %v1237_v39  ;;  %v1720_v56 = vpack.c.bf16 %v1254_v46, %v1253_v40  ;;  %v1209_v57 = vadd.f32 %v1177_v47, %v1062_v51  ;;  %v1187_v45 = vld [vmem:[%s2365_s29 + $0x70] sm:$0xff] }
 0x25c   : > { %v1225_v58 = vadd.f32 %v1193_v48, %v1126_v52  ;;  %v1931_v59 = vpop.f32.mrf.mxu0  ;;  %v1947_v60 = vpop.f32.mrf.mxu1  ;;  %v1243_v1 = vmax.f32 %v1211_v49, 0.0  ;;  %v1259_v2 = vmax.f32 %v1227_v50, 0.0  ;;  %v1203_v46 = vld [vmem:[%s2365_s29 + $0xf0] sm:$0xff] }
 0x25d   : > { %1681 = vst [vmem:[%s2370_s19] sm:$0xff] %v1680_v55   ;;  %1764 = vst [vmem:[%s2370_s19 + $0x40] sm:$0xff] %v1720_v56   ;;  %v1212_v63 = vadd.f32 %v1931_v59, %v1180_v53  ;;  %v1228_v0 = vadd.f32 %v1947_v60, %v1196_v54  ;;  %v1241_v11 = vmax.f32 %v1209_v57, 0.0  ;;  %v1185_v55 = vld [vmem:[%s2365_s29 + $0x60] sm:$0xff] }
 0x25e   : > { %v1065_v3 = vpop.f32.mrf.mxu0  ;;  %v1129_v4 = vpop.f32.mrf.mxu1  ;;  %v1257_v12 = vmax.f32 %v1225_v58, 0.0  ;;  %v1201_v56 = vld [vmem:[%s2365_s29 + $0xe0] sm:$0xff] }
 0x25f   : > { %v1244_v5 = vmax.f32 %v1212_v63, 0.0  ;;  %v1260_v6 = vmax.f32 %v1228_v0, 0.0  ;;  %v1210_v7 = vadd.f32 %v1178_v61, %v1065_v3  ;;  %v1226_v8 = vadd.f32 %v1194_v62, %v1129_v4  ;;  %v1188_v61 = vld [vmem:[%s2365_s29 + $0x78] sm:$0xff] }
 0x260   : > { %v1934_v13 = vpop.f32.mrf.mxu0  ;;  %v1950_v14 = vpop.f32.mrf.mxu1  ;;  %v1204_v62 = vld [vmem:[%s2365_s29 + $0xf8] sm:$0xff] }
 0x261   : > { %v1695_v15 = vpack.c.bf16 %v1244_v5, %v1243_v1  ;;  %v1735_v16 = vpack.c.bf16 %v1260_v6, %v1259_v2  ;;  %v1242_v17 = vmax.f32 %v1210_v7, 0.0  ;;  %v1258_v18 = vmax.f32 %v1226_v8, 0.0  ;;  %v1186_v5 = vld [vmem:[%s2365_s29 + $0x68] sm:$0xff] }
 0x262   : > { %v1215_v21 = vadd.f32 %v1934_v13, %v1183_v9  ;;  %v1231_v22 = vadd.f32 %v1950_v14, %v1199_v10  ;;  %v1078_v23 = vpop.f32.mrf.mxu0  ;;  %v1142_v24 = vpop.f32.mrf.mxu1  ;;  %v1202_v6 = vld [vmem:[%s2365_s29 + $0xe8] sm:$0xff] }
 0x263   : > { %1759 = vst [vmem:[%s2370_s19 + $0x18] sm:$0xff] %v1695_v15   ;;  %1767 = vst [vmem:[%s2370_s19 + $0x58] sm:$0xff] %v1735_v16   ;;  %v1690_v27 = vpack.c.bf16 %v1242_v17, %v1241_v11  ;;  %v1730_v28 = vpack.c.bf16 %v1258_v18, %v1257_v12  ;;  %v1213_v29 = vadd.f32 %v1181_v19, %v1078_v23 }
 0x264   : > { %v1229_v30 = vadd.f32 %v1197_v20, %v1142_v24  ;;  %v1935_v31 = vpop.f32.mrf.mxu0  ;;  %v1951_v32 = vpop.f32.mrf.mxu1  ;;  %v1247_v37 = vmax.f32 %v1215_v21, 0.0  ;;  %v1263_v38 = vmax.f32 %v1231_v22, 0.0 }
 0x265   : > { %1758 = vst [vmem:[%s2370_s19 + $0x10] sm:$0xff] %v1690_v27   ;;  %1766 = vst [vmem:[%s2370_s19 + $0x50] sm:$0xff] %v1730_v28   ;;  %v1216_v35 = vadd.f32 %v1935_v31, %v1184_v25  ;;  %v1232_v36 = vadd.f32 %v1951_v32, %v1200_v26  ;;  %v1245_v47 = vmax.f32 %v1213_v29, 0.0 }
 0x266   : > { %v1081_v39 = vpop.f32.mrf.mxu0  ;;  %v1145_v40 = vpop.f32.mrf.mxu1  ;;  %v1261_v48 = vmax.f32 %v1229_v30, 0.0 }
 0x267   : > { %v1248_v41 = vmax.f32 %v1216_v35, 0.0  ;;  %v1264_v42 = vmax.f32 %v1232_v36, 0.0  ;;  %v1214_v43 = vadd.f32 %v1182_v33, %v1081_v39  ;;  %v1230_v44 = vadd.f32 %v1198_v34, %v1145_v40 }
 0x268   : > { %v1938_v49 = vpop.f32.mrf.mxu0  ;;  %v1954_v50 = vpop.f32.mrf.mxu1 }
 0x269   : > { %v1705_v51 = vpack.c.bf16 %v1248_v41, %v1247_v37  ;;  %v1745_v52 = vpack.c.bf16 %v1264_v42, %v1263_v38  ;;  %v1246_v53 = vmax.f32 %v1214_v43, 0.0  ;;  %v1262_v54 = vmax.f32 %v1230_v44, 0.0 }
 0x26a   : > { %v1219_v57 = vadd.f32 %v1938_v49, %v1187_v45  ;;  %v1235_v58 = vadd.f32 %v1954_v50, %v1203_v46  ;;  %v1094_v59 = vpop.f32.mrf.mxu0  ;;  %v1158_v60 = vpop.f32.mrf.mxu1 }
 0x26b   : > { %1761 = vst [vmem:[%s2370_s19 + $0x28] sm:$0xff] %v1705_v51   ;;  %1769 = vst [vmem:[%s2370_s19 + $0x68] sm:$0xff] %v1745_v52   ;;  %v1700_v63 = vpack.c.bf16 %v1246_v53, %v1245_v47  ;;  %v1740_v0 = vpack.c.bf16 %v1262_v54, %v1261_v48  ;;  %v1217_v1 = vadd.f32 %v1185_v55, %v1094_v59 }
 0x26c   : > { %v1233_v2 = vadd.f32 %v1201_v56, %v1158_v60  ;;  %v1939_v3 = vpop.f32.mrf.mxu0  ;;  %v1955_v4 = vpop.f32.mrf.mxu1  ;;  %v1251_v9 = vmax.f32 %v1219_v57, 0.0  ;;  %v1267_v10 = vmax.f32 %v1235_v58, 0.0 }
 0x26d   : > { %1760 = vst [vmem:[%s2370_s19 + $0x20] sm:$0xff] %v1700_v63   ;;  %1768 = vst [vmem:[%s2370_s19 + $0x60] sm:$0xff] %v1740_v0   ;;  %v1220_v7 = vadd.f32 %v1939_v3, %v1188_v61  ;;  %v1236_v8 = vadd.f32 %v1955_v4, %v1204_v62  ;;  %v1249_v17 = vmax.f32 %v1217_v1, 0.0 }
 0x26e   : > { %v1097_v11 = vpop.f32.mrf.mxu0  ;;  %v1161_v12 = vpop.f32.mrf.mxu1  ;;  %v1265_v18 = vmax.f32 %v1233_v2, 0.0 }
 0x26f   : > { %v1252_v13 = vmax.f32 %v1220_v7, 0.0  ;;  %v1268_v14 = vmax.f32 %v1236_v8, 0.0  ;;  %v1218_v15 = vadd.f32 %v1186_v5, %v1097_v11  ;;  %v1234_v16 = vadd.f32 %v1202_v6, %v1161_v12 }
 0x271   : > { %v1715_v19 = vpack.c.bf16 %v1252_v13, %v1251_v9  ;;  %v1755_v20 = vpack.c.bf16 %v1268_v14, %v1267_v10  ;;  %v1250_v21 = vmax.f32 %v1218_v15, 0.0  ;;  %v1266_v22 = vmax.f32 %v1234_v16, 0.0 }
 0x273   : > { %1763 = vst [vmem:[%s2370_s19 + $0x38] sm:$0xff] %v1715_v19   ;;  %1771 = vst [vmem:[%s2370_s19 + $0x78] sm:$0xff] %v1755_v20   ;;  %v1710_v23 = vpack.c.bf16 %v1250_v21, %v1249_v17  ;;  %v1750_v24 = vpack.c.bf16 %v1266_v22, %v1265_v18 }
 0x275   : > { %1762 = vst [vmem:[%s2370_s19 + $0x30] sm:$0xff] %v1710_v23   ;;  %1770 = vst [vmem:[%s2370_s19 + $0x70] sm:$0xff] %v1750_v24  }
 0x276 PF: > { %s17_s22 = sadd.s32 1, %s2229_s22   ;;  %s2528_s29 = sld [smem:[#allocation6_spill]] }
 0x277   : > { %p14_p12 = scmp.ge.s32.totalorder %s17_s22, 6   ;;  %s2529_s15 = smov %s2205_s16 }
 0x278   : > { %s2530_s16 = smov %s2209_s17  ;;  %s2531_s17 = smov %s2328_s9 }
 0x279   : > { %s2532_s18 = smov %s2221_s20  ;;  %s2533_s19 = smov %s2225_s21 }
 0x27a   : > { %s2535_s21 = smov %s2541_s25  ;;  %16 = sbr.rel (!%p14_p12) target bundleno = 5 (0x5), region = 90 }
 0x27c   : > { %s2534_s20 = smov %s2528_s29 }
 0x27f   :  { %1451 = vsyncpa [#allocation4], 1 }
 0x280   :  { %1453 = vsyncpa [#allocation4 + $0x1], 1 }

// kernel: mpn_encoder_pallas.7
= control target key start
LH: loop header
LB: loop body
LE: loop exit
PB: predicated region body
PF: predicated region fallthrough
CT: control target
= control target key end

     0   :  { %s3246_s0 = inlined_call_operand.vmem [shape: bf16[512,512], index: 0, kind: input, shape index: {}]   ;;  %s3247_s1 = inlined_call_operand.vmem [shape: bf16[512,128], index: 1, kind: input, shape index: {}]   ;;  %s3248_s2 = inlined_call_operand.vmem [shape: bf16[512,128], index: 2, kind: input, shape index: {}]   ;;  %s3249_s3 = inlined_call_operand.vmem [shape: bf16[256,128], index: 3, kind: input, shape index: {}]   ;;  %s3250_s4 = inlined_call_operand.vmem [shape: f32[1,128], index: 4, kind: input, shape index: {}]   ;;  %s3251_s5 = inlined_call_operand.vmem [shape: bf16[96,512], index: 5, kind: input, shape index: {}]   ;;  %s3252_s6 = inlined_call_operand.vmem [shape: f32[96,128], index: 6, kind: output, shape index: {}]  }
   0x1   :  { %3253 = sst [smem:[#allocation5_spill]] %s3246_s0 }
   0x2   :  { %3254 = sst [smem:[#allocation6_spill]] %s3247_s1 }
   0x3   :  { %s2717_s21 = smov 0   ;;  %s2719_s22 = smov 0  }
   0x4   :  { %s2721_s23 = smov 0   ;;  %s2723_s24 = smov 0  }
   0x5   :  { %s2725_s25 = smov 0   ;;  %s2727_s26 = smov 0  }
   0x6   :  { %s2729_s27 = smov 0   ;;  %s2731_s28 = smov 0  }
   0x7   :  { %s2733_s29 = smov 0  }
   0x8 LB: > { %s25_s30 = sadd.s32 1, %s2670_s27  ;;  %s28_s7 = sadd.s32 1, %s2674_s28  ;;  %s2678_s29 = sphi %s2733_s29, %s16_s29   ;;  %s2674_s28 = sphi %s2731_s28, %s3266_s28   ;;  %s2670_s27 = sphi %s2729_s27, %s3265_s27   ;;  %s2666_s26 = sphi %s2727_s26, %s3264_s26   ;;  %s2662_s25 = sphi %s2725_s25, %s3263_s25   ;;  %s2658_s24 = sphi %s2723_s24, %s3262_s24   ;;  %s2654_s23 = sphi %s2721_s23, %s3261_s23   ;;  %s2650_s22 = sphi %s2719_s22, %s3260_s22   ;;  %s2646_s21 = sphi %s2717_s21, %s3259_s21  }
   0x9   : > { %p26_p0 = scmp.ge.s32.totalorder %s25_s30, 2  ;;  %p44_p1 = scmp.ne.s32.totalorder %s2658_s24, %s2654_s23 }
   0xa   : > { %p45_p2 = scmp.eq.s32.totalorder %s2678_s29, 0  ;;  %p164_p5 = scmp.ne.s32.totalorder %s2650_s22, %s2646_s21 }
   0xb   : > { %s3268_s30 = smov (%p26_p0, %s25_s30), 0  ;;  %s3270_s7 = smov (!%p26_p0, %s28_s7), %s2674_s28 }
   0xc   : > { %p2770_p3 = por %p45_p2, %p44_p1  ;;  %p30_p4 = scmp.ge.s32.totalorder %s3270_s7, 2 }
   0xd   : > { %s33_s9 = ssub.s32 %s2670_s27, %s3268_s30  ;;  %s37_s10 = sadd.s32 1, %s2658_s24 }
   0xe   : > { %s3272_s7 = smov (%p30_p4, %s3270_s7), 0  ;;  %p2781_p6 = por %p164_p5, %p45_p2 }
   0xf   : > { %s32_s12 = ssub.s32 %s2674_s28, %s3272_s7  ;;  %s157_s13 = sadd.s32 1, %s2650_s22 }
  0x10   : > { %s34_s14 = sor.u32 %s33_s9, %s32_s12  ;;  %p155_p7 = scmp.eq.s32.totalorder %s32_s12, 0 }
  0x11   : > { %p35_p8 = scmp.eq.s32.totalorder %s34_s14, 0  ;;  %p1997_p9 = scmp.ge.s32.totalorder %s2678_s29, 4 }
  0x12   : > { %s2789_s15 = scalar_select %p155_p7, %s2650_s22, %s157_s13  }
  0x13   : > { %s2792_s16 = scalar_select %p35_p8, %s2658_s24, %s37_s10  }
  0x14   : > { %217 = sbr.rel (%p1997_p9) target bundleno = 61 (0x3d), region = 24 }
  0x19   : > { %220 = sbr.rel (!%p2770_p3) target bundleno = 51 (0x33), region = 28  ;;  %s222_s17 = sand.u32 (%p2770_p3), 1, %s2658_s24  }
  0x1a   : > { %s2000_s18 = sshll.u32 (%p2770_p3), %s2670_s27, 1  ;;  %s1998_s19 = sshll.u32 (%p2770_p3), %s222_s17, 8 }
  0x1b   : > { %s2108_s20 = sshll.u32 (%p2770_p3), %s2674_s28, 7  ;;  %s3257_s0 = sld [smem:[#allocation5_spill]] (%p2770_p3) }
  0x1c   : > { %s228_s9 = sadd.s32 (%p2770_p3), %s2108_s20, %s2000_s18  ;;  %s2808_s8 = scalar_lea.vmem (%p2770_p3), [#allocation3], %s1998_s19 }
  0x1d   : > { %s2002_s12 = sshll.u32 (%p2770_p3), %s228_s9, 2 }
  0x21   : > { %s2803_s10 = scalar_lea.vmem %s3257_s0, %s2002_s12 }
  0x22   : > { %v321_v0 = vld [vmem:[%s2803_s10] sm:$0xff]  ;;  %v323_v1 = vld [vmem:[%s2803_s10 + $0x10] sm:$0xff] }
  0x23   : > { %v325_v2 = vld [vmem:[%s2803_s10 + $0x20] sm:$0xff]  ;;  %322 = vst [vmem:[%s2808_s8] sm:$0xff] %v321_v0  ;;  %324 = vst [vmem:[%s2808_s8 + $0x8] sm:$0xff] %v323_v1  ;;  %v327_v3 = vld [vmem:[%s2803_s10 + $0x30] sm:$0xff] }
  0x24   : > { %326 = vst [vmem:[%s2808_s8 + $0x10] sm:$0xff] %v325_v2  ;;  %v329_v4 = vld [vmem:[%s2803_s10 + $0x40] sm:$0xff]  ;;  %v331_v5 = vld [vmem:[%s2803_s10 + $0x50] sm:$0xff]  ;;  %328 = vst [vmem:[%s2808_s8 + $0x18] sm:$0xff] %v327_v3 }
  0x25   : > { %330 = vst [vmem:[%s2808_s8 + $0x20] sm:$0xff] %v329_v4  ;;  %332 = vst [vmem:[%s2808_s8 + $0x28] sm:$0xff] %v331_v5  ;;  %v333_v6 = vld [vmem:[%s2803_s10 + $0x60] sm:$0xff]  ;;  %v335_v7 = vld [vmem:[%s2803_s10 + $0x70] sm:$0xff] }
  0x26   : > { %v337_v8 = vld [vmem:[%s2803_s10 + $0x80] sm:$0xff]  ;;  %334 = vst [vmem:[%s2808_s8 + $0x30] sm:$0xff] %v333_v6  ;;  %336 = vst [vmem:[%s2808_s8 + $0x38] sm:$0xff] %v335_v7  ;;  %v339_v9 = vld [vmem:[%s2803_s10 + $0x90] sm:$0xff] }
  0x27   : > { %338 = vst [vmem:[%s2808_s8 + $0x40] sm:$0xff] %v337_v8  ;;  %v341_v10 = vld [vmem:[%s2803_s10 + $0xa0] sm:$0xff]  ;;  %v343_v11 = vld [vmem:[%s2803_s10 + $0xb0] sm:$0xff]  ;;  %340 = vst [vmem:[%s2808_s8 + $0x48] sm:$0xff] %v339_v9 }
  0x28   : > { %342 = vst [vmem:[%s2808_s8 + $0x50] sm:$0xff] %v341_v10  ;;  %344 = vst [vmem:[%s2808_s8 + $0x58] sm:$0xff] %v343_v11  ;;  %v345_v12 = vld [vmem:[%s2803_s10 + $0xc0] sm:$0xff]  ;;  %v347_v13 = vld [vmem:[%s2803_s10 + $0xd0] sm:$0xff] }
  0x29   : > { %v349_v14 = vld [vmem:[%s2803_s10 + $0xe0] sm:$0xff]  ;;  %346 = vst [vmem:[%s2808_s8 + $0x60] sm:$0xff] %v345_v12  ;;  %348 = vst [vmem:[%s2808_s8 + $0x68] sm:$0xff] %v347_v13  ;;  %v351_v15 = vld [vmem:[%s2803_s10 + $0xf0] sm:$0xff] }
  0x2a   : > { %350 = vst [vmem:[%s2808_s8 + $0x70] sm:$0xff] %v349_v14  ;;  %v353_v16 = vld [vmem:[%s2803_s10 + $0x100] sm:$0xff]  ;;  %v355_v17 = vld [vmem:[%s2803_s10 + $0x110] sm:$0xff]  ;;  %352 = vst [vmem:[%s2808_s8 + $0x78] sm:$0xff] %v351_v15 }
  0x2b   : > { %354 = vst [vmem:[%s2808_s8 + $0x80] sm:$0xff] %v353_v16  ;;  %356 = vst [vmem:[%s2808_s8 + $0x88] sm:$0xff] %v355_v17  ;;  %v357_v18 = vld [vmem:[%s2803_s10 + $0x120] sm:$0xff]  ;;  %v359_v19 = vld [vmem:[%s2803_s10 + $0x130] sm:$0xff] }
  0x2c   : > { %v361_v20 = vld [vmem:[%s2803_s10 + $0x140] sm:$0xff]  ;;  %358 = vst [vmem:[%s2808_s8 + $0x90] sm:$0xff] %v357_v18  ;;  %360 = vst [vmem:[%s2808_s8 + $0x98] sm:$0xff] %v359_v19  ;;  %v363_v21 = vld [vmem:[%s2803_s10 + $0x150] sm:$0xff] }
  0x2d   : > { %362 = vst [vmem:[%s2808_s8 + $0xa0] sm:$0xff] %v361_v20  ;;  %v365_v22 = vld [vmem:[%s2803_s10 + $0x160] sm:$0xff]  ;;  %v367_v23 = vld [vmem:[%s2803_s10 + $0x170] sm:$0xff]  ;;  %364 = vst [vmem:[%s2808_s8 + $0xa8] sm:$0xff] %v363_v21 }
  0x2e   : > { %366 = vst [vmem:[%s2808_s8 + $0xb0] sm:$0xff] %v365_v22  ;;  %368 = vst [vmem:[%s2808_s8 + $0xb8] sm:$0xff] %v367_v23  ;;  %v369_v24 = vld [vmem:[%s2803_s10 + $0x180] sm:$0xff]  ;;  %v371_v25 = vld [vmem:[%s2803_s10 + $0x190] sm:$0xff] }
  0x2f   : > { %v373_v26 = vld [vmem:[%s2803_s10 + $0x1a0] sm:$0xff]  ;;  %370 = vst [vmem:[%s2808_s8 + $0xc0] sm:$0xff] %v369_v24  ;;  %372 = vst [vmem:[%s2808_s8 + $0xc8] sm:$0xff] %v371_v25  ;;  %v375_v27 = vld [vmem:[%s2803_s10 + $0x1b0] sm:$0xff] }
  0x30   : > { %374 = vst [vmem:[%s2808_s8 + $0xd0] sm:$0xff] %v373_v26  ;;  %v377_v28 = vld [vmem:[%s2803_s10 + $0x1c0] sm:$0xff]  ;;  %v379_v29 = vld [vmem:[%s2803_s10 + $0x1d0] sm:$0xff]  ;;  %376 = vst [vmem:[%s2808_s8 + $0xd8] sm:$0xff] %v375_v27 }
  0x31   : > { %378 = vst [vmem:[%s2808_s8 + $0xe0] sm:$0xff] %v377_v28  ;;  %380 = vst [vmem:[%s2808_s8 + $0xe8] sm:$0xff] %v379_v29  ;;  %v381_v30 = vld [vmem:[%s2803_s10 + $0x1e0] sm:$0xff]  ;;  %v383_v31 = vld [vmem:[%s2803_s10 + $0x1f0] sm:$0xff] }
  0x32   : > { %382 = vst [vmem:[%s2808_s8 + $0xf0] sm:$0xff] %v381_v30  ;;  %384 = vst [vmem:[%s2808_s8 + $0xf8] sm:$0xff] %v383_v31 }
  0x33 PF: > { %408 = sbr.rel (!%p2781_p6) target bundleno = 61 (0x3d), region = 74  ;;  %s410_s17 = sand.u32 (%p2781_p6), 1, %s2650_s22  }
  0x34   : > { %s2109_s18 = sshll.u32 (%p2781_p6), %s2674_s28, 3  ;;  %s2418_s19 = smul.u32 (%p2781_p6), 96, %s410_s17 }
  0x35   : > { %s415_s12 = scalar_lea.vmem (%p2781_p6), %s3251_s5, %s2109_s18 }
  0x36   : > { %v466_v32 = vld [vmem:[%s415_s12] sm:$0xff] (%p2781_p6)  ;;  %v468_v33 = vld [vmem:[%s415_s12 + $0x10] sm:$0xff] (%p2781_p6)  ;;  %s412_s14 = scalar_lea.vmem (%p2781_p6), [#allocation4], %s2418_s19 }
  0x37   : > { %v470_v34 = vld [vmem:[%s415_s12 + $0x20] sm:$0xff] (%p2781_p6)  ;;  %v472_v35 = vld [vmem:[%s415_s12 + $0x30] sm:$0xff] (%p2781_p6)  ;;  %467 = vst [vmem:[%s412_s14] sm:$0xff] (%p2781_p6), %v466_v32  ;;  %469 = vst [vmem:[%s412_s14 + $0x8] sm:$0xff] (%p2781_p6), %v468_v33 }
  0x38   : > { %v474_v36 = vld [vmem:[%s415_s12 + $0x40] sm:$0xff]  ;;  %v476_v37 = vld [vmem:[%s415_s12 + $0x50] sm:$0xff]  ;;  %471 = vst [vmem:[%s412_s14 + $0x10] sm:$0xff] %v470_v34  ;;  %473 = vst [vmem:[%s412_s14 + $0x18] sm:$0xff] %v472_v35 }
  0x39   : > { %475 = vst [vmem:[%s412_s14 + $0x20] sm:$0xff] %v474_v36  ;;  %477 = vst [vmem:[%s412_s14 + $0x28] sm:$0xff] %v476_v37  ;;  %v478_v38 = vld [vmem:[%s415_s12 + $0x60] sm:$0xff]  ;;  %v480_v39 = vld [vmem:[%s415_s12 + $0x70] sm:$0xff] }
  0x3a   : > { %v482_v40 = vld [vmem:[%s415_s12 + $0x80] sm:$0xff]  ;;  %479 = vst [vmem:[%s412_s14 + $0x30] sm:$0xff] %v478_v38  ;;  %481 = vst [vmem:[%s412_s14 + $0x38] sm:$0xff] %v480_v39  ;;  %v484_v41 = vld [vmem:[%s415_s12 + $0x90] sm:$0xff] }
  0x3b   : > { %483 = vst [vmem:[%s412_s14 + $0x40] sm:$0xff] %v482_v40  ;;  %v486_v42 = vld [vmem:[%s415_s12 + $0xa0] sm:$0xff]  ;;  %v488_v43 = vld [vmem:[%s415_s12 + $0xb0] sm:$0xff]  ;;  %485 = vst [vmem:[%s412_s14 + $0x48] sm:$0xff] %v484_v41 }
  0x3c   : > { %487 = vst [vmem:[%s412_s14 + $0x50] sm:$0xff] %v486_v42  ;;  %489 = vst [vmem:[%s412_s14 + $0x58] sm:$0xff] %v488_v43 }
  0x3d PF: > { %p2005_p10 = scmp.ge.s32.totalorder %s2678_s29, 1  ;;  %p494_p11 = scmp.lt.s32.totalorder %s2678_s29, 5 }
  0x3f   : > { %p495_p12 = pnand %p2005_p10, %p494_p11 }
  0x40   : > { %s501_s11 = sand.u32 (!%p495_p12), 1, %s2654_s23   ;;  %s508_s13 = sand.u32 (!%p495_p12), 1, %s2646_s21  }
  0x41   : > { %498 = sbr.rel (%p495_p12) target bundleno = 979 (0x3d3), region = 112  ;;  %s2006_s10 = sshll.u32 (!%p495_p12), %s501_s11, 8 }
  0x42   : > { %s2419_s8 = smul.u32 (!%p495_p12), 96, %s508_s13  ;;  %s2007_s17 = sshll.u32 (!%p495_p12), %s2662_s25, 5 }
  0x43   : > { %p549_p13 = scmp.lt.s32.totalorder (!%p495_p12), %s2007_s17, 63  ;;  %s2009_s18 = sshll.u32 (!%p495_p12), %s2666_s26, 5 }
  0x44   : > { %p562_p0 = scmp.eq.s32.totalorder (!%p495_p12), %s2666_s26, 0  ;;  %p555_p1 = scmp.lt.s32.totalorder (!%p495_p12), %s2009_s18, 63 }
  0x45   : > { %p563_p2 = scmp.eq.s32.totalorder (!%p495_p12), %s2662_s25, 0  ;;  %s3258_s1 = sld [smem:[#allocation6_spill]] (!%p495_p12) }
  0x46   : > { %s3274_s17 = smov (!%p549_p13, %s2007_s17), 63  ;;  %s3276_s18 = smov (!%p555_p1, %s2009_s18), 63 }
  0x47   : > { %s2008_s19 = sshll.u32 %s3274_s17, 2  ;;  %p564_p3 = pnand %p563_p2, %p562_p0 }
  0x48   : > { %s2010_s14 = sshll.u32 %s3276_s18, 2  ;;  %s2896_s13 = scalar_lea.vmem [#allocation3], %s2006_s10 }
  0x49   : > { %s2894_s11 = scalar_lea.vmem %s3248_s2, %s2010_s14  ;;  %s2898_s26 = scalar_lea.vmem [#allocation4], %s2419_s8 }
  0x4a   : > { %567 = sbr.rel (%p564_p3) target bundleno = 86 (0x56), region = 124 }
  0x4b   : > { %s2889_s12 = scalar_lea.vmem %s3258_s1, %s2008_s19 }
  0x4f   : > { %v2680_v44 = vmov 0.0  }
  0x50   : > { %568 = vst [vmem:[%s3252_s6] sm:$0xff] %v2680_v44  ;;  %569 = vst [vmem:[%s3252_s6 + $0x8] sm:$0xff] %v2680_v44 }
  0x51   : > { %570 = vst [vmem:[%s3252_s6 + $0x10] sm:$0xff] %v2680_v44  ;;  %571 = vst [vmem:[%s3252_s6 + $0x18] sm:$0xff] %v2680_v44 }
  0x52   : > { %572 = vst [vmem:[%s3252_s6 + $0x20] sm:$0xff] %v2680_v44  ;;  %573 = vst [vmem:[%s3252_s6 + $0x28] sm:$0xff] %v2680_v44 }
  0x53   : > { %574 = vst [vmem:[%s3252_s6 + $0x30] sm:$0xff] %v2680_v44  ;;  %575 = vst [vmem:[%s3252_s6 + $0x38] sm:$0xff] %v2680_v44 }
  0x54   : > { %576 = vst [vmem:[%s3252_s6 + $0x40] sm:$0xff] %v2680_v44  ;;  %577 = vst [vmem:[%s3252_s6 + $0x48] sm:$0xff] %v2680_v44 }
  0x55   : > { %578 = vst [vmem:[%s3252_s6 + $0x50] sm:$0xff] %v2680_v44  ;;  %579 = vst [vmem:[%s3252_s6 + $0x58] sm:$0xff] %v2680_v44 }
  0x56 PF: > { %p2011_p4 = scmp.ne.s32.totalorder %s2662_s25, 0 }
  0x58   : > { %582 = sbr.rel (%p2011_p4) target bundleno = 110 (0x6e), region = 128 }
  0x5d   : > { %v2681_v45 = vmov 0.0  }
  0x5e   : > { %583 = vst [vmem:[#allocation2 + $0xb0] sm:$0xff] %v2681_v45  ;;  %584 = vst [vmem:[#allocation2] sm:$0xff] %v2681_v45 }
  0x5f   : > { %585 = vst [vmem:[#allocation2 + $0xd8] sm:$0xff] %v2681_v45  ;;  %586 = vst [vmem:[#allocation2 + $0x18] sm:$0xff] %v2681_v45 }
  0x60   : > { %587 = vst [vmem:[#allocation2 + $0x50] sm:$0xff] %v2681_v45  ;;  %588 = vst [vmem:[#allocation2 + $0x68] sm:$0xff] %v2681_v45 }
  0x61   : > { %589 = vst [vmem:[#allocation2 + $0x30] sm:$0xff] %v2681_v45  ;;  %590 = vst [vmem:[#allocation2 + $0x48] sm:$0xff] %v2681_v45 }
  0x62   : > { %591 = vst [vmem:[#allocation2 + $0x80] sm:$0xff] %v2681_v45  ;;  %592 = vst [vmem:[#allocation2 + $0x88] sm:$0xff] %v2681_v45 }
  0x63   : > { %593 = vst [vmem:[#allocation2 + $0xe8] sm:$0xff] %v2681_v45  ;;  %594 = vst [vmem:[#allocation2 + $0xb8] sm:$0xff] %v2681_v45 }
  0x64   : > { %595 = vst [vmem:[#allocation2 + $0x60] sm:$0xff] %v2681_v45  ;;  %596 = vst [vmem:[#allocation2 + $0xf0] sm:$0xff] %v2681_v45 }
  0x65   : > { %597 = vst [vmem:[#allocation2 + $0x8] sm:$0xff] %v2681_v45  ;;  %598 = vst [vmem:[#allocation2 + $0x78] sm:$0xff] %v2681_v45 }
  0x66   : > { %599 = vst [vmem:[#allocation2 + $0x38] sm:$0xff] %v2681_v45  ;;  %600 = vst [vmem:[#allocation2 + $0x58] sm:$0xff] %v2681_v45 }
  0x67   : > { %601 = vst [vmem:[#allocation2 + $0x40] sm:$0xff] %v2681_v45  ;;  %602 = vst [vmem:[#allocation2 + $0xc8] sm:$0xff] %v2681_v45 }
  0x68   : > { %603 = vst [vmem:[#allocation2 + $0xe0] sm:$0xff] %v2681_v45  ;;  %604 = vst [vmem:[#allocation2 + $0x90] sm:$0xff] %v2681_v45 }
  0x69   : > { %605 = vst [vmem:[#allocation2 + $0x70] sm:$0xff] %v2681_v45  ;;  %606 = vst [vmem:[#allocation2 + $0xc0] sm:$0xff] %v2681_v45 }
  0x6a   : > { %607 = vst [vmem:[#allocation2 + $0xa8] sm:$0xff] %v2681_v45  ;;  %608 = vst [vmem:[#allocation2 + $0xd0] sm:$0xff] %v2681_v45 }
  0x6b   : > { %609 = vst [vmem:[#allocation2 + $0x10] sm:$0xff] %v2681_v45  ;;  %610 = vst [vmem:[#allocation2 + $0x28] sm:$0xff] %v2681_v45 }
  0x6c   : > { %611 = vst [vmem:[#allocation2 + $0xa0] sm:$0xff] %v2681_v45  ;;  %612 = vst [vmem:[#allocation2 + $0xf8] sm:$0xff] %v2681_v45 }
  0x6d   : > { %613 = vst [vmem:[#allocation2 + $0x20] sm:$0xff] %v2681_v45  ;;  %614 = vst [vmem:[#allocation2 + $0x98] sm:$0xff] %v2681_v45 }
  0x6e PF: > { %v2494_v46 = vld [vmem:[%s2889_s12 + $0x78] sm:$0xff]   ;;  %v2496_v48 = vld [vmem:[%s2889_s12 + $0x70] sm:$0xff]   ;;  %v2498_v50 = vld [vmem:[%s2889_s12 + $0x68] sm:$0xff]   ;;  %p2060_p5 = scmp.ne.s32.totalorder %s2662_s25, 1 }
  0x6f   : > { %v2495_v47 = vld [vmem:[%s2889_s12 + $0x38] sm:$0xff]   ;;  %2110 = vmatprep.subr.bf16.mxu0 %v2494_v46  ;;  %2386 = vmatprep.subr.bf16.mxu1 %v2494_v46  ;;  %v2497_v49 = vld [vmem:[%s2889_s12 + $0x30] sm:$0xff]   ;;  %v2499_v51 = vld [vmem:[%s2889_s12 + $0x28] sm:$0xff]  }
  0x70   : > { %2111 = vmatpush3.bf16.msra.mxu0 %v2495_v47  ;;  %2394 = vmatpush3.bf16.msra.mxu1 %v2495_v47  ;;  %v2500_v52 = vld [vmem:[%s2889_s12 + $0x60] sm:$0xff]   ;;  %v2502_v54 = vld [vmem:[%s2889_s12 + $0x58] sm:$0xff]   ;;  %v2504_v56 = vld [vmem:[%s2889_s12 + $0x50] sm:$0xff]  }
  0x71   : > { %2112 = vmatprep.subr.bf16.mxu0 %v2496_v48  ;;  %2387 = vmatprep.subr.bf16.mxu1 %v2496_v48  ;;  %v2501_v53 = vld [vmem:[%s2889_s12 + $0x20] sm:$0xff]   ;;  %v2503_v55 = vld [vmem:[%s2889_s12 + $0x18] sm:$0xff]   ;;  %v2505_v59 = vld [vmem:[%s2889_s12 + $0x10] sm:$0xff]  }
  0x72   : > { %v2512_v57 = vld [vmem:[%s2896_s13 + $0x4] ss:$8 sps:$4 sm:$0xff]   ;;  %v2510_v0 = vld [vmem:[%s2896_s13] ss:$8 sps:$4 sm:$0xff]   ;;  %v2516_v2 = vld [vmem:[%s2896_s13 + $0x14] ss:$8 sps:$4 sm:$0xff]  }
  0x73   : > { %v2515_v58 = vld [vmem:[%s2896_s13 + $0x84] ss:$8 sps:$4 sm:$0xff]   ;;  %999 = vmatprep.mubr.bf16.mxu0 %v2512_v57  ;;  %v2513_v1 = vld [vmem:[%s2896_s13 + $0x80] ss:$8 sps:$4 sm:$0xff]   ;;  %v2518_v3 = vld [vmem:[%s2896_s13 + $0x94] ss:$8 sps:$4 sm:$0xff]  }
  0x74   : > { %2113 = vmatpush3.bf16.msra.mxu0 %v2497_v49  ;;  %2395 = vmatpush3.bf16.msra.mxu1 %v2497_v49  ;;  %v2506_v60 = vld [vmem:[%s2889_s12 + $0x48] sm:$0xff]   ;;  %v2508_v62 = vld [vmem:[%s2889_s12 + $0x40] sm:$0xff]   ;;  %v2520_v4 = vld [vmem:[%s2896_s13 + $0x10] ss:$8 sps:$4 sm:$0xff]  }
  0x75   : > { %2114 = vmatprep.subr.bf16.mxu0 %v2498_v50  ;;  %2388 = vmatprep.subr.bf16.mxu1 %v2498_v50  ;;  %v2507_v61 = vld [vmem:[%s2889_s12 + $0x8] sm:$0xff]   ;;  %v2509_v63 = vld [vmem:[%s2889_s12] sm:$0xff]   ;;  %v2521_v5 = vld [vmem:[%s2896_s13 + $0x90] ss:$8 sps:$4 sm:$0xff]  }
  0x76   : > { %1063 = vmatprep.mubr.bf16.mxu1 %v2515_v58  ;;  %v2522_v6 = vld [vmem:[%s2896_s13 + $0x24] ss:$8 sps:$4 sm:$0xff]   ;;  %v2526_v8 = vld [vmem:[%s2896_s13 + $0x20] ss:$8 sps:$4 sm:$0xff]   ;;  %v2528_v10 = vld [vmem:[%s2896_s13 + $0x34] ss:$8 sps:$4 sm:$0xff]  }
  0x77   : > { %v2524_v7 = vld [vmem:[%s2896_s13 + $0xa4] ss:$8 sps:$4 sm:$0xff]   ;;  %v2527_v9 = vld [vmem:[%s2896_s13 + $0xa0] ss:$8 sps:$4 sm:$0xff]   ;;  %v2530_v11 = vld [vmem:[%s2896_s13 + $0xb4] ss:$8 sps:$4 sm:$0xff]  }
  0x78   : > { %2115 = vmatpush3.bf16.msra.mxu0 %v2499_v51  ;;  %2396 = vmatpush3.bf16.msra.mxu1 %v2499_v51  ;;  %v2532_v12 = vld [vmem:[%s2896_s13 + $0x30] ss:$8 sps:$4 sm:$0xff]   ;;  %v2534_v14 = vld [vmem:[%s2896_s13 + $0x44] ss:$8 sps:$4 sm:$0xff]   ;;  %v2538_v16 = vld [vmem:[%s2896_s13 + $0x40] ss:$8 sps:$4 sm:$0xff]  }
  0x79   : > { %2116 = vmatprep.subr.bf16.mxu0 %v2500_v52  ;;  %2389 = vmatprep.subr.bf16.mxu1 %v2500_v52  ;;  %v2533_v13 = vld [vmem:[%s2896_s13 + $0xb0] ss:$8 sps:$4 sm:$0xff]   ;;  %v2536_v15 = vld [vmem:[%s2896_s13 + $0xc4] ss:$8 sps:$4 sm:$0xff]   ;;  %v2539_v17 = vld [vmem:[%s2896_s13 + $0xc0] ss:$8 sps:$4 sm:$0xff]  }
  0x7a   : > { %v2540_v18 = vld [vmem:[%s2896_s13 + $0x54] ss:$8 sps:$4 sm:$0xff]   ;;  %v2544_v20 = vld [vmem:[%s2896_s13 + $0x50] ss:$8 sps:$4 sm:$0xff]   ;;  %v2546_v22 = vld [vmem:[%s2896_s13 + $0x64] ss:$8 sps:$4 sm:$0xff]  }
  0x7b   : > { %v2542_v19 = vld [vmem:[%s2896_s13 + $0xd4] ss:$8 sps:$4 sm:$0xff]   ;;  %v2545_v21 = vld [vmem:[%s2896_s13 + $0xd0] ss:$8 sps:$4 sm:$0xff]   ;;  %v2548_v23 = vld [vmem:[%s2896_s13 + $0xe4] ss:$8 sps:$4 sm:$0xff]  }
  0x7c   : > { %2117 = vmatpush3.bf16.msra.mxu0 %v2501_v53  ;;  %2397 = vmatpush3.bf16.msra.mxu1 %v2501_v53  ;;  %v2550_v24 = vld [vmem:[%s2896_s13 + $0x60] ss:$8 sps:$4 sm:$0xff]   ;;  %v2552_v26 = vld [vmem:[%s2896_s13 + $0x74] ss:$8 sps:$4 sm:$0xff]   ;;  %v2556_v28 = vld [vmem:[%s2896_s13 + $0x70] ss:$8 sps:$4 sm:$0xff]  }
  0x7d   : > { %2118 = vmatprep.subr.bf16.mxu0 %v2502_v54  ;;  %2390 = vmatprep.subr.bf16.mxu1 %v2502_v54  ;;  %v2551_v25 = vld [vmem:[%s2896_s13 + $0xe0] ss:$8 sps:$4 sm:$0xff]   ;;  %v2554_v27 = vld [vmem:[%s2896_s13 + $0xf4] ss:$8 sps:$4 sm:$0xff]   ;;  %v2557_v29 = vld [vmem:[%s2896_s13 + $0xf0] ss:$8 sps:$4 sm:$0xff]  }
  0x7e   : > { %v615_v32 = vld [vmem:[#allocation2 + $0xb0] sm:$0xff]  ;;  %v631_v34 = vld [vmem:[#allocation2 + $0x38] sm:$0xff]  ;;  %v616_v42 = vld [vmem:[#allocation2] sm:$0xff] }
  0x7f   : > { %v632_v44 = vld [vmem:[#allocation2 + $0x58] sm:$0xff]  ;;  %v633_v54 = vld [vmem:[#allocation2 + $0x40] sm:$0xff] }
  0x80   : > { %2119 = vmatpush3.bf16.msra.mxu0 %v2503_v55  ;;  %2398 = vmatpush3.bf16.msra.mxu1 %v2503_v55  ;;  %v617_v52 = vld [vmem:[#allocation2 + $0xd8] sm:$0xff] }
  0x81   : > { %2120 = vmatprep.subr.bf16.mxu0 %v2504_v56  ;;  %2391 = vmatprep.subr.bf16.mxu1 %v2504_v56 }
  0x84   : > { %2121 = vmatpush3.bf16.msra.mxu0 %v2505_v59  ;;  %2399 = vmatpush3.bf16.msra.mxu1 %v2505_v59 }
  0x85   : > { %2122 = vmatprep.subr.bf16.mxu0 %v2506_v60  ;;  %2392 = vmatprep.subr.bf16.mxu1 %v2506_v60 }
  0x88   : > { %2123 = vmatpush3.bf16.msra.mxu0 %v2507_v61  ;;  %2400 = vmatpush3.bf16.msra.mxu1 %v2507_v61 }
  0x89   : > { %2124 = vmatprep.subr.bf16.mxu0 %v2508_v62  ;;  %2393 = vmatprep.subr.bf16.mxu1 %v2508_v62  ;;  %v618_v62 = vld [vmem:[#allocation2 + $0x18] sm:$0xff] }
  0x8c   : > { %2125 = vmatpush3.bf16.msra.mxu0 %v2509_v63  ;;  %2401 = vmatpush3.bf16.msra.mxu1 %v2509_v63 }
  0x8f   : > { %1000 = vmatmul.mubr.bf16.vlgmr.msra.gmra.mxu0 %v2510_v0  ;;  %1064 = vmatmul.mubr.bf16.vlgmr.msra.gmra.mxu1 %v2513_v1  ;;  %v634_v0 = vld [vmem:[#allocation2 + $0xc8] sm:$0xff] }
  0x90   : > { %1007 = vmatprep.mubr.bf16.mxu0 %v2516_v2  ;;  %1071 = vmatprep.mubr.bf16.mxu1 %v2518_v3 }
  0x97   : > { %1008 = vmatmul.mubr.bf16.gmra.mxu0 %v2520_v4  ;;  %1072 = vmatmul.mubr.bf16.gmra.mxu1 %v2521_v5 }
  0x98   : > { %1015 = vmatprep.mubr.bf16.mxu0 %v2522_v6  ;;  %1079 = vmatprep.mubr.bf16.mxu1 %v2524_v7 }
  0x9f   : > { %1016 = vmatmul.mubr.bf16.gmra.mxu0 %v2526_v8  ;;  %1080 = vmatmul.mubr.bf16.gmra.mxu1 %v2527_v9  ;;  %v619_v8 = vld [vmem:[#allocation2 + $0x50] sm:$0xff] }
  0xa0   : > { %1023 = vmatprep.mubr.bf16.mxu0 %v2528_v10  ;;  %1087 = vmatprep.mubr.bf16.mxu1 %v2530_v11  ;;  %v635_v10 = vld [vmem:[#allocation2 + $0xe0] sm:$0xff] }
  0xa7   : > { %1024 = vmatmul.mubr.bf16.gmra.mxu0 %v2532_v12  ;;  %1088 = vmatmul.mubr.bf16.gmra.mxu1 %v2533_v13 }
  0xa8   : > { %1031 = vmatprep.mubr.bf16.mxu0 %v2534_v14  ;;  %1095 = vmatprep.mubr.bf16.mxu1 %v2536_v15 }
  0xaf   : > { %1032 = vmatmul.mubr.bf16.gmra.mxu0 %v2538_v16  ;;  %1096 = vmatmul.mubr.bf16.gmra.mxu1 %v2539_v17 }
  0xb0   : > { %1039 = vmatprep.mubr.bf16.mxu0 %v2540_v18  ;;  %1103 = vmatprep.mubr.bf16.mxu1 %v2542_v19  ;;  %v620_v18 = vld [vmem:[#allocation2 + $0x68] sm:$0xff] }
  0xb7   : > { %1040 = vmatmul.mubr.bf16.gmra.mxu0 %v2544_v20  ;;  %1104 = vmatmul.mubr.bf16.gmra.mxu1 %v2545_v21  ;;  %v636_v20 = vld [vmem:[#allocation2 + $0x90] sm:$0xff] }
  0xb8   : > { %1047 = vmatprep.mubr.bf16.mxu0 %v2546_v22  ;;  %1111 = vmatprep.mubr.bf16.mxu1 %v2548_v23 }
  0xbf   : > { %1048 = vmatmul.mubr.bf16.gmra.mxu0 %v2550_v24  ;;  %1112 = vmatmul.mubr.bf16.gmra.mxu1 %v2551_v25 }
  0xc0   : > { %1055 = vmatprep.mubr.bf16.mxu0 %v2552_v26  ;;  %1119 = vmatprep.mubr.bf16.mxu1 %v2554_v27 }
  0xc7   : > { %1056 = vmatmul.mubr.bf16.gmra.mxu0 %v2556_v28  ;;  %1120 = vmatmul.mubr.bf16.gmra.mxu1 %v2557_v29  ;;  %v621_v28 = vld [vmem:[#allocation2 + $0x30] sm:$0xff] }
 0x14f   : > { %v2126_v30 = vpop.f32.mrf.mxu0  ;;  %v2174_v31 = vpop.f32.mrf.mxu1 }
 0x151   : > { %v2127_v33 = vpop.f32.mrf.mxu0  ;;  %v2175_v35 = vpop.f32.mrf.mxu1 }
 0x152   : > { %v2128_v36 = vadd.f32 %v2127_v33, %v2126_v30  ;;  %v2176_v37 = vadd.f32 %v2175_v35, %v2174_v31  ;;  %v637_v30 = vld [vmem:[#allocation2 + $0x70] sm:$0xff] }
 0x153   : > { %v2129_v38 = vpop.f32.mrf.mxu0  ;;  %v2177_v39 = vpop.f32.mrf.mxu1 }
 0x154   : > { %v1128_v40 = vadd.f32 %v2128_v36, %v615_v32  ;;  %v1144_v41 = vadd.f32 %v2176_v37, %v631_v34 }
 0x155   : > { %v2130_v43 = vpop.f32.mrf.mxu0  ;;  %v2178_v45 = vpop.f32.mrf.mxu1 }
 0x156   : > { %1160 = vst [vmem:[#allocation2 + $0xb0] sm:$0xff] %v1128_v40  ;;  %1176 = vst [vmem:[#allocation2 + $0x38] sm:$0xff] %v1144_v41  ;;  %v2131_v46 = vadd.f32 %v2130_v43, %v2129_v38  ;;  %v2179_v47 = vadd.f32 %v2178_v45, %v2177_v39  ;;  %v622_v38 = vld [vmem:[#allocation2 + $0x48] sm:$0xff]  ;;  %v638_v40 = vld [vmem:[#allocation2 + $0xc0] sm:$0xff] }
 0x157   : > { %v2132_v48 = vpop.f32.mrf.mxu0  ;;  %v2180_v49 = vpop.f32.mrf.mxu1 }
 0x158   : > { %v1129_v50 = vadd.f32 %v2131_v46, %v616_v42  ;;  %v1145_v51 = vadd.f32 %v2179_v47, %v632_v44 }
 0x159   : > { %v2133_v53 = vpop.f32.mrf.mxu0  ;;  %v2181_v55 = vpop.f32.mrf.mxu1 }
 0x15a   : > { %1161 = vst [vmem:[#allocation2] sm:$0xff] %v1129_v50  ;;  %1177 = vst [vmem:[#allocation2 + $0x58] sm:$0xff] %v1145_v51  ;;  %v2134_v56 = vadd.f32 %v2133_v53, %v2132_v48  ;;  %v2182_v57 = vadd.f32 %v2181_v55, %v2180_v49  ;;  %v623_v48 = vld [vmem:[#allocation2 + $0x80] sm:$0xff]  ;;  %v639_v50 = vld [vmem:[#allocation2 + $0xa8] sm:$0xff] }
 0x15b   : > { %v2135_v58 = vpop.f32.mrf.mxu0  ;;  %v2183_v59 = vpop.f32.mrf.mxu1 }
 0x15c   : > { %v1130_v60 = vadd.f32 %v2134_v56, %v617_v52  ;;  %v1146_v61 = vadd.f32 %v2182_v57, %v633_v54 }
 0x15d   : > { %v2136_v63 = vpop.f32.mrf.mxu0  ;;  %v2184_v1 = vpop.f32.mrf.mxu1 }
 0x15e   : > { %1162 = vst [vmem:[#allocation2 + $0xd8] sm:$0xff] %v1130_v60  ;;  %1178 = vst [vmem:[#allocation2 + $0x40] sm:$0xff] %v1146_v61  ;;  %v2137_v2 = vadd.f32 %v2136_v63, %v2135_v58  ;;  %v2185_v3 = vadd.f32 %v2184_v1, %v2183_v59  ;;  %v624_v58 = vld [vmem:[#allocation2 + $0x88] sm:$0xff]  ;;  %v640_v60 = vld [vmem:[#allocation2 + $0xd0] sm:$0xff] }
 0x15f   : > { %v2138_v4 = vpop.f32.mrf.mxu0  ;;  %v2186_v5 = vpop.f32.mrf.mxu1 }
 0x160   : > { %v1131_v6 = vadd.f32 %v2137_v2, %v618_v62  ;;  %v1147_v7 = vadd.f32 %v2185_v3, %v634_v0 }
 0x161   : > { %v2139_v9 = vpop.f32.mrf.mxu0  ;;  %v2187_v11 = vpop.f32.mrf.mxu1 }
 0x162   : > { %1163 = vst [vmem:[#allocation2 + $0x18] sm:$0xff] %v1131_v6  ;;  %1179 = vst [vmem:[#allocation2 + $0xc8] sm:$0xff] %v1147_v7  ;;  %v2140_v12 = vadd.f32 %v2139_v9, %v2138_v4  ;;  %v2188_v13 = vadd.f32 %v2187_v11, %v2186_v5  ;;  %v625_v4 = vld [vmem:[#allocation2 + $0xe8] sm:$0xff]  ;;  %v641_v6 = vld [vmem:[#allocation2 + $0x10] sm:$0xff] }
 0x163   : > { %v2141_v14 = vpop.f32.mrf.mxu0  ;;  %v2189_v15 = vpop.f32.mrf.mxu1 }
 0x164   : > { %v1132_v16 = vadd.f32 %v2140_v12, %v619_v8  ;;  %v1148_v17 = vadd.f32 %v2188_v13, %v635_v10 }
 0x165   : > { %v2142_v19 = vpop.f32.mrf.mxu0  ;;  %v2190_v21 = vpop.f32.mrf.mxu1 }
 0x166   : > { %1164 = vst [vmem:[#allocation2 + $0x50] sm:$0xff] %v1132_v16  ;;  %1180 = vst [vmem:[#allocation2 + $0xe0] sm:$0xff] %v1148_v17  ;;  %v2143_v22 = vadd.f32 %v2142_v19, %v2141_v14  ;;  %v2191_v23 = vadd.f32 %v2190_v21, %v2189_v15  ;;  %v626_v14 = vld [vmem:[#allocation2 + $0xb8] sm:$0xff]  ;;  %v642_v16 = vld [vmem:[#allocation2 + $0x28] sm:$0xff] }
 0x167   : > { %v2144_v24 = vpop.f32.mrf.mxu0  ;;  %v2192_v25 = vpop.f32.mrf.mxu1 }
 0x168   : > { %v1133_v26 = vadd.f32 %v2143_v22, %v620_v18  ;;  %v1149_v27 = vadd.f32 %v2191_v23, %v636_v20 }
 0x169   : > { %v2145_v29 = vpop.f32.mrf.mxu0  ;;  %v2193_v31 = vpop.f32.mrf.mxu1 }
 0x16a   : > { %1165 = vst [vmem:[#allocation2 + $0x68] sm:$0xff] %v1133_v26  ;;  %1181 = vst [vmem:[#allocation2 + $0x90] sm:$0xff] %v1149_v27  ;;  %v2146_v32 = vadd.f32 %v2145_v29, %v2144_v24  ;;  %v2194_v33 = vadd.f32 %v2193_v31, %v2192_v25  ;;  %v627_v24 = vld [vmem:[#allocation2 + $0x60] sm:$0xff] }
 0x16b   : > { %v2147_v34 = vpop.f32.mrf.mxu0  ;;  %v2195_v35 = vpop.f32.mrf.mxu1  ;;  %v643_v26 = vld [vmem:[#allocation2 + $0xa0] sm:$0xff] }
 0x16c   : > { %v1134_v36 = vadd.f32 %v2146_v32, %v621_v28  ;;  %v1150_v37 = vadd.f32 %v2194_v33, %v637_v30 }
 0x16d   : > { %v2148_v39 = vpop.f32.mrf.mxu0  ;;  %v2196_v41 = vpop.f32.mrf.mxu1 }
 0x16e   : > { %1166 = vst [vmem:[#allocation2 + $0x30] sm:$0xff] %v1134_v36  ;;  %1182 = vst [vmem:[#allocation2 + $0x70] sm:$0xff] %v1150_v37  ;;  %v2149_v42 = vadd.f32 %v2148_v39, %v2147_v34  ;;  %v2197_v43 = vadd.f32 %v2196_v41, %v2195_v35  ;;  %v628_v34 = vld [vmem:[#allocation2 + $0xf0] sm:$0xff]  ;;  %v644_v36 = vld [vmem:[#allocation2 + $0xf8] sm:$0xff] }
 0x16f   : > { %v2150_v44 = vpop.f32.mrf.mxu0  ;;  %v2198_v45 = vpop.f32.mrf.mxu1 }
 0x170   : > { %v1135_v46 = vadd.f32 %v2149_v42, %v622_v38  ;;  %v1151_v47 = vadd.f32 %v2197_v43, %v638_v40 }
 0x171   : > { %v2151_v49 = vpop.f32.mrf.mxu0  ;;  %v2199_v51 = vpop.f32.mrf.mxu1 }
 0x172   : > { %1167 = vst [vmem:[#allocation2 + $0x48] sm:$0xff] %v1135_v46  ;;  %1183 = vst [vmem:[#allocation2 + $0xc0] sm:$0xff] %v1151_v47  ;;  %v2152_v52 = vadd.f32 %v2151_v49, %v2150_v44  ;;  %v2200_v53 = vadd.f32 %v2199_v51, %v2198_v45  ;;  %v629_v44 = vld [vmem:[#allocation2 + $0x8] sm:$0xff]  ;;  %v645_v46 = vld [vmem:[#allocation2 + $0x20] sm:$0xff] }
 0x173   : > { %v2153_v54 = vpop.f32.mrf.mxu0  ;;  %v2201_v55 = vpop.f32.mrf.mxu1 }
 0x174   : > { %v1136_v56 = vadd.f32 %v2152_v52, %v623_v48  ;;  %v1152_v57 = vadd.f32 %v2200_v53, %v639_v50 }
 0x175   : > { %v2154_v59 = vpop.f32.mrf.mxu0  ;;  %v2202_v61 = vpop.f32.mrf.mxu1 }
 0x176   : > { %1168 = vst [vmem:[#allocation2 + $0x80] sm:$0xff] %v1136_v56  ;;  %1184 = vst [vmem:[#allocation2 + $0xa8] sm:$0xff] %v1152_v57  ;;  %v2155_v62 = vadd.f32 %v2154_v59, %v2153_v54  ;;  %v2203_v63 = vadd.f32 %v2202_v61, %v2201_v55  ;;  %v630_v54 = vld [vmem:[#allocation2 + $0x78] sm:$0xff] }
 0x177   : > { %v2156_v0 = vpop.f32.mrf.mxu0  ;;  %v2204_v1 = vpop.f32.mrf.mxu1  ;;  %v646_v56 = vld [vmem:[#allocation2 + $0x98] sm:$0xff] }
 0x178   : > { %v1137_v2 = vadd.f32 %v2155_v62, %v624_v58  ;;  %v1153_v3 = vadd.f32 %v2203_v63, %v640_v60 }
 0x179   : > { %v2157_v5 = vpop.f32.mrf.mxu0  ;;  %v2205_v7 = vpop.f32.mrf.mxu1 }
 0x17a   : > { %1169 = vst [vmem:[#allocation2 + $0x88] sm:$0xff] %v1137_v2  ;;  %1185 = vst [vmem:[#allocation2 + $0xd0] sm:$0xff] %v1153_v3  ;;  %v2158_v8 = vadd.f32 %v2157_v5, %v2156_v0  ;;  %v2206_v9 = vadd.f32 %v2205_v7, %v2204_v1 }
 0x17b   : > { %v2159_v10 = vpop.f32.mrf.mxu0  ;;  %v2207_v11 = vpop.f32.mrf.mxu1 }
 0x17c   : > { %v1138_v12 = vadd.f32 %v2158_v8, %v625_v4  ;;  %v1154_v13 = vadd.f32 %v2206_v9, %v641_v6 }
 0x17d   : > { %v2160_v15 = vpop.f32.mrf.mxu0  ;;  %v2208_v17 = vpop.f32.mrf.mxu1 }
 0x17e   : > { %1170 = vst [vmem:[#allocation2 + $0xe8] sm:$0xff] %v1138_v12  ;;  %1186 = vst [vmem:[#allocation2 + $0x10] sm:$0xff] %v1154_v13  ;;  %v2161_v18 = vadd.f32 %v2160_v15, %v2159_v10  ;;  %v2209_v19 = vadd.f32 %v2208_v17, %v2207_v11 }
 0x17f   : > { %v2162_v20 = vpop.f32.mrf.mxu0  ;;  %v2210_v21 = vpop.f32.mrf.mxu1 }
 0x180   : > { %v1139_v22 = vadd.f32 %v2161_v18, %v626_v14  ;;  %v1155_v23 = vadd.f32 %v2209_v19, %v642_v16 }
 0x181   : > { %v2163_v25 = vpop.f32.mrf.mxu0  ;;  %v2211_v27 = vpop.f32.mrf.mxu1 }
 0x182   : > { %1171 = vst [vmem:[#allocation2 + $0xb8] sm:$0xff] %v1139_v22  ;;  %1187 = vst [vmem:[#allocation2 + $0x28] sm:$0xff] %v1155_v23  ;;  %v2164_v28 = vadd.f32 %v2163_v25, %v2162_v20  ;;  %v2212_v29 = vadd.f32 %v2211_v27, %v2210_v21 }
 0x183   : > { %v2165_v30 = vpop.f32.mrf.mxu0  ;;  %v2213_v31 = vpop.f32.mrf.mxu1 }
 0x184   : > { %v1140_v32 = vadd.f32 %v2164_v28, %v627_v24  ;;  %v1156_v33 = vadd.f32 %v2212_v29, %v643_v26 }
 0x185   : > { %v2166_v35 = vpop.f32.mrf.mxu0  ;;  %v2214_v37 = vpop.f32.mrf.mxu1 }
 0x186   : > { %1172 = vst [vmem:[#allocation2 + $0x60] sm:$0xff] %v1140_v32  ;;  %1188 = vst [vmem:[#allocation2 + $0xa0] sm:$0xff] %v1156_v33  ;;  %v2167_v38 = vadd.f32 %v2166_v35, %v2165_v30  ;;  %v2215_v39 = vadd.f32 %v2214_v37, %v2213_v31 }
 0x187   : > { %v2168_v40 = vpop.f32.mrf.mxu0  ;;  %v2216_v41 = vpop.f32.mrf.mxu1 }
 0x188   : > { %v1141_v42 = vadd.f32 %v2167_v38, %v628_v34  ;;  %v1157_v43 = vadd.f32 %v2215_v39, %v644_v36 }
 0x189   : > { %v2169_v45 = vpop.f32.mrf.mxu0  ;;  %v2217_v47 = vpop.f32.mrf.mxu1 }
 0x18a   : > { %1173 = vst [vmem:[#allocation2 + $0xf0] sm:$0xff] %v1141_v42  ;;  %1189 = vst [vmem:[#allocation2 + $0xf8] sm:$0xff] %v1157_v43  ;;  %v2170_v48 = vadd.f32 %v2169_v45, %v2168_v40  ;;  %v2218_v49 = vadd.f32 %v2217_v47, %v2216_v41 }
 0x18b   : > { %v2171_v50 = vpop.f32.mrf.mxu0  ;;  %v2219_v51 = vpop.f32.mrf.mxu1 }
 0x18c   : > { %v1142_v52 = vadd.f32 %v2170_v48, %v629_v44  ;;  %v1158_v53 = vadd.f32 %v2218_v49, %v645_v46 }
 0x18d   : > { %v2172_v55 = vpop.f32.mrf.mxu0  ;;  %v2220_v57 = vpop.f32.mrf.mxu1 }
 0x18e   : > { %1174 = vst [vmem:[#allocation2 + $0x8] sm:$0xff] %v1142_v52  ;;  %1190 = vst [vmem:[#allocation2 + $0x20] sm:$0xff] %v1158_v53  ;;  %v2173_v58 = vadd.f32 %v2172_v55, %v2171_v50  ;;  %v2221_v59 = vadd.f32 %v2220_v57, %v2219_v51  ;;  %1195 = sbr.rel (%p2060_p5) target bundleno = 979 (0x3d3), region = 132 }
 0x190   : > { %v1143_v60 = vadd.f32 %v2173_v58, %v630_v54  ;;  %v1159_v61 = vadd.f32 %v2221_v59, %v646_v56 }
 0x192   : > { %1175 = vst [vmem:[#allocation2 + $0x78] sm:$0xff] %v1143_v60  ;;  %1191 = vst [vmem:[#allocation2 + $0x98] sm:$0xff] %v1159_v61 }
 0x193   : > { %v2558_v62 = vld [vmem:[%s3249_s3 + $0x78] sm:$0xff]   ;;  %v2560_v0 = vld [vmem:[%s3249_s3 + $0x70] sm:$0xff]   ;;  %v2562_v2 = vld [vmem:[%s3249_s3 + $0x68] sm:$0xff]  }
 0x194   : > { %v2559_v63 = vld [vmem:[%s3249_s3 + $0x38] sm:$0xff]   ;;  %2222 = vmatprep.subr.bf16.mxu0 %v2558_v62  ;;  %2402 = vmatprep.subr.bf16.mxu1 %v2558_v62  ;;  %v2561_v1 = vld [vmem:[%s3249_s3 + $0x30] sm:$0xff]   ;;  %v2563_v3 = vld [vmem:[%s3249_s3 + $0x28] sm:$0xff]  }
 0x195   : > { %2223 = vmatpush3.bf16.msra.mxu0 %v2559_v63  ;;  %2410 = vmatpush3.bf16.msra.mxu1 %v2559_v63  ;;  %v2564_v4 = vld [vmem:[%s3249_s3 + $0x60] sm:$0xff]   ;;  %v2566_v6 = vld [vmem:[%s3249_s3 + $0x58] sm:$0xff]   ;;  %v2568_v8 = vld [vmem:[%s3249_s3 + $0x50] sm:$0xff]  }
 0x196   : > { %2224 = vmatprep.subr.bf16.mxu0 %v2560_v0  ;;  %2403 = vmatprep.subr.bf16.mxu1 %v2560_v0  ;;  %v2565_v5 = vld [vmem:[%s3249_s3 + $0x20] sm:$0xff]   ;;  %v2567_v7 = vld [vmem:[%s3249_s3 + $0x18] sm:$0xff]   ;;  %v1228_v9 = vld [vmem:[#allocation2 + $0xb0] sm:$0xff] }
 0x197   : > { %v1229_v10 = vld [vmem:[#allocation2] sm:$0xff]  ;;  %v2569_v12 = vld [vmem:[%s3249_s3 + $0x10] sm:$0xff]   ;;  %v2570_v13 = vld [vmem:[%s3249_s3 + $0x48] sm:$0xff]  }
 0x198   : > { %v1260_v11 = vpack.c.bf16 %v1229_v10, %v1228_v9  ;;  %v1250_v14 = vld [vmem:[#allocation2 + $0x70] sm:$0xff]  ;;  %v1251_v15 = vld [vmem:[#allocation2 + $0xc0] sm:$0xff]  ;;  %v2571_v17 = vld [vmem:[%s3249_s3 + $0x8] sm:$0xff]  }
 0x199   : > { %2225 = vmatpush3.bf16.msra.mxu0 %v2561_v1  ;;  %2411 = vmatpush3.bf16.msra.mxu1 %v2561_v1  ;;  %v1271_v16 = vpack.c.bf16 %v1251_v15, %v1250_v14  ;;  %v2572_v18 = vld [vmem:[%s3249_s3 + $0x40] sm:$0xff]   ;;  %v1230_v20 = vld [vmem:[#allocation2 + $0xd8] sm:$0xff]  ;;  %v1252_v22 = vld [vmem:[#allocation2 + $0xa8] sm:$0xff] }
 0x19a   : > { %2226 = vmatprep.subr.bf16.mxu0 %v2562_v2  ;;  %2404 = vmatprep.subr.bf16.mxu1 %v2562_v2  ;;  %v2573_v19 = vld [vmem:[%s3249_s3] sm:$0xff]   ;;  %v1231_v21 = vld [vmem:[#allocation2 + $0x18] sm:$0xff]  ;;  %v1253_v23 = vld [vmem:[#allocation2 + $0xd0] sm:$0xff] }
 0x19b   : > { %1539 = vmatprep.mubr.bf16.mxu0 %v1260_v11  ;;  %1627 = vmatprep.mubr.bf16.mxu1 %v1271_v16  ;;  %v2574_v24 = vld [vmem:[%s2894_s11] sm:$0xff]   ;;  %v1261_v25 = vpack.c.bf16 %v1231_v21, %v1230_v20  ;;  %v2577_v26 = vld [vmem:[%s2894_s11 + $0x58] sm:$0xff]   ;;  %v1272_v27 = vpack.c.bf16 %v1253_v23, %v1252_v22  ;;  %v1232_v28 = vld [vmem:[#allocation2 + $0x50] sm:$0xff] }
 0x19c   : > { %v1233_v29 = vld [vmem:[#allocation2 + $0x68] sm:$0xff]  ;;  %v1254_v30 = vld [vmem:[#allocation2 + $0x10] sm:$0xff]  ;;  %v2579_v34 = vld [vmem:[%s2894_s11 + $0x60] sm:$0xff]  }
 0x19d   : > { %2227 = vmatpush3.bf16.msra.mxu0 %v2563_v3  ;;  %2412 = vmatpush3.bf16.msra.mxu1 %v2563_v3  ;;  %v1255_v31 = vld [vmem:[#allocation2 + $0x28] sm:$0xff]  ;;  %v1262_v33 = vpack.c.bf16 %v1233_v29, %v1232_v28  ;;  %v1234_v36 = vld [vmem:[#allocation2 + $0x30] sm:$0xff]  ;;  %v1256_v38 = vld [vmem:[#allocation2 + $0xa0] sm:$0xff] }
 0x19e   : > { %2228 = vmatprep.subr.bf16.mxu0 %v2564_v4  ;;  %2405 = vmatprep.subr.bf16.mxu1 %v2564_v4  ;;  %v2575_v32 = vld [vmem:[%s2894_s11 + $0x8] sm:$0xff]   ;;  %v1273_v35 = vpack.c.bf16 %v1255_v31, %v1254_v30  ;;  %v1257_v39 = vld [vmem:[#allocation2 + $0xf8] sm:$0xff]  ;;  %v2576_v40 = vld [vmem:[%s2894_s11 + $0x10] sm:$0xff]  }
 0x19f   : > { %v1235_v37 = vld [vmem:[#allocation2 + $0x48] sm:$0xff]  ;;  %v1274_v43 = vpack.c.bf16 %v1257_v39, %v1256_v38  ;;  %v1236_v44 = vld [vmem:[#allocation2 + $0x80] sm:$0xff]  ;;  %v1259_v47 = vld [vmem:[#allocation2 + $0x98] sm:$0xff] }
 0x1a0   : > { %v1263_v41 = vpack.c.bf16 %v1235_v37, %v1234_v36  ;;  %v2581_v42 = vld [vmem:[%s2894_s11 + $0x68] sm:$0xff]   ;;  %v1258_v46 = vld [vmem:[#allocation2 + $0x20] sm:$0xff]  ;;  %v2578_v48 = vld [vmem:[%s2894_s11 + $0x18] sm:$0xff]  }
 0x1a1   : > { %2229 = vmatpush3.bf16.msra.mxu0 %v2565_v5  ;;  %2413 = vmatpush3.bf16.msra.mxu1 %v2565_v5  ;;  %v1237_v45 = vld [vmem:[#allocation2 + $0x88] sm:$0xff]  ;;  %v2583_v50 = vld [vmem:[%s2894_s11 + $0x70] sm:$0xff]   ;;  %v1275_v51 = vpack.c.bf16 %v1259_v47, %v1258_v46  ;;  %v1239_v53 = vld [vmem:[#allocation2 + $0xb8] sm:$0xff] }
 0x1a2   : > { %2230 = vmatprep.subr.bf16.mxu0 %v2566_v6  ;;  %2406 = vmatprep.subr.bf16.mxu1 %v2566_v6  ;;  %v1264_v49 = vpack.c.bf16 %v1237_v45, %v1236_v44  ;;  %v1238_v52 = vld [vmem:[#allocation2 + $0xe8] sm:$0xff]  ;;  %v2580_v54 = vld [vmem:[%s2894_s11 + $0x20] sm:$0xff]   ;;  %v2585_v56 = vld [vmem:[%s2894_s11 + $0x78] sm:$0xff]  }
 0x1a3   : > { %v1265_v55 = vpack.c.bf16 %v1239_v53, %v1238_v52  ;;  %v1240_v57 = vld [vmem:[#allocation2 + $0x60] sm:$0xff]  ;;  %v1241_v58 = vld [vmem:[#allocation2 + $0xf0] sm:$0xff]  ;;  %v2582_v59 = vld [vmem:[%s2894_s11 + $0x28] sm:$0xff]  }
 0x1a4   : > { %v1266_v60 = vpack.c.bf16 %v1241_v58, %v1240_v57  ;;  %v1242_v61 = vld [vmem:[#allocation2 + $0x8] sm:$0xff]  ;;  %v1243_v62 = vld [vmem:[#allocation2 + $0x78] sm:$0xff]  ;;  %v2584_v63 = vld [vmem:[%s2894_s11 + $0x30] sm:$0xff]  }
 0x1a5   : > { %2231 = vmatpush3.bf16.msra.mxu0 %v2567_v7  ;;  %2414 = vmatpush3.bf16.msra.mxu1 %v2567_v7  ;;  %v1267_v0 = vpack.c.bf16 %v1243_v62, %v1242_v61  ;;  %v1244_v1 = vld [vmem:[#allocation2 + $0x38] sm:$0xff]  ;;  %v1246_v5 = vld [vmem:[#allocation2 + $0x40] sm:$0xff]  ;;  %v1247_v6 = vld [vmem:[#allocation2 + $0xc8] sm:$0xff] }
 0x1a6   : > { %2232 = vmatprep.subr.bf16.mxu0 %v2568_v8  ;;  %2407 = vmatprep.subr.bf16.mxu1 %v2568_v8  ;;  %v1245_v2 = vld [vmem:[#allocation2 + $0x58] sm:$0xff]  ;;  %v2587_v7 = vld [vmem:[%s2894_s11 + $0x40] sm:$0xff]   ;;  %v1269_v8 = vpack.c.bf16 %v1247_v6, %v1246_v5  ;;  %v1249_v10 = vld [vmem:[#allocation2 + $0x90] sm:$0xff] }
 0x1a7   : > { %v2586_v3 = vld [vmem:[%s2894_s11 + $0x38] sm:$0xff]   ;;  %v1268_v4 = vpack.c.bf16 %v1245_v2, %v1244_v1  ;;  %v1248_v9 = vld [vmem:[#allocation2 + $0xe0] sm:$0xff]  ;;  %v2588_v11 = vld [vmem:[%s2894_s11 + $0x48] sm:$0xff]  }
 0x1a8   : > { %v2592_v14 = vld [vmem:[%s2898_s26 + $0x4] ss:$8 sps:$4 sm:$0xff]   ;;  %v3054_v20 = vld [vmem:[%s3250_s4] ss:$0 sm:$0xff] }
 0x1a9   : > { %2233 = vmatpush3.bf16.msra.mxu0 %v2569_v12  ;;  %2415 = vmatpush3.bf16.msra.mxu1 %v2569_v12  ;;  %v1270_v12 = vpack.c.bf16 %v1249_v10, %v1248_v9 }
 0x1aa   : > { %2234 = vmatprep.subr.bf16.mxu0 %v2570_v13  ;;  %2408 = vmatprep.subr.bf16.mxu1 %v2570_v13  ;;  %v2589_v13 = vld [vmem:[%s2894_s11 + $0x50] sm:$0xff]  }
 0x1ad   : > { %2235 = vmatpush3.bf16.msra.mxu0 %v2571_v17  ;;  %2416 = vmatpush3.bf16.msra.mxu1 %v2571_v17 }
 0x1ae   : > { %2236 = vmatprep.subr.bf16.mxu0 %v2572_v18  ;;  %2409 = vmatprep.subr.bf16.mxu1 %v2572_v18 }
 0x1b1   : > { %2237 = vmatpush3.bf16.msra.mxu0 %v2573_v19  ;;  %2417 = vmatpush3.bf16.msra.mxu1 %v2573_v19 }
 0x1b4   : > { %1540 = vmatmul.mubr.bf16.vlgmr.msra.gmra.mxu0 %v2574_v24  ;;  %1628 = vmatmul.mubr.bf16.vlgmr.msra.gmra.mxu1 %v2577_v26 }
 0x1b5   : > { %1547 = vmatprep.mubr.bf16.mxu0 %v1261_v25  ;;  %1635 = vmatprep.mubr.bf16.mxu1 %v1272_v27 }
 0x1bc   : > { %1548 = vmatmul.mubr.bf16.gmra.mxu0 %v2575_v32  ;;  %1636 = vmatmul.mubr.bf16.gmra.mxu1 %v2579_v34 }
 0x1bd   : > { %1555 = vmatprep.mubr.bf16.mxu0 %v1262_v33  ;;  %1643 = vmatprep.mubr.bf16.mxu1 %v1273_v35 }
 0x1c4   : > { %1556 = vmatmul.mubr.bf16.gmra.mxu0 %v2576_v40  ;;  %1644 = vmatmul.mubr.bf16.gmra.mxu1 %v2581_v42 }
 0x1c5   : > { %1563 = vmatprep.mubr.bf16.mxu0 %v1263_v41  ;;  %1651 = vmatprep.mubr.bf16.mxu1 %v1274_v43 }
 0x1cc   : > { %1564 = vmatmul.mubr.bf16.gmra.mxu0 %v2578_v48  ;;  %1652 = vmatmul.mubr.bf16.gmra.mxu1 %v2583_v50 }
 0x1cd   : > { %1571 = vmatprep.mubr.bf16.mxu0 %v1264_v49  ;;  %1659 = vmatprep.mubr.bf16.mxu1 %v1275_v51 }
 0x1d4   : > { %1572 = vmatmul.mubr.bf16.gmra.mxu0 %v2580_v54  ;;  %1660 = vmatmul.mubr.bf16.gmra.mxu1 %v2585_v56 }
 0x1d5   : > { %1579 = vmatprep.mubr.bf16.mxu0 %v1265_v55  ;;  %1832 = vmatprep.mubr.bf16.mxu1 %v2592_v14 }
 0x1dc   : > { %1580 = vmatmul.mubr.bf16.gmra.mxu0 %v2582_v59 }
 0x1dd   : > { %1587 = vmatprep.mubr.bf16.mxu0 %v1266_v60 }
 0x1e4   : > { %1588 = vmatmul.mubr.bf16.gmra.mxu0 %v2584_v63 }
 0x1e5   : > { %1595 = vmatprep.mubr.bf16.mxu0 %v1267_v0 }
 0x1ec   : > { %1596 = vmatmul.mubr.bf16.gmra.mxu0 %v2586_v3 }
 0x1ed   : > { %1603 = vmatprep.mubr.bf16.mxu0 %v1268_v4 }
 0x1f4   : > { %1604 = vmatmul.mubr.bf16.gmra.mxu0 %v2587_v7 }
 0x1f5   : > { %1611 = vmatprep.mubr.bf16.mxu0 %v1269_v8 }
 0x1fc   : > { %1612 = vmatmul.mubr.bf16.gmra.mxu0 %v2588_v11 }
 0x1fd   : > { %1619 = vmatprep.mubr.bf16.mxu0 %v1270_v12 }
 0x204   : > { %1620 = vmatmul.mubr.bf16.gmra.mxu0 %v2589_v13 }
 0x274   : > { %v2238_v15 = vpop.f32.mrf.mxu0  ;;  %v2304_v16 = vpop.f32.mrf.mxu1 }
 0x276   : > { %v2239_v17 = vpop.f32.mrf.mxu0  ;;  %v2305_v19 = vpop.f32.mrf.mxu1 }
 0x277   : > { %v2240_v18 = vadd.f32 %v2239_v17, %v2238_v15  ;;  %v2306_v22 = vadd.f32 %v2305_v19, %v2304_v16 }
 0x278   : > { %v2241_v21 = vpop.f32.mrf.mxu0  ;;  %v2307_v23 = vpop.f32.mrf.mxu1 }
 0x279   : > { %v1630_v25 = vadd.f32 %v2306_v22, %v3054_v20  ;;  %v1542_v26 = vadd.f32 %v2240_v18, %v3054_v20 }
 0x27a   : > { %v2242_v24 = vpop.f32.mrf.mxu0  ;;  %v2308_v28 = vpop.f32.mrf.mxu1 }
 0x27b   : > { %v2243_v27 = vadd.f32 %v2242_v24, %v2241_v21  ;;  %v2309_v30 = vadd.f32 %v2308_v28, %v2307_v23  ;;  %v1690_v34 = vmax.f32 %v1630_v25, 0.0  ;;  %v1668_v36 = vmax.f32 %v1542_v26, 0.0 }
 0x27c   : > { %v2244_v29 = vpop.f32.mrf.mxu0  ;;  %v3059_v32 = vpop.f32.mrf.mxu1 }
 0x27d   : > { %v1545_v31 = vadd.f32 %v2243_v27, %v3054_v20  ;;  %v1633_v35 = vadd.f32 %v2309_v30, %v3054_v20 }
 0x27e   : > { %v2245_v33 = vpop.f32.mrf.mxu0  ;;  %v3062_v39 = vpop.f32.mrf.mxu1 }
 0x27f   : > { %v1669_v37 = vmax.f32 %v1545_v31, 0.0  ;;  %v2246_v38 = vadd.f32 %v2245_v33, %v2244_v29  ;;  %v1691_v41 = vmax.f32 %v1633_v35, 0.0 }
 0x280   : > { %v2247_v40 = vpop.f32.mrf.mxu0  ;;  %v3066_v43 = vpop.f32.mrf.mxu1 }
 0x281   : > { %v3064_v42 = vpack.c.bf16 %v1669_v37, %v1668_v36  ;;  %v3068_v45 = vpack.c.bf16 %v1691_v41, %v1690_v34  ;;  %v1550_v46 = vadd.f32 %v2246_v38, %v3054_v20 }
 0x282   : > { %v2248_v44 = vpop.f32.mrf.mxu0  ;;  %v3071_v48 = vpop.f32.mrf.mxu1 }
 0x283   : > { %v2249_v47 = vadd.f32 %v2248_v44, %v2247_v40  ;;  %v1670_v53 = vmax.f32 %v1550_v46, 0.0 }
 0x284   : > { %v2250_v49 = vpop.f32.mrf.mxu0  ;;  %v2316_v51 = vpop.f32.mrf.mxu1 }
 0x285   : > { %v1553_v50 = vadd.f32 %v2249_v47, %v3054_v20 }
 0x286   : > { %v2251_v52 = vpop.f32.mrf.mxu0  ;;  %v2317_v56 = vpop.f32.mrf.mxu1 }
 0x287   : > { %v1671_v54 = vmax.f32 %v1553_v50, 0.0  ;;  %v2252_v55 = vadd.f32 %v2251_v52, %v2250_v49  ;;  %v2318_v49 = vadd.f32 %v2317_v56, %v2316_v51 }
 0x288   : > { %v2253_v57 = vpop.f32.mrf.mxu0  ;;  %v2319_v59 = vpop.f32.mrf.mxu1 }
 0x289   : > { %v3074_v58 = vpack.c.bf16 %v1671_v54, %v1670_v53  ;;  %v1558_v61 = vadd.f32 %v2252_v55, %v3054_v20 }
 0x28a   : > { %v2254_v60 = vpop.f32.mrf.mxu0  ;;  %v2320_v63 = vpop.f32.mrf.mxu1 }
 0x28b   : > { %v2255_v62 = vadd.f32 %v2254_v60, %v2253_v57  ;;  %v1672_v4 = vmax.f32 %v1558_v61, 0.0  ;;  %v2321_v50 = vadd.f32 %v2320_v63, %v2319_v59  ;;  %v2312_v61 = vadd.f32 %v3062_v39, %v3059_v32 }
 0x28c   : > { %v3077_v0 = vpop.f32.mrf.mxu0  ;;  %v2322_v2 = vpop.f32.mrf.mxu1  ;;  %v1646_v59 = vadd.f32 %v2318_v49, %v3054_v20 }
 0x28d   : > { %v1561_v1 = vadd.f32 %v2255_v62, %v3054_v20  ;;  %v1649_v63 = vadd.f32 %v2321_v50, %v3054_v20 }
 0x28e   : > { %v3080_v3 = vpop.f32.mrf.mxu0  ;;  %v2323_v6 = vpop.f32.mrf.mxu1 }
 0x28f   : > { %v1673_v5 = vmax.f32 %v1561_v1, 0.0  ;;  %v2324_v38 = vadd.f32 %v2323_v6, %v2322_v2  ;;  %v2315_v1 = vadd.f32 %v3071_v48, %v3066_v43  ;;  %v1638_v43 = vadd.f32 %v2312_v61, %v3054_v20 }
 0x290   : > { %v3082_v7 = vpop.f32.mrf.mxu0  ;;  %v2325_v9 = vpop.f32.mrf.mxu1 }
 0x291   : > { %v3084_v8 = vpack.c.bf16 %v1673_v5, %v1672_v4  ;;  %v1654_v52 = vadd.f32 %v2324_v38, %v3054_v20 }
 0x292   : > { %v3086_v10 = vpop.f32.mrf.mxu0  ;;  %v2326_v11 = vpop.f32.mrf.mxu1 }
 0x293   : > { %v2327_v40 = vadd.f32 %v2326_v11, %v2325_v9  ;;  %v1696_v4 = vmax.f32 %v1654_v52, 0.0 }
 0x294   : > { %v3088_v12 = vpop.f32.mrf.mxu0  ;;  %v2328_v13 = vpop.f32.mrf.mxu1 }
 0x295   : > { %v1657_v53 = vadd.f32 %v2327_v40, %v3054_v20 }
 0x296   : > { %v3090_v14 = vpop.f32.mrf.mxu0  ;;  %v2329_v15 = vpop.f32.mrf.mxu1 }
 0x297   : > { %v2330_v17 = vadd.f32 %v2329_v15, %v2328_v13  ;;  %v1697_v5 = vmax.f32 %v1657_v53, 0.0 }
 0x298   : > { %v2265_v16 = vpop.f32.mrf.mxu0  ;;  %v2331_v18 = vpop.f32.mrf.mxu1 }
 0x299   : > { %v1662_v21 = vadd.f32 %v2330_v17, %v3054_v20 }
 0x29a   : > { %v2266_v19 = vpop.f32.mrf.mxu0  ;;  %v2332_v22 = vpop.f32.mrf.mxu1 }
 0x29b   : > { %v2333_v24 = vadd.f32 %v2332_v22, %v2331_v18  ;;  %v1698_v26 = vmax.f32 %v1662_v21, 0.0  ;;  %v2267_v13 = vadd.f32 %v2266_v19, %v2265_v16  ;;  %v1641_v21 = vadd.f32 %v2315_v1, %v3054_v20 }
 0x29c   : > { %v2268_v23 = vpop.f32.mrf.mxu0  ;;  %v1694_v22 = vmax.f32 %v1646_v59, 0.0  ;;  %v2261_v16 = vadd.f32 %v3086_v10, %v3082_v7 }
 0x29d   : > { %v1665_v27 = vadd.f32 %v2333_v24, %v3054_v20  ;;  %v1695_v24 = vmax.f32 %v1649_v63, 0.0  ;;  %v1577_v19 = vadd.f32 %v2267_v13, %v3054_v20 }
 0x29e   : > { %v2269_v25 = vpop.f32.mrf.mxu0  ;;  %v1569_v40 = vadd.f32 %v2261_v16, %v3054_v20 }
 0x29f   : > { %v1699_v29 = vmax.f32 %v1665_v27, 0.0  ;;  %v2270_v9 = vadd.f32 %v2269_v25, %v2268_v23  ;;  %v1738_v27 = vpack.c.bf16 %v1697_v5, %v1696_v4  ;;  %v2264_v23 = vadd.f32 %v3090_v14, %v3088_v12 }
 0x2a0   : > { %v2271_v28 = vpop.f32.mrf.mxu0  ;;  %v2258_v12 = vadd.f32 %v3080_v3, %v3077_v0  ;;  %v1677_v7 = vmax.f32 %v1577_v19, 0.0  ;;  %v1675_v50 = vmax.f32 %v1569_v40, 0.0  ;;  %v1701_v19 = vld [vmem:[%s3252_s6 + $0x8] sm:$0xff] }
 0x2a1   : > { %v1739_v31 = vpack.c.bf16 %v1699_v29, %v1698_v26  ;;  %v1582_v25 = vadd.f32 %v2270_v9, %v3054_v20  ;;  %v1574_v14 = vadd.f32 %v2264_v23, %v3054_v20  ;;  %v1700_v23 = vld [vmem:[%s3252_s6] sm:$0xff] }
 0x2a2   : > { %v2272_v30 = vpop.f32.mrf.mxu0 }
 0x2a3   : > { %2334 = vmatprep.subr.bf16.mxu1 %v1739_v31  ;;  %v2273_v2 = vadd.f32 %v2272_v30, %v2271_v28 }
 0x2a4   : > { %v2274_v33 = vpop.f32.mrf.mxu0 }
 0x2a5   : > { %v1585_v15 = vadd.f32 %v2273_v2, %v3054_v20 }
 0x2a6   : > { %v2275_v34 = vpop.f32.mrf.mxu0 }
 0x2a7   : > { %v2276_v55 = vadd.f32 %v2275_v34, %v2274_v33  ;;  %v1679_v30 = vmax.f32 %v1585_v15, 0.0  ;;  %v1692_v33 = vmax.f32 %v1638_v43, 0.0  ;;  %v1693_v34 = vmax.f32 %v1641_v21, 0.0  ;;  %v2593_v15 = vld [vmem:[%s2898_s26 + $0x14] ss:$8 sps:$4 sm:$0xff]  }
 0x2a8   : > { %v2277_v35 = vpop.f32.mrf.mxu0  ;;  %v2599_v21 = vld [vmem:[%s2898_s26 + $0x34] ss:$8 sps:$4 sm:$0xff]  }
 0x2a9   : > { %v1590_v32 = vadd.f32 %v2276_v55, %v3054_v20 }
 0x2aa   : > { %v2278_v36 = vpop.f32.mrf.mxu0 }
 0x2ab   : > { %v2279_v47 = vadd.f32 %v2278_v36, %v2277_v35  ;;  %v1680_v28 = vmax.f32 %v1590_v32, 0.0  ;;  %v1737_v36 = vpack.c.bf16 %v1695_v24, %v1694_v22  ;;  %v2602_v22 = vld [vmem:[%s2898_s26 + $0x44] ss:$8 sps:$4 sm:$0xff]   ;;  %v2604_v24 = vld [vmem:[%s2898_s26 + $0x40] ss:$8 sps:$4 sm:$0xff]  }
 0x2ac   : > { %v2280_v37 = vpop.f32.mrf.mxu0 }
 0x2ad   : > { %v1593_v51 = vadd.f32 %v2279_v47, %v3054_v20  ;;  %v1676_v47 = vmax.f32 %v1574_v14, 0.0 }
 0x2ae   : > { %v2281_v41 = vpop.f32.mrf.mxu0 }
 0x2af   : > { %v2282_v44 = vadd.f32 %v2281_v41, %v2280_v37  ;;  %v1681_v17 = vmax.f32 %v1593_v51, 0.0  ;;  %v1678_v37 = vmax.f32 %v1582_v25, 0.0  ;;  %v1728_v0 = vpack.c.bf16 %v1677_v7, %v1676_v47 }
 0x2b0   : > { %v2283_v46 = vpop.f32.mrf.mxu0 }
 0x2b1   : > { %v1598_v57 = vadd.f32 %v2282_v44, %v3054_v20  ;;  %v1730_v31 = vpack.c.bf16 %v1681_v17, %v1680_v28  ;;  %v1729_v10 = vpack.c.bf16 %v1679_v30, %v1678_v37  ;;  %v1736_v44 = vpack.c.bf16 %v1693_v34, %v1692_v33  ;;  %v2595_v17 = vld [vmem:[%s2898_s26 + $0x10] ss:$8 sps:$4 sm:$0xff]  }
 0x2b2   : > { %v2284_v54 = vpop.f32.mrf.mxu0 }
 0x2b3   : > { %v2285_v60 = vadd.f32 %v2284_v54, %v2283_v46  ;;  %v1682_v39 = vmax.f32 %v1598_v57, 0.0  ;;  %v1566_v46 = vadd.f32 %v2258_v12, %v3054_v20 }
 0x2b4   : > { %v3099_v62 = vpop.f32.mrf.mxu0 }
 0x2b5   : > { %v1601_v56 = vadd.f32 %v2285_v60, %v3054_v20  ;;  %v1674_v52 = vmax.f32 %v1566_v46, 0.0 }
 0x2b6   : > { %v3107_v6 = vpop.f32.mrf.mxu0 }
 0x2b7   : > { %v1683_v11 = vmax.f32 %v1601_v56, 0.0  ;;  %v1727_v57 = vpack.c.bf16 %v1675_v50, %v1674_v52  ;;  %v2288_v59 = vadd.f32 %v3107_v6, %v3099_v62 }
 0x2b8   : > { %v2289_v48 = vpop.f32.mrf.mxu0 }
 0x2b9   : > { %v1731_v18 = vpack.c.bf16 %v1683_v11, %v1682_v39  ;;  %v1606_v39 = vadd.f32 %v2288_v59, %v3054_v20 }
 0x2ba   : > { %v2290_v26 = vpop.f32.mrf.mxu0 }
 0x2bb   : > { %2335 = vmatpush3.bf16.msra.mxu1 %v1731_v18  ;;  %v2291_v1 = vadd.f32 %v2290_v26, %v2289_v48  ;;  %v1684_v6 = vmax.f32 %v1606_v39, 0.0  ;;  %v2598_v18 = vld [vmem:[%s2898_s26 + $0x20] ss:$8 sps:$4 sm:$0xff]   ;;  %v2607_v26 = vld [vmem:[%s2898_s26 + $0x50] ss:$8 sps:$4 sm:$0xff]  }
 0x2bc   : > { %v2292_v29 = vpop.f32.mrf.mxu0  ;;  %2336 = vmatprep.subr.bf16.mxu1 %v1738_v27  ;;  %v1709_v39 = vld [vmem:[%s3252_s6 + $0x48] sm:$0xff] }
 0x2bd   : > { %v1609_v5 = vadd.f32 %v2291_v1, %v3054_v20 }
 0x2be   : > { %v2293_v35 = vpop.f32.mrf.mxu0 }
 0x2bf   : > { %2337 = vmatpush3.bf16.msra.mxu1 %v1730_v31  ;;  %v2294_v60 = vadd.f32 %v2293_v35, %v2292_v29  ;;  %v1685_v48 = vmax.f32 %v1609_v5, 0.0  ;;  %v1702_v35 = vld [vmem:[%s3252_s6 + $0x10] sm:$0xff] }
 0x2c0   : > { %v2295_v38 = vpop.f32.mrf.mxu0  ;;  %2338 = vmatprep.subr.bf16.mxu1 %v1737_v36 }
 0x2c1   : > { %v1614_v63 = vadd.f32 %v2294_v60, %v3054_v20  ;;  %v1732_v13 = vpack.c.bf16 %v1685_v48, %v1684_v6  ;;  %v1710_v6 = vld [vmem:[%s3252_s6 + $0x50] sm:$0xff] }
 0x2c2   : > { %v2296_v41 = vpop.f32.mrf.mxu0 }
 0x2c3   : > { %2339 = vmatpush3.bf16.msra.mxu1 %v1729_v10  ;;  %v2297_v53 = vadd.f32 %v2296_v41, %v2295_v38  ;;  %v1686_v11 = vmax.f32 %v1614_v63, 0.0  ;;  %v1703_v38 = vld [vmem:[%s3252_s6 + $0x18] sm:$0xff] }
 0x2c4   : > { %v2298_v49 = vpop.f32.mrf.mxu0  ;;  %2340 = vmatprep.subr.bf16.mxu1 %v1736_v44  ;;  %v1704_v44 = vld [vmem:[%s3252_s6 + $0x20] sm:$0xff] }
 0x2c5   : > { %v1617_v2 = vadd.f32 %v2297_v53, %v3054_v20 }
 0x2c6   : > { %v2299_v3 = vpop.f32.mrf.mxu0 }
 0x2c7   : > { %v2300_v54 = vadd.f32 %v2299_v3, %v2298_v49  ;;  %2341 = vmatpush3.bf16.msra.mxu1 %v1728_v0  ;;  %v1705_v0 = vld [vmem:[%s3252_s6 + $0x28] sm:$0xff] }
 0x2c8   : > { %v2301_v55 = vpop.f32.mrf.mxu0  ;;  %2342 = vmatprep.subr.bf16.mxu1 %v3068_v45  ;;  %v1687_v45 = vmax.f32 %v1617_v2, 0.0  ;;  %v1707_v2 = vld [vmem:[%s3252_s6 + $0x38] sm:$0xff] }
 0x2c9   : > { %v1622_v51 = vadd.f32 %v2300_v54, %v3054_v20 }
 0x2ca   : > { %v2302_v61 = vpop.f32.mrf.mxu0  ;;  %v1733_v62 = vpack.c.bf16 %v1687_v45, %v1686_v11 }
 0x2cb   : > { %v2303_v56 = vadd.f32 %v2302_v61, %v2301_v55  ;;  %2343 = vmatpush3.bf16.msra.mxu1 %v1727_v57  ;;  %v1688_v9 = vmax.f32 %v1622_v51, 0.0  ;;  %v1706_v55 = vld [vmem:[%s3252_s6 + $0x30] sm:$0xff] }
 0x2cd   : > { %v1625_v4 = vadd.f32 %v2303_v56, %v3054_v20  ;;  %v2590_v20 = vld [vmem:[%s2898_s26] ss:$8 sps:$4 sm:$0xff]  }
 0x2cf   : > { %v1689_v32 = vmax.f32 %v1625_v4, 0.0  ;;  %v1708_v4 = vld [vmem:[%s3252_s6 + $0x40] sm:$0xff] }
 0x2d1   : > { %v1734_v43 = vpack.c.bf16 %v1689_v32, %v1688_v9 }
 0x2d3   : > { %2344 = vmatprep.subr.bf16.mxu1 %v1734_v43 }
 0x2d4   : > { %2345 = vmatpush3.bf16.msra.mxu1 %v3084_v8  ;;  %v2596_v8 = vld [vmem:[%s2898_s26 + $0x24] ss:$8 sps:$4 sm:$0xff]  }
 0x2d5   : > { %2346 = vmatprep.subr.bf16.mxu1 %v1733_v62 }
 0x2d8   : > { %2347 = vmatpush3.bf16.msra.mxu1 %v3074_v58  ;;  %v2601_v58 = vld [vmem:[%s2898_s26 + $0x30] ss:$8 sps:$4 sm:$0xff]  }
 0x2d9   : > { %2348 = vmatprep.subr.bf16.mxu1 %v1732_v13 }
 0x2dc   : > { %2349 = vmatpush3.bf16.msra.mxu1 %v3064_v42  ;;  %v2605_v42 = vld [vmem:[%s2898_s26 + $0x54] ss:$8 sps:$4 sm:$0xff]  }
 0x2df   : > { %1833 = vmatmul.mubr.bf16.vlgmr.msra.gmra.mxu1 %v2590_v20 }
 0x2e0   : > { %1840 = vmatprep.mubr.bf16.mxu1 %v2593_v15 }
 0x2e7   : > { %1841 = vmatmul.mubr.bf16.gmra.mxu1 %v2595_v17 }
 0x2e8   : > { %1848 = vmatprep.mubr.bf16.mxu1 %v2596_v8  ;;  %v1711_v8 = vld [vmem:[%s3252_s6 + $0x58] sm:$0xff] }
 0x2ef   : > { %1849 = vmatmul.mubr.bf16.gmra.mxu1 %v2598_v18 }
 0x2f0   : > { %1856 = vmatprep.mubr.bf16.mxu1 %v2599_v21 }
 0x2f7   : > { %1857 = vmatmul.mubr.bf16.gmra.mxu1 %v2601_v58 }
 0x2f8   : > { %1864 = vmatprep.mubr.bf16.mxu1 %v2602_v22 }
 0x2ff   : > { %1865 = vmatmul.mubr.bf16.gmra.mxu1 %v2604_v24 }
 0x300   : > { %1872 = vmatprep.mubr.bf16.mxu1 %v2605_v42 }
 0x307   : > { %1873 = vmatmul.mubr.bf16.gmra.mxu1 %v2607_v26 }
 0x39f   : > { %v2350_v27 = vpop.f32.mrf.mxu1 }
 0x3a1   : > { %v2351_v25 = vpop.f32.mrf.mxu1 }
 0x3a2   : > { %v2352_v28 = vadd.f32 %v2351_v25, %v2350_v27 }
 0x3a3   : > { %v2353_v29 = vpop.f32.mrf.mxu1 }
 0x3a4   : > { %v1881_v16 = vadd.f32 %v2352_v28, %v1700_v23 }
 0x3a5   : > { %v2354_v30 = vpop.f32.mrf.mxu1 }
 0x3a6   : > { %1893 = vst [vmem:[%s3252_s6] sm:$0xff] %v1881_v16  ;;  %v2355_v31 = vadd.f32 %v2354_v30, %v2353_v29 }
 0x3a7   : > { %v2356_v33 = vpop.f32.mrf.mxu1 }
 0x3a8   : > { %v1882_v34 = vadd.f32 %v2355_v31, %v1701_v19 }
 0x3a9   : > { %v2357_v36 = vpop.f32.mrf.mxu1 }
 0x3aa   : > { %1894 = vst [vmem:[%s3252_s6 + $0x8] sm:$0xff] %v1882_v34  ;;  %v2358_v12 = vadd.f32 %v2357_v36, %v2356_v33 }
 0x3ab   : > { %v2359_v14 = vpop.f32.mrf.mxu1 }
 0x3ac   : > { %v1883_v37 = vadd.f32 %v2358_v12, %v1702_v35 }
 0x3ad   : > { %v2360_v40 = vpop.f32.mrf.mxu1 }
 0x3ae   : > { %1895 = vst [vmem:[%s3252_s6 + $0x10] sm:$0xff] %v1883_v37  ;;  %v2361_v7 = vadd.f32 %v2360_v40, %v2359_v14 }
 0x3af   : > { %v2362_v10 = vpop.f32.mrf.mxu1 }
 0x3b0   : > { %v1884_v41 = vadd.f32 %v2361_v7, %v1703_v38 }
 0x3b1   : > { %v2363_v46 = vpop.f32.mrf.mxu1 }
 0x3b2   : > { %1896 = vst [vmem:[%s3252_s6 + $0x18] sm:$0xff] %v1884_v41  ;;  %v2364_v47 = vadd.f32 %v2363_v46, %v2362_v10 }
 0x3b3   : > { %v2365_v49 = vpop.f32.mrf.mxu1 }
 0x3b4   : > { %v1885_v50 = vadd.f32 %v2364_v47, %v1704_v44 }
 0x3b5   : > { %v2366_v3 = vpop.f32.mrf.mxu1 }
 0x3b6   : > { %1897 = vst [vmem:[%s3252_s6 + $0x20] sm:$0xff] %v1885_v50  ;;  %v2367_v52 = vadd.f32 %v2366_v3, %v2365_v49 }
 0x3b7   : > { %v2368_v53 = vpop.f32.mrf.mxu1 }
 0x3b8   : > { %v1886_v54 = vadd.f32 %v2367_v52, %v1705_v0 }
 0x3b9   : > { %v2369_v57 = vpop.f32.mrf.mxu1 }
 0x3ba   : > { %1898 = vst [vmem:[%s3252_s6 + $0x28] sm:$0xff] %v1886_v54  ;;  %v2370_v60 = vadd.f32 %v2369_v57, %v2368_v53 }
 0x3bb   : > { %v2371_v61 = vpop.f32.mrf.mxu1 }
 0x3bc   : > { %v1887_v1 = vadd.f32 %v2370_v60, %v1706_v55 }
 0x3bd   : > { %v2372_v51 = vpop.f32.mrf.mxu1 }
 0x3be   : > { %1899 = vst [vmem:[%s3252_s6 + $0x30] sm:$0xff] %v1887_v1  ;;  %v2373_v56 = vadd.f32 %v2372_v51, %v2371_v61 }
 0x3bf   : > { %v2374_v59 = vpop.f32.mrf.mxu1 }
 0x3c0   : > { %v1888_v63 = vadd.f32 %v2373_v56, %v1707_v2 }
 0x3c1   : > { %v2375_v5 = vpop.f32.mrf.mxu1 }
 0x3c2   : > { %1900 = vst [vmem:[%s3252_s6 + $0x38] sm:$0xff] %v1888_v63  ;;  %v2376_v45 = vadd.f32 %v2375_v5, %v2374_v59 }
 0x3c3   : > { %v2377_v9 = vpop.f32.mrf.mxu1 }
 0x3c4   : > { %v1889_v32 = vadd.f32 %v2376_v45, %v1708_v4 }
 0x3c5   : > { %v2378_v11 = vpop.f32.mrf.mxu1 }
 0x3c6   : > { %1901 = vst [vmem:[%s3252_s6 + $0x40] sm:$0xff] %v1889_v32  ;;  %v2379_v43 = vadd.f32 %v2378_v11, %v2377_v9 }
 0x3c7   : > { %v2380_v48 = vpop.f32.mrf.mxu1 }
 0x3c8   : > { %v1890_v62 = vadd.f32 %v2379_v43, %v1709_v39 }
 0x3c9   : > { %v2381_v13 = vpop.f32.mrf.mxu1 }
 0x3ca   : > { %1902 = vst [vmem:[%s3252_s6 + $0x48] sm:$0xff] %v1890_v62  ;;  %v2382_v20 = vadd.f32 %v2381_v13, %v2380_v48 }
 0x3cb   : > { %v2383_v15 = vpop.f32.mrf.mxu1 }
 0x3cc   : > { %v1891_v17 = vadd.f32 %v2382_v20, %v1710_v6 }
 0x3cd   : > { %v2384_v18 = vpop.f32.mrf.mxu1 }
 0x3ce   : > { %1903 = vst [vmem:[%s3252_s6 + $0x50] sm:$0xff] %v1891_v17  ;;  %v2385_v21 = vadd.f32 %v2384_v18, %v2383_v15 }
 0x3d0   : > { %v1892_v58 = vadd.f32 %v2385_v21, %v1711_v8 }
 0x3d2   : > { %1904 = vst [vmem:[%s3252_s6 + $0x58] sm:$0xff] %v1892_v58 }
 0x3d3 PF: > { %s16_s29 = sadd.s32 1, %s2678_s29   ;;  %s3259_s21 = smov %s2650_s22 }
 0x3d4   : > { %p13_p6 = scmp.ge.s32.totalorder %s16_s29, 6   ;;  %s3260_s22 = smov %s2789_s15 }
 0x3d5   : > { %s3261_s23 = smov %s2658_s24  ;;  %s3262_s24 = smov %s2792_s16 }
 0x3d6   : > { %s3263_s25 = smov %s2670_s27  ;;  %s3264_s26 = smov %s2674_s28 }
 0x3d7   : > { %s3265_s27 = smov %s3268_s30  ;;  %s3266_s28 = smov %s3272_s7 }
 0x3d8   :  { %15 = sbr.rel (!%p13_p6) target bundleno = 8 (0x8), region = 177 }

</bundles_post_ra>
